<compile_context>
chip_gen: v7x
topology: tpu7x:2x2x1
jax: 0.10.0
libtpu: 0.0.40
codegen_flags: <defaults>
</compile_context>

<pallas_src>
import numpy as np
import jax
import jax.numpy as jnp
from jax.experimental import pallas as pl
from jax.experimental.pallas import tpu as pltpu

EPS = 1e-5          # BatchNorm2d default eps
GROUPS = 32


def _default_groups_per_block():
    """4 grid steps on v7x (2 TensorCores), 2 maximal steps on v5e/v6e."""
    try:
        kind = jax.devices()[0].device_kind.lower()
        if "v7" in kind:
            return 8
    except Exception:
        pass
    return 16


# ---------------------------------------------------------------------------
# Wrapper: fold parameters, pad x once, run the single fused kernel.
# ---------------------------------------------------------------------------
def model_forward(x, gamma, beta, conv_w, conv_b, *, groups_per_block=None):
    """x: (1, 32, H, W) float32 NCHW. Returns (1, 512, H+2, W+2) float32."""
    N, C, H, W = x.shape
    assert N == 1 and C == GROUPS
    CO, ci_per_g, kh, kw = conv_w.shape
    # Fold below assumes a 1x1 kernel with exactly 1 input channel per group.
    assert ci_per_g == 1 and kh == 1 and kw == 1 and CO % GROUPS == 0
    K = CO // GROUPS
    HW = H * W
    Hp, Wp = H + 2, W + 2
    P = Hp * Wp
    GB = groups_per_block if groups_per_block is not None else _default_groups_per_block()
    assert GROUPS % GB == 0
    inv_hw = 1.0 / float(HW)

    # --- zero-padded input, spatial flattened into the lane dim: (G, 1, P) ---
    xp = jnp.pad(x[0].astype(jnp.float32), ((0, 0), (1, 1), (1, 1))).reshape(GROUPS, 1, P)

    # --- parameter-only folds (no data pass over x) ---
    w2 = conv_w.reshape(GROUPS, K).astype(jnp.float32)          # oc = g*K + k
    b2 = conv_b.reshape(GROUPS, K).astype(jnp.float32)
    wg = w2 * gamma.astype(jnp.float32)[:, None]                 # scales (x-mean)*rstd
    wb = w2 * beta.astype(jnp.float32)[:, None] + b2             # interior offset
    params = jnp.stack([wg, wb, b2], axis=-1)                    # (G, K, 3)

    # --- static interior mask over the padded flat spatial axis (host const) --
    mask_np = np.zeros((Hp, Wp), np.float32)
    mask_np[1:H + 1, 1:W + 1] = 1.0
    mask = jnp.asarray(mask_np.reshape(1, 1, P))

    def fused_kernel(xp_ref, p_ref, m_ref, o_ref):
        xp_v = xp_ref[...]                                       # (GB, 1, P)
        m = m_ref[...]                                           # (1, 1, P) 0/1
        p = p_ref[...]                                           # (GB, K, 3)
        wg_v = p[:, :, 0:1]                                      # (GB, K, 1)
        wb_v = p[:, :, 1:2]
        bb_v = p[:, :, 2:3]
        # BN batch stats per group: border lanes are zero, so the plain sum is
        # exact for the mean; mask the border out of the variance sum.
        mean = jnp.sum(xp_v, axis=-1, keepdims=True) * inv_hw    # (GB, 1, 1)
        d = xp_v - mean
        var = jnp.sum(d * d * m, axis=-1, keepdims=True) * inv_hw
        xn = d * jax.lax.rsqrt(var + EPS)                        # (GB, 1, P)
        # interior: wg*xn + wb ; border (conv padding=1): plain conv bias.
        v2 = m * (wg_v * xn + wb_v) + (1.0 - m) * bb_v           # (GB, K, P)
        sig = pl.reciprocal(1.0 + jnp.exp(-v2), approx=True)     # EUP sigmoid
        o_ref[...] = v2 + sig

    out3 = pl.pallas_call(
        fused_kernel,
        out_shape=jax.ShapeDtypeStruct((GROUPS, K, P), jnp.float32),
        grid=(GROUPS // GB,),
        in_specs=[
            pl.BlockSpec((GB, 1, P), lambda i: (i, 0, 0)),
            pl.BlockSpec((GB, K, 3), lambda i: (i, 0, 0)),
            pl.BlockSpec((1, 1, P), lambda i: (0, 0, 0)),
        ],
        out_specs=pl.BlockSpec((GB, K, P), lambda i: (i, 0, 0)),
        compiler_params=pltpu.CompilerParams(dimension_semantics=("parallel",)),
    )(xp, params, mask)

    return out3.reshape(1, CO, Hp, Wp)


# ---------------------------------------------------------------------------
# Pure-JAX reference (correctness check)
# ---------------------------------------------------------------------------
def reference(x, gamma, beta, conv_w, conv_b):
    mean = x.mean(axis=(0, 2, 3))
    var = x.var(axis=(0, 2, 3))                                  # biased (training BN)
    xn = (x - mean[None, :, None, None]) * jax.lax.rsqrt(var + EPS)[None, :, None, None]
    xn = xn * gamma[None, :, None, None] + beta[None, :, None, None]
    v2 = jax.lax.conv_general_dilated(
        xn, conv_w, window_strides=(1, 1), padding=((1, 1), (1, 1)),
        dimension_numbers=("NCHW", "OIHW", "NCHW"), feature_group_count=GROUPS,
    ) + conv_b[None, :, None, None]
    return v2 + jax.nn.sigmoid(v2)


if __name__ == "__main__":
    key = jax.random.PRNGKey(0)
    k1, k2, k3, k4, k5 = jax.random.split(key, 5)

    # Small shapes consistent with the module (channel counts fixed by the module).
    H = W = 16
    x = jax.random.normal(k1, (1, 32, H, W), jnp.float32)
    gamma = 1.0 + 0.1 * jax.random.normal(k2, (32,), jnp.float32)
    beta = 0.1 * jax.random.normal(k3, (32,), jnp.float32)
    conv_w = 0.1 * jax.random.normal(k4, (512, 1, 1, 1), jnp.float32)
    conv_b = 0.1 * jax.random.normal(k5, (512,), jnp.float32)

    out = jax.jit(model_forward)(x, gamma, beta, conv_w, conv_b)
    out = jax.block_until_ready(out)

    ref = reference(x, gamma, beta, conv_w, conv_b)
    assert out.shape == (1, 512, H + 2, W + 2), out.shape
    max_err = float(jnp.max(jnp.abs(out - ref)))
    # 2e-3 tolerance: covers the approx EUP reciprocal used for sigmoid.
    assert max_err < 2e-3, f"mismatch vs reference: {max_err}"

    print("KERNEL_OK")
</pallas_src>

<mosaic_0001>
module attributes {stable_mosaic.version = 11 : i64} {
  func.func @fused_kernel(%arg0: i32, %arg1: memref<16x1x324xf32, #tpu.memory_space<vmem>>, %arg2: memref<16x16x3xf32, #tpu.memory_space<vmem>>, %arg3: memref<1x1x324xf32, #tpu.memory_space<vmem>>, %arg4: memref<16x16x324xf32, #tpu.memory_space<vmem>>) attributes {dimension_semantics = [#tpu.dimension_semantics<parallel>], iteration_bounds = array<i64: 2>, scalar_prefetch = 0 : i64, scratch_operands = 0 : i64, tpu.core_type = #tpu.core_type<tc>, window_params = [{transform_indices = @transform_0, window_bounds = array<i64: 16, 1, 324>}, {transform_indices = @transform_1, window_bounds = array<i64: 16, 16, 3>}, {pipeline_mode = #tpu.pipeline_mode<synchronous>, transform_indices = @transform_2, window_bounds = array<i64: 1, 1, 324>}, {transform_indices = @transform_3, window_bounds = array<i64: 16, 16, 324>}]} {
    %c0 = arith.constant 0 : index
    %c0_0 = arith.constant 0 : index
    %c0_1 = arith.constant 0 : index
    %0 = vector.load %arg1[%c0, %c0_0, %c0_1] : memref<16x1x324xf32, #tpu.memory_space<vmem>>, vector<16x1x324xf32>
    %c0_2 = arith.constant 0 : index
    %c0_3 = arith.constant 0 : index
    %c0_4 = arith.constant 0 : index
    %1 = vector.load %arg3[%c0_2, %c0_3, %c0_4] : memref<1x1x324xf32, #tpu.memory_space<vmem>>, vector<1x1x324xf32>
    %c0_5 = arith.constant 0 : index
    %c0_6 = arith.constant 0 : index
    %c0_7 = arith.constant 0 : index
    %2 = vector.load %arg2[%c0_5, %c0_6, %c0_7] : memref<16x16x3xf32, #tpu.memory_space<vmem>>, vector<16x16x3xf32>
    %3 = vector.extract_strided_slice %2 {offsets = [0, 0, 0], sizes = [16, 16, 1], strides = [1, 1, 1]} : vector<16x16x3xf32> to vector<16x16x1xf32>
    %4 = vector.extract_strided_slice %2 {offsets = [0, 0, 1], sizes = [16, 16, 1], strides = [1, 1, 1]} : vector<16x16x3xf32> to vector<16x16x1xf32>
    %5 = vector.extract_strided_slice %2 {offsets = [0, 0, 2], sizes = [16, 16, 1], strides = [1, 1, 1]} : vector<16x16x3xf32> to vector<16x16x1xf32>
    %cst = arith.constant dense<0.000000e+00> : vector<16x1xf32>
    %6 = vector.multi_reduction <add>, %0, %cst [2] : vector<16x1x324xf32> to vector<16x1xf32>
    %7 = vector.shape_cast %6 : vector<16x1xf32> to vector<16x1x1xf32>
    %cst_8 = arith.constant 3.906250e-03 : f32
    %8 = vector.broadcast %cst_8 : f32 to vector<16x1x1xf32>
    %9 = arith.mulf %7, %8 : vector<16x1x1xf32>
    %10 = vector.broadcast %9 : vector<16x1x1xf32> to vector<16x1x324xf32>
    %11 = arith.subf %0, %10 : vector<16x1x324xf32>
    %12 = arith.mulf %11, %11 : vector<16x1x324xf32>
    %13 = vector.broadcast %1 : vector<1x1x324xf32> to vector<16x1x324xf32>
    %14 = arith.mulf %12, %13 : vector<16x1x324xf32>
    %cst_9 = arith.constant dense<0.000000e+00> : vector<16x1xf32>
    %15 = vector.multi_reduction <add>, %14, %cst_9 [2] : vector<16x1x324xf32> to vector<16x1xf32>
    %16 = vector.shape_cast %15 : vector<16x1xf32> to vector<16x1x1xf32>
    %cst_10 = arith.constant 3.906250e-03 : f32
    %17 = vector.broadcast %cst_10 : f32 to vector<16x1x1xf32>
    %18 = arith.mulf %16, %17 : vector<16x1x1xf32>
    %cst_11 = arith.constant 9.99999974E-6 : f32
    %19 = vector.broadcast %cst_11 : f32 to vector<16x1x1xf32>
    %20 = arith.addf %18, %19 : vector<16x1x1xf32>
    %21 = math.rsqrt %20 : vector<16x1x1xf32>
    %22 = vector.broadcast %21 : vector<16x1x1xf32> to vector<16x1x324xf32>
    %23 = arith.mulf %11, %22 : vector<16x1x324xf32>
    %24 = vector.broadcast %3 : vector<16x16x1xf32> to vector<16x16x324xf32>
    %25 = vector.broadcast %23 : vector<16x1x324xf32> to vector<16x16x324xf32>
    %26 = arith.mulf %24, %25 : vector<16x16x324xf32>
    %27 = vector.broadcast %4 : vector<16x16x1xf32> to vector<16x16x324xf32>
    %28 = arith.addf %26, %27 : vector<16x16x324xf32>
    %29 = vector.broadcast %1 : vector<1x1x324xf32> to vector<16x16x324xf32>
    %30 = arith.mulf %29, %28 : vector<16x16x324xf32>
    %cst_12 = arith.constant 1.000000e+00 : f32
    %31 = vector.broadcast %cst_12 : f32 to vector<1x1x324xf32>
    %32 = arith.subf %31, %1 : vector<1x1x324xf32>
    %33 = vector.broadcast %32 : vector<1x1x324xf32> to vector<16x16x324xf32>
    %34 = vector.broadcast %5 : vector<16x16x1xf32> to vector<16x16x324xf32>
    %35 = arith.mulf %33, %34 : vector<16x16x324xf32>
    %36 = arith.addf %30, %35 : vector<16x16x324xf32>
    %cst_13 = arith.constant 0.000000e+00 : f32
    %37 = vector.broadcast %cst_13 : f32 to vector<16x16x324xf32>
    %38 = arith.subf %37, %36 : vector<16x16x324xf32>
    %39 = math.exp %38 : vector<16x16x324xf32>
    %cst_14 = arith.constant 1.000000e+00 : f32
    %40 = vector.broadcast %cst_14 : f32 to vector<16x16x324xf32>
    %41 = arith.addf %40, %39 : vector<16x16x324xf32>
    %42 = tpu.reciprocal %41 {approx = true} : vector<16x16x324xf32> -> vector<16x16x324xf32>
    %43 = arith.addf %36, %42 : vector<16x16x324xf32>
    %c0_15 = arith.constant 0 : index
    %c0_16 = arith.constant 0 : index
    %c0_17 = arith.constant 0 : index
    %44 = vector.load %arg4[%c0_15, %c0_16, %c0_17] : memref<16x16x324xf32, #tpu.memory_space<vmem>>, vector<16x16x324xf32>
    tpu.vector_store %arg4[%c0_15, %c0_16, %c0_17], %43 {strides = array<i32>} : memref<16x16x324xf32, #tpu.memory_space<vmem>>, vector<16x16x324xf32>,
    return
  }
  func.func @transform_0(%arg0: i32) -> (i32, i32, i32) {
    %c0_i32 = arith.constant 0 : i32
    %c0_i32_0 = arith.constant 0 : i32
    %c0_i32_1 = arith.constant 0 : i32
    return %arg0, %c0_i32, %c0_i32_0 : i32, i32, i32
  }
  func.func @transform_1(%arg0: i32) -> (i32, i32, i32) {
    %c0_i32 = arith.constant 0 : i32
    %c0_i32_0 = arith.constant 0 : i32
    %c0_i32_1 = arith.constant 0 : i32
    return %arg0, %c0_i32, %c0_i32_0 : i32, i32, i32
  }
  func.func @transform_2(%arg0: i32) -> (i32, i32, i32) {
    %c0_i32 = arith.constant 0 : i32
    %c0_i32_0 = arith.constant 0 : i32
    %c0_i32_1 = arith.constant 0 : i32
    %c0_i32_2 = arith.constant 0 : i32
    return %c0_i32, %c0_i32_0, %c0_i32_1 : i32, i32, i32
  }
  func.func @transform_3(%arg0: i32) -> (i32, i32, i32) {
    %c0_i32 = arith.constant 0 : i32
    %c0_i32_0 = arith.constant 0 : i32
    %c0_i32_1 = arith.constant 0 : i32
    return %arg0, %c0_i32, %c0_i32_0 : i32, i32, i32
  }
}

</mosaic_0001>

<bundles_post_ra>
// kernel: model_forward.1
= control target key start
LH: loop header
LB: loop body
LE: loop exit
PB: predicated region body
PF: predicated region fallthrough
CT: control target
= control target key end

     0   :  { %8 = vsyncpa [#allocation3], 0  ;;  %s3787_s12 = smov 0   ;;  %s5927_s0 = inlined_call_operand.vmem [shape: f32[32,1,324], index: 0, kind: input, shape index: {}]   ;;  %s5928_s1 = inlined_call_operand.vmem [shape: f32[32,16,3], index: 1, kind: input, shape index: {}]   ;;  %s5929_s2 = inlined_call_operand.hbm [shape: f32[1,1,324], index: 2, kind: input, shape index: {}]   ;;  %s5930_s3 = inlined_call_operand.vmem [shape: f32[32,16,324], index: 3, kind: output, shape index: {}]  }
   0x1 LB: > { %s3261_s13 = sadd.s32 4294967295, %s3761_s12   ;;  %p3263_p0 = scmp.ge.s32.totalorder %s3761_s12, 1  ;;  %s3761_s12 = sphi %s3787_s12, %s14_s12  }
   0x2   : > { %p118_p1 = scmp.lt.s32.totalorder %s3761_s12, 3  ;;  %p3801_p3 = scmp.eq.s32.totalorder %s3261_s13, 0 }
   0x3   : > { %s3763_s16 = smov [#allocation2]   ;;  %s3723_s21 = scalar_lea.hbm %s5929_s2, 48 }
   0x4   : > { %p3795_p2 = pnand %p3263_p0, %p118_p1  ;;  %s131_s17 = sshll.u32 %s3763_s16, 4  ;;  %s132_s17 = int_to_ptr.vmem [resolvable:$true] %s131_s17 }
   0x5   : > { %s5986_s15 = scalar_select %p3801_p3, 1, 0 }
   0x6   : > { %s5985_s14 = scalar_select %p3795_p2, 1, 0 }
   0x7   : > { %p3283_p4 = pneg %p3795_p2  ;;  %p3724_p6 = scmp.ne.s32.totalorder %s5929_s2, %s3723_s21 }
   0x8   : > { %p3730_p10 = scmp.lt.u32.totalorder %s3723_s21, %s5929_s2 }
   0x9   : > { %p3809_p5 = pnand %p3801_p3, %p3283_p4 }
   0xb   : > { %p3725_p7 = pneg %p3809_p5 }
   0xd   : > { %p3726_p8 = pnand %p3725_p7, %p3724_p6 }
   0xf   : > { %p3727_p9 = pneg %p3726_p8 }
  0x11   : > { %p3732_p11 = pnand %p3730_p10, %p3727_p9 }
  0x13   : > { %3735 = shalt.err (!%p3732_p11)
}
  0x14   : > { %s3736_s26 = scalar_lea.vmem %s132_s17, 48  ;;  %s3743_s27 = scalar_lea.vmem %s132_s17, 64 }
  0x15   : > { %p3737_p12 = scmp.ne.s32.totalorder %s132_s17, %s3736_s26  ;;  %p3744_p1 = scmp.lt.s32.totalorder %s132_s17, %s132_s17 }
  0x16   : > { %p3745_p4 = scmp.lt.s32.totalorder %s3743_s27, %s3736_s26 }
  0x17   : > { %p3739_p13 = pnand %p3737_p12, %p3725_p7 }
  0x18   : > { %p3746_p3 = por %p3745_p4, %p3744_p1 }
  0x19   : > { %p3740_p0 = pneg %p3739_p13 }
  0x1b   : > { %p3747_p2 = pnand %p3746_p3, %p3740_p0 }
  0x1d   : > { %3750 = shalt.err (!%p3747_p2)
}
  0x1e   : > { %3286 = dma.hbm_to_vmem [thread:$0]  (!%p3809_p5), %s5929_s2, 48, %s132_s17, [#allocation3]  }
  0x1f   : > { %p5988_p6 = scmp.ne.s32.totalorder %s5985_s14, 0 }
  0x21   : > { %163 = sbr.rel (%p5988_p6) target bundleno = 701 (0x2bd), region = 32 }
  0x28   : > { %p5989_p8 = scmp.ne.s32.totalorder %s5986_s15, 0 }
  0x2a   : > { %3756 = dma.done.wait (%p5989_p8), [#allocation3], 48  }
  0x2b   : > { %3758 = vsyncadd (%p5989_p8), [#allocation3], 4294967248  ;;  %s3268_s30 = sshll.u32 %s3261_s13, 4  ;;  %v279_v0 = vlaneseq  ;;  %v3764_v1 = vmov 0   ;;  %vm519_vm0 = vcmask 1040384   ;;  %vm523_vm1 = vcmask 548864  }
  0x2c   : > { %p195_p2 = scmp.lt.s32.totalorder %s3268_s30, 31  ;;  %3302 = vset.pattern.permute.xlu1 %v3764_v1  ;;  %3301 = vset.pattern.permute.xlu0 %v3764_v1  ;;  %vm3084_vm2 = vcmask 556032  }
  0x2d   : > { %v280_v2 = vshrl.u32 %v279_v0, 7 }
  0x2e   : > { %s6218_s30 = smov (!%p195_p2, %s3268_s30), 31 }
  0x2f   : > { %s3277_s4 = smul.u32 3, %s6218_s30  ;;  %v3840_v3 = vsub.s32 0, %v280_v2  ;;  %v3842_v4 = vsub.s32 1, %v280_v2  ;;  %v3844_v5 = vsub.s32 2, %v280_v2  ;;  %s3276_s8 = sshll.u32 %s6218_s30, 4 }
  0x30   : > { %s4047_s11 = scalar_lea.vmem %s5928_s1, %s3276_s8  ;;  %s3278_s13 = smul.u32 48, %s6218_s30 }
  0x31   : > { %s3849_s7 = scalar_lea.vmem %s5927_s0, %s3277_s4 }
  0x32   : > { %v3852_v6 = vld [vmem:[%s3849_s7 + $0x6] sm:$0x7]  ;;  %v3855_v7 = vld [vmem:[%s3849_s7] sm:$0x7]  ;;  %v3858_v8 = vld [vmem:[%s3849_s7 + $0x9] sm:$0x7]  ;;  %s5234_s16 = scalar_lea.vmem %s5930_s3, %s3278_s13 }
  0x33   : > { %v306_v9 = vrot.slane %v3852_v6, %v3840_v3  ;;  %v310_v10 = vrot.slane %v3852_v6, %v3842_v4  ;;  %v314_v11 = vrot.slane %v3852_v6, %v3844_v5  ;;  %v282_v12 = vrot.slane %v3855_v7, %v3840_v3  ;;  %v3877_v17 = vld [vmem:[%s3849_s7 + $0x3] sm:$0x7]  ;;  %v3888_v26 = vld [vmem:[%s3849_s7 + $0xf] sm:$0x7]  ;;  %v3898_v35 = vld [vmem:[%s3849_s7 + $0xc] sm:$0x7] }
  0x34   : > { %v286_v13 = vrot.slane %v3855_v7, %v3842_v4  ;;  %v290_v14 = vrot.slane %v3855_v7, %v3844_v5  ;;  %v318_v15 = vrot.slane %v3858_v8, %v3840_v3  ;;  %v322_v16 = vrot.slane %v3858_v8, %v3842_v4  ;;  %v3911_v44 = vld [vmem:[%s3849_s7 + $0x15] sm:$0x7]  ;;  %v3924_v53 = vld [vmem:[%s3849_s7 + $0x12] sm:$0x7]  ;;  %v3936_v62 = vld [vmem:[%s3849_s7 + $0x1b] sm:$0x7] }
  0x35   : > { %v535_v18 = vsel %vm519_vm0, %v306_v9, 0.0  ;;  %v536_v19 = vsel %vm519_vm0, %v310_v10, 0.0  ;;  %v538_v20 = vsel %vm523_vm1, %v314_v11, 0.0  ;;  %v520_v21 = vsel %vm519_vm0, %v282_v12, 0.0 }
  0x36   : > { %v537_v22 = vadd.f32 %v536_v19, %v535_v18  ;;  %v521_v23 = vsel %vm519_vm0, %v286_v13, 0.0  ;;  %v524_v24 = vsel %vm523_vm1, %v290_v14, 0.0  ;;  %v326_v25 = vrot.slane %v3858_v8, %v3844_v5  ;;  %v3948_v13 = vld [vmem:[%s3849_s7 + $0x18] sm:$0x7] }
  0x37   : > { %v522_v27 = vadd.f32 %v521_v23, %v520_v21  ;;  %v542_v28 = vsel %vm519_vm0, %v318_v15, 0.0  ;;  %v543_v29 = vsel %vm519_vm0, %v322_v16, 0.0  ;;  %v294_v30 = vrot.slane %v3877_v17, %v3840_v3  ;;  %v3960_v23 = vld [vmem:[%s3849_s7 + $0x21] sm:$0x7] }
  0x38   : > { %v539_v31 = vadd.f32 %v538_v20, %v537_v22  ;;  %v544_v32 = vadd.f32 %v543_v29, %v542_v28  ;;  %v545_v33 = vsel %vm523_vm1, %v326_v25, 0.0  ;;  %v298_v34 = vrot.slane %v3877_v17, %v3842_v4 }
  0x39   : > { %v525_v36 = vadd.f32 %v524_v24, %v522_v27  ;;  %v302_v37 = vrot.slane %v3877_v17, %v3844_v5  ;;  %v528_v38 = vsel %vm519_vm0, %v294_v30, 0.0  ;;  %v342_v39 = vrot.slane %v3888_v26, %v3840_v3 }
  0x3a   : > { %540 = vadd.xlane.f32.xlu1 %v539_v31  ;;  %v546_v40 = vadd.f32 %v545_v33, %v544_v32  ;;  %v529_v41 = vsel %vm519_vm0, %v298_v34, 0.0  ;;  %v346_v42 = vrot.slane %v3888_v26, %v3842_v4  ;;  %v350_v43 = vrot.slane %v3888_v26, %v3844_v5  ;;  %v3972_v33 = vld [vmem:[%s3849_s7 + $0x1e] sm:$0x7] }
  0x3b   : > { %526 = vadd.xlane.f32.xlu0 %v525_v36  ;;  %v530_v45 = vadd.f32 %v529_v41, %v528_v38  ;;  %v531_v46 = vsel %vm523_vm1, %v302_v37, 0.0  ;;  %v556_v47 = vsel %vm519_vm0, %v342_v39, 0.0  ;;  %v330_v48 = vrot.slane %v3898_v35, %v3840_v3 }
  0x3c   : > { %v557_v49 = vsel %vm519_vm0, %v346_v42, 0.0  ;;  %v559_v50 = vsel %vm523_vm1, %v350_v43, 0.0  ;;  %v334_v51 = vrot.slane %v3898_v35, %v3842_v4  ;;  %v338_v52 = vrot.slane %v3898_v35, %v3844_v5  ;;  %v3984_v43 = vld [vmem:[%s3849_s7 + $0x27] sm:$0x7] }
  0x3d   : > { %v532_v54 = vadd.f32 %v531_v46, %v530_v45  ;;  %v558_v55 = vadd.f32 %v557_v49, %v556_v47  ;;  %v549_v56 = vsel %vm519_vm0, %v330_v48, 0.0  ;;  %v366_v57 = vrot.slane %v3911_v44, %v3840_v3 }
  0x3e   : > { %547 = vadd.xlane.f32.xlu1 %v546_v40  ;;  %v550_v58 = vsel %vm519_vm0, %v334_v51, 0.0  ;;  %v552_v59 = vsel %vm523_vm1, %v338_v52, 0.0  ;;  %v370_v60 = vrot.slane %v3911_v44, %v3842_v4  ;;  %v374_v61 = vrot.slane %v3911_v44, %v3844_v5 }
  0x3f   : > { %533 = vadd.xlane.f32.xlu0 %v532_v54  ;;  %v560_v63 = vadd.f32 %v559_v50, %v558_v55  ;;  %v551_v0 = vadd.f32 %v550_v58, %v549_v56  ;;  %v570_v1 = vsel %vm519_vm0, %v366_v57, 0.0  ;;  %v354_v2 = vrot.slane %v3924_v53, %v3840_v3  ;;  %v3996_v54 = vld [vmem:[%s3849_s7 + $0x24] sm:$0x7] }
  0x40   : > { %v571_v9 = vsel %vm519_vm0, %v370_v60, 0.0  ;;  %v573_v10 = vsel %vm523_vm1, %v374_v61, 0.0  ;;  %v358_v11 = vrot.slane %v3924_v53, %v3842_v4  ;;  %v362_v12 = vrot.slane %v3924_v53, %v3844_v5 }
  0x41   : > { %v553_v14 = vadd.f32 %v552_v59, %v551_v0  ;;  %v572_v15 = vadd.f32 %v571_v9, %v570_v1  ;;  %v563_v16 = vsel %vm519_vm0, %v354_v2, 0.0  ;;  %v390_v18 = vrot.slane %v3936_v62, %v3840_v3  ;;  %v4008_v0 = vld [vmem:[%s3849_s7 + $0x2d] sm:$0x7] }
  0x42   : > { %561 = vadd.xlane.f32.xlu1 %v560_v63  ;;  %v564_v19 = vsel %vm519_vm0, %v358_v11, 0.0  ;;  %v566_v20 = vsel %vm523_vm1, %v362_v12, 0.0  ;;  %v394_v21 = vrot.slane %v3936_v62, %v3842_v4  ;;  %v398_v22 = vrot.slane %v3936_v62, %v3844_v5 }
  0x43   : > { %554 = vadd.xlane.f32.xlu0 %v553_v14  ;;  %v574_v24 = vadd.f32 %v573_v10, %v572_v15  ;;  %v565_v25 = vadd.f32 %v564_v19, %v563_v16  ;;  %v584_v27 = vsel %vm519_vm0, %v390_v18, 0.0  ;;  %v378_v28 = vrot.slane %v3948_v13, %v3840_v3  ;;  %v4020_v16 = vld [vmem:[%s3849_s7 + $0x2a] sm:$0x7] }
  0x44   : > { %v585_v29 = vsel %vm519_vm0, %v394_v21, 0.0  ;;  %v587_v30 = vsel %vm523_vm1, %v398_v22, 0.0  ;;  %v382_v31 = vrot.slane %v3948_v13, %v3842_v4  ;;  %v386_v32 = vrot.slane %v3948_v13, %v3844_v5 }
  0x45   : > { %v567_v34 = vadd.f32 %v566_v20, %v565_v25  ;;  %v586_v36 = vadd.f32 %v585_v29, %v584_v27  ;;  %v577_v37 = vsel %vm519_vm0, %v378_v28, 0.0  ;;  %v414_v38 = vrot.slane %v3960_v23, %v3840_v3 }
  0x46   : > { %575 = vadd.xlane.f32.xlu1 %v574_v24  ;;  %v578_v39 = vsel %vm519_vm0, %v382_v31, 0.0  ;;  %v580_v40 = vsel %vm523_vm1, %v386_v32, 0.0  ;;  %v418_v41 = vrot.slane %v3960_v23, %v3842_v4  ;;  %v422_v42 = vrot.slane %v3960_v23, %v3844_v5 }
  0x47   : > { %568 = vadd.xlane.f32.xlu0 %v567_v34  ;;  %v588_v45 = vadd.f32 %v587_v30, %v586_v36  ;;  %v579_v46 = vadd.f32 %v578_v39, %v577_v37  ;;  %v598_v47 = vsel %vm519_vm0, %v414_v38, 0.0  ;;  %v402_v48 = vrot.slane %v3972_v33, %v3840_v3 }
  0x48   : > { %v599_v49 = vsel %vm519_vm0, %v418_v41, 0.0  ;;  %v601_v50 = vsel %vm523_vm1, %v422_v42, 0.0  ;;  %v406_v51 = vrot.slane %v3972_v33, %v3842_v4  ;;  %v410_v52 = vrot.slane %v3972_v33, %v3844_v5 }
  0x49   : > { %v581_v55 = vadd.f32 %v580_v40, %v579_v46  ;;  %v600_v56 = vadd.f32 %v599_v49, %v598_v47  ;;  %v591_v57 = vsel %vm519_vm0, %v402_v48, 0.0  ;;  %v438_v58 = vrot.slane %v3984_v43, %v3840_v3  ;;  %v4050_v48 = vld [vmem:[%s4047_s11 + $0x8] sm:$0xff]  ;;  %v4054_v49 = vld [vmem:[%s4047_s11 + $0x10] sm:$0xff] }
  0x4a   : > { %589 = vadd.xlane.f32.xlu1 %v588_v45  ;;  %v592_v59 = vsel %vm519_vm0, %v406_v51, 0.0  ;;  %v594_v60 = vsel %vm523_vm1, %v410_v52, 0.0  ;;  %v442_v61 = vrot.slane %v3984_v43, %v3842_v4  ;;  %v446_v63 = vrot.slane %v3984_v43, %v3844_v5  ;;  %5990 = vst [vmem:[#allocation5_spill] sm:$0xff] %v4050_v48  ;;  %5991 = vst [vmem:[#allocation6_spill] sm:$0xff] %v4054_v49  ;;  %v4061_v51 = vld [vmem:[%s4047_s11 + $0x18] sm:$0xff]  ;;  %v4065_v52 = vld [vmem:[%s4047_s11 + $0x48] sm:$0xff] }
  0x4b   : > { %582 = vadd.xlane.f32.xlu0 %v581_v55  ;;  %v602_v1 = vadd.f32 %v601_v50, %v600_v56  ;;  %v593_v2 = vadd.f32 %v592_v59, %v591_v57  ;;  %v612_v9 = vsel %vm519_vm0, %v438_v58, 0.0  ;;  %v426_v10 = vrot.slane %v3996_v54, %v3840_v3  ;;  %v4057_v50 = vld [vmem:[%s4047_s11] sm:$0xff]  ;;  %5992 = vst [vmem:[#allocation7_spill] sm:$0xff] %v4065_v52  ;;  %v4073_v56 = vld [vmem:[%s4047_s11 + $0x58] sm:$0xff]  ;;  %v4077_v57 = vld [vmem:[%s4047_s11 + $0x28] sm:$0xff] }
  0x4c   : > { %v613_v11 = vsel %vm519_vm0, %v442_v61, 0.0  ;;  %v615_v12 = vsel %vm523_vm1, %v446_v63, 0.0  ;;  %v430_v14 = vrot.slane %v3996_v54, %v3842_v4  ;;  %v434_v15 = vrot.slane %v3996_v54, %v3844_v5  ;;  %v4069_v55 = vld [vmem:[%s4047_s11 + $0x20] sm:$0xff]  ;;  %v4081_v58 = vld [vmem:[%s4047_s11 + $0x68] sm:$0xff]  ;;  %v4085_v59 = vld [vmem:[%s4047_s11 + $0x30] sm:$0xff] }
  0x4d   : > { %v595_v18 = vadd.f32 %v594_v60, %v593_v2  ;;  %v614_v19 = vadd.f32 %v613_v11, %v612_v9  ;;  %v605_v20 = vsel %vm519_vm0, %v426_v10, 0.0  ;;  %v462_v21 = vrot.slane %v4008_v0, %v3840_v3  ;;  %5993 = vst [vmem:[#allocation8_spill] sm:$0xff] %v4069_v55  ;;  %5994 = vst [vmem:[#allocation9_spill] sm:$0xff] %v4085_v59  ;;  %v4089_v60 = vld [vmem:[%s4047_s11 + $0x78] sm:$0xff]  ;;  %v4097_v63 = vld [vmem:[%s4047_s11 + $0x88] sm:$0xff] }
  0x4e   : > { %603 = vadd.xlane.f32.xlu1 %v602_v1  ;;  %v606_v22 = vsel %vm519_vm0, %v430_v14, 0.0  ;;  %v608_v24 = vsel %vm523_vm1, %v434_v15, 0.0  ;;  %v466_v25 = vrot.slane %v4008_v0, %v3842_v4  ;;  %v470_v27 = vrot.slane %v4008_v0, %v3844_v5  ;;  %v4093_v61 = vld [vmem:[%s4047_s11 + $0x38] sm:$0xff]  ;;  %v4101_v1 = vld [vmem:[%s4047_s11 + $0x40] sm:$0xff]  ;;  %v4109_v9 = vld [vmem:[%s4047_s11 + $0x50] sm:$0xff] }
  0x4f   : > { %596 = vadd.xlane.f32.xlu0 %v595_v18  ;;  %v616_v28 = vadd.f32 %v615_v12, %v614_v19  ;;  %v607_v29 = vadd.f32 %v606_v22, %v605_v20  ;;  %v626_v30 = vsel %vm519_vm0, %v462_v21, 0.0  ;;  %v450_v31 = vrot.slane %v4020_v16, %v3840_v3  ;;  %5995 = vst [vmem:[#allocation10_spill] sm:$0xff] %v4101_v1  ;;  %v4105_v2 = vld [vmem:[%s4047_s11 + $0x98] sm:$0xff]  ;;  %v4113_v10 = vld [vmem:[%s4047_s11 + $0xa8] sm:$0xff]  ;;  %v4117_v11 = vld [vmem:[%s4047_s11 + $0x60] sm:$0xff] }
  0x50   : > { %v627_v32 = vsel %vm519_vm0, %v466_v25, 0.0  ;;  %v629_v34 = vsel %vm523_vm1, %v470_v27, 0.0  ;;  %v454_v36 = vrot.slane %v4020_v16, %v3842_v4  ;;  %v458_v37 = vrot.slane %v4020_v16, %v3844_v5  ;;  %v4121_v12 = vld [vmem:[%s4047_s11 + $0xb8] sm:$0xff]  ;;  %v4125_v14 = vld [vmem:[%s4047_s11 + $0x70] sm:$0xff]  ;;  %v4129_v15 = vld [vmem:[%s4047_s11 + $0xc8] sm:$0xff] }
  0x51   : > { %v609_v38 = vadd.f32 %v608_v24, %v607_v29  ;;  %v628_v39 = vadd.f32 %v627_v32, %v626_v30  ;;  %v619_v40 = vsel %vm519_vm0, %v450_v31, 0.0  ;;  %v4133_v18 = vld [vmem:[%s4047_s11 + $0x80] sm:$0xff]  ;;  %v4137_v19 = vld [vmem:[%s4047_s11 + $0xd8] sm:$0xff]  ;;  %v4141_v20 = vld [vmem:[%s4047_s11 + $0x90] sm:$0xff] }
  0x52   : > { %617 = vadd.xlane.f32.xlu1 %v616_v28  ;;  %v620_v41 = vsel %vm519_vm0, %v454_v36, 0.0  ;;  %v622_v42 = vsel %vm523_vm1, %v458_v37, 0.0  ;;  %v4145_v21 = vld [vmem:[%s4047_s11 + $0xe8] sm:$0xff]  ;;  %v4149_v22 = vld [vmem:[%s4047_s11 + $0xa0] sm:$0xff]  ;;  %v4153_v24 = vld [vmem:[%s4047_s11 + $0xf8] sm:$0xff]  ;;  %v3765_v28 = vmov 1  }
  0x53   : > { %610 = vadd.xlane.f32.xlu0 %v609_v38  ;;  %v630_v45 = vadd.f32 %v629_v34, %v628_v39  ;;  %v621_v46 = vadd.f32 %v620_v41, %v619_v40  ;;  %v4157_v25 = vld [vmem:[%s4047_s11 + $0xb0] sm:$0xff]  ;;  %v4162_v27 = vld [vmem:[%s4047_s11 + $0xc0] sm:$0xff] }
  0x54   : > { %v4167_v29 = vld [vmem:[%s4047_s11 + $0xd0] sm:$0xff]  ;;  %v4172_v30 = vld [vmem:[%s4047_s11 + $0xe0] sm:$0xff] }
  0x55   : > { %v623_v47 = vadd.f32 %v622_v42, %v621_v46  ;;  %v4177_v31 = vld [vmem:[%s4047_s11 + $0xf0] sm:$0xff] }
  0x56   : > { %631 = vadd.xlane.f32.xlu1 %v630_v45 }
  0x57   : > { %624 = vadd.xlane.f32.xlu0 %v623_v47 }
  0x67   : > { %1328 = vperm.xlu1 %3302, %v4050_v48  }
  0x6b   : > { %1333 = vperm.xlu1 %3302, %v4054_v49  }
  0x6d   : > { %1323 = vperm.xlu0 %3301, %v4057_v50  }
  0x6f   : > { %1338 = vperm.xlu1 %3302, %v4061_v51  }
  0x71   : > { %1368 = vperm.xlu0 %3301, %v4065_v52  }
  0x73   : > { %1343 = vperm.xlu1 %3302, %v4069_v55  }
  0x75   : > { %1378 = vperm.xlu0 %3301, %v4073_v56  }
  0x77   : > { %1348 = vperm.xlu1 %3302, %v4077_v57  }
  0x79   : > { %1388 = vperm.xlu0 %3301, %v4081_v58  }
  0x7b   : > { %1353 = vperm.xlu1 %3302, %v4085_v59  }
  0x7d   : > { %1398 = vperm.xlu0 %3301, %v4089_v60  }
  0x7f   : > { %1358 = vperm.xlu1 %3302, %v4093_v61  }
  0x81   : > { %1408 = vperm.xlu0 %3301, %v4097_v63  }
  0x83   : > { %1363 = vperm.xlu1 %3302, %v4101_v1  }
  0x85   : > { %1418 = vperm.xlu0 %3301, %v4105_v2  }
  0x87   : > { %1373 = vperm.xlu1 %3302, %v4109_v9  }
  0x89   : > { %1428 = vperm.xlu0 %3301, %v4113_v10  }
  0x8b   : > { %1383 = vperm.xlu1 %3302, %v4117_v11  }
  0x8d   : > { %1438 = vperm.xlu0 %3301, %v4121_v12  }
  0x8f   : > { %1393 = vperm.xlu1 %3302, %v4125_v14  }
  0x91   : > { %1448 = vperm.xlu0 %3301, %v4129_v15  }
  0x93   : > { %1403 = vperm.xlu1 %3302, %v4133_v18  }
  0x95   : > { %1458 = vperm.xlu0 %3301, %v4137_v19  }
  0x97   : > { %1413 = vperm.xlu1 %3302, %v4141_v20  }
  0x99   : > { %1468 = vperm.xlu0 %3301, %v4145_v21  }
  0x9b   : > { %1423 = vperm.xlu1 %3302, %v4149_v22  }
  0x9d   : > { %1478 = vperm.xlu0 %3301, %v4153_v24  }
  0x9f   : > { %1433 = vperm.xlu1 %3302, %v4157_v25  }
  0xa1   : > { %3304 = vset.pattern.permute.xlu0 %v3765_v28 }
  0xa2   : > { %1838 = vperm.xlu0 %3304, %v4050_v48  }
  0xa3   : > { %1443 = vperm.xlu1 %3302, %v4162_v27  }
  0xa6   : > { %1850 = vperm.xlu0 %3304, %v4069_v55  }
  0xa7   : > { %1453 = vperm.xlu1 %3302, %v4167_v29  }
  0xaa   : > { %1858 = vperm.xlu0 %3304, %v4085_v59  }
  0xab   : > { %1463 = vperm.xlu1 %3302, %v4172_v30  }
  0xae   : > { %1866 = vperm.xlu0 %3304, %v4101_v1  }
  0xaf   : > { %1473 = vperm.xlu1 %3302, %v4177_v31  }
  0xb3   : > { %3303 = vset.pattern.permute.xlu1 %v3765_v28  ;;  %v4195_v28 = vld [vmem:[#allocation2] sm:$0x7] }
  0xb4   : > { %1834 = vperm.xlu1 %3303, %v4057_v50  }
  0xb8   : > { %1842 = vperm.xlu1 %3303, %v4054_v49  }
  0xbc   : > { %1846 = vperm.xlu1 %3303, %v4061_v51  }
  0xc0   : > { %1854 = vperm.xlu1 %3303, %v4077_v57  }
  0xc4   : > { %1862 = vperm.xlu1 %3303, %v4093_v61  }
  0xc7   : > { %v541_v32 = vpop.xlane.xlu1 %540 }
  0xc8   : > { %v635_v34 = vmul.f32 0.00390625, %v541_v32  ;;  %v527_v36 = vpop.xlane.xlu0 %526  ;;  %1870 = vperm.xlu1 %3303, %v4065_v52  }
  0xc9   : > { %v633_v37 = vmul.f32 0.00390625, %v527_v36 }
  0xca   : > { %v676_v38 = vrot.slane %v635_v34, %v3840_v3 }
  0xcb   : > { %v668_v39 = vrot.slane %v633_v37, %v3840_v3  ;;  %v548_v40 = vpop.xlane.xlu1 %547 }
  0xcc   : > { %v4190_v41 = vsub.f32 %v3852_v6, %v676_v38  ;;  %v636_v42 = vmul.f32 0.00390625, %v548_v40  ;;  %v534_v45 = vpop.xlane.xlu0 %533 }
  0xcd   : > { %v4193_v46 = vsub.f32 %v3855_v7, %v668_v39  ;;  %v634_v47 = vmul.f32 0.00390625, %v534_v45 }
  0xce   : > { %5996 = vst [vmem:[#allocation11_spill] sm:$0xff] %v4190_v41  ;;  %v763_v32 = vmul.f32 %v4190_v41, %v4190_v41  ;;  %v680_v36 = vrot.slane %v636_v42, %v3840_v3 }
  0xcf   : > { %5997 = vst [vmem:[#allocation12_spill] sm:$0xff] %v4193_v46  ;;  %v761_v34 = vmul.f32 %v4193_v46, %v4193_v46  ;;  %v672_v37 = vrot.slane %v634_v47, %v3840_v3  ;;  %v562_v6 = vpop.xlane.xlu1 %561 }
  0xd0   : > { %v4204_v38 = vsub.f32 %v3858_v8, %v680_v36  ;;  %v638_v40 = vmul.f32 0.00390625, %v562_v6  ;;  %v555_v7 = vpop.xlane.xlu0 %554  ;;  %v779_v39 = vmul.f32 %v763_v32, %v4195_v28 }
  0xd1   : > { %v4208_v45 = vsub.f32 %v3877_v17, %v672_v37  ;;  %v637_v1 = vmul.f32 0.00390625, %v555_v7  ;;  %v777_v41 = vmul.f32 %v761_v34, %v4195_v28 }
  0xd2   : > { %5998 = vst [vmem:[#allocation13_spill] sm:$0xff] %v4204_v38  ;;  %v4213_v42 = vmul.f32 %v4204_v38, %v4204_v38  ;;  %v688_v47 = vrot.slane %v638_v40, %v3840_v3  ;;  %v836_v46 = vrot.slane %v779_v39, %v3840_v3  ;;  %v840_v17 = vrot.slane %v779_v39, %v3842_v4 }
  0xd3   : > { %5999 = vst [vmem:[#allocation14_spill] sm:$0xff] %v4208_v45  ;;  %v684_v8 = vrot.slane %v637_v1, %v3840_v3  ;;  %v576_v36 = vpop.xlane.xlu1 %575  ;;  %v812_v6 = vrot.slane %v777_v41, %v3840_v3  ;;  %v816_v32 = vrot.slane %v777_v41, %v3842_v4  ;;  %v762_v34 = vmul.f32 %v4208_v45, %v4208_v45 }
  0xd4   : > { %v4224_v37 = vsub.f32 %v3888_v26, %v688_v47  ;;  %v640_v7 = vmul.f32 0.00390625, %v576_v36  ;;  %v569_v38 = vpop.xlane.xlu0 %568  ;;  %v820_v40 = vrot.slane %v777_v41, %v3844_v5  ;;  %v844_v26 = vrot.slane %v779_v39, %v3844_v5 }
  0xd5   : > { %v4228_v59 = vsub.f32 %v3898_v35, %v684_v8  ;;  %v639_v1 = vmul.f32 0.00390625, %v569_v38  ;;  %v1049_v55 = vsel %vm519_vm0, %v812_v6, 0.0  ;;  %v1050_v49 = vsel %vm519_vm0, %v816_v32, 0.0 }
  0xd6   : > { %6000 = vst [vmem:[#allocation15_spill] sm:$0xff] %v4224_v37  ;;  %v696_v52 = vrot.slane %v640_v7, %v3840_v3  ;;  %v1051_v48 = vadd.f32 %v1050_v49, %v1049_v55  ;;  %v1052_v45 = vsel %vm523_vm1, %v820_v40, 0.0  ;;  %v1063_v35 = vsel %vm519_vm0, %v836_v46, 0.0 }
  0xd7   : > { %v765_v47 = vmul.f32 %v4228_v59, %v4228_v59  ;;  %v692_v41 = vrot.slane %v639_v1, %v3840_v3  ;;  %v590_v36 = vpop.xlane.xlu1 %589  ;;  %v1064_v38 = vsel %vm519_vm0, %v840_v17, 0.0  ;;  %v4245_v39 = vmul.f32 %v4224_v37, %v4224_v37 }
  0xd8   : > { %v4241_v8 = vsub.f32 %v3911_v44, %v696_v52  ;;  %v642_v6 = vmul.f32 0.00390625, %v590_v36  ;;  %v583_v32 = vpop.xlane.xlu0 %582  ;;  %v1053_v49 = vadd.f32 %v1052_v45, %v1051_v48  ;;  %v1065_v55 = vadd.f32 %v1064_v38, %v1063_v35 }
  0xd9   : > { %v4248_v7 = vsub.f32 %v3924_v53, %v692_v41  ;;  %v641_v40 = vmul.f32 0.00390625, %v583_v32  ;;  %v781_v1 = vmul.f32 %v765_v47, %v4195_v28  ;;  %v1066_v48 = vsel %vm523_vm1, %v844_v26, 0.0 }
  0xda   : > { %6001 = vst [vmem:[#allocation16_spill] sm:$0xff] %v4241_v8  ;;  %v4253_v46 = vmul.f32 %v4241_v8, %v4241_v8  ;;  %v704_v44 = vrot.slane %v642_v6, %v3840_v3  ;;  %1054 = vadd.xlane.f32.xlu0 %v1053_v49  ;;  %v4258_v52 = vmul.f32 %v762_v34, %v4195_v28 }
  0xdb   : > { %v767_v45 = vmul.f32 %v4248_v7, %v4248_v7  ;;  %v700_v53 = vrot.slane %v641_v40, %v3840_v3  ;;  %v604_v17 = vpop.xlane.xlu1 %603  ;;  %v860_v47 = vrot.slane %v781_v1, %v3840_v3  ;;  %v864_v41 = vrot.slane %v781_v1, %v3842_v4 }
  0xdc   : > { %v4266_v36 = vsub.f32 %v3936_v62, %v704_v44  ;;  %v644_v35 = vmul.f32 0.00390625, %v604_v17  ;;  %v597_v38 = vpop.xlane.xlu0 %596  ;;  %v1067_v6 = vadd.f32 %v1066_v48, %v1065_v55  ;;  %v868_v26 = vrot.slane %v781_v1, %v3844_v5 }
  0xdd   : > { %v4270_v34 = vsub.f32 %v3948_v13, %v700_v53  ;;  %v643_v32 = vmul.f32 0.00390625, %v597_v38  ;;  %v1077_v49 = vsel %vm519_vm0, %v860_v47, 0.0  ;;  %v1078_v40 = vsel %vm519_vm0, %v864_v41, 0.0 }
  0xde   : > { %6002 = vst [vmem:[#allocation17_spill] sm:$0xff] %v4266_v36  ;;  %v712_v8 = vrot.slane %v644_v35, %v3840_v3  ;;  %1068 = vadd.xlane.f32.xlu0 %v1067_v6  ;;  %v1079_v37 = vadd.f32 %v1078_v40, %v1077_v49  ;;  %v1080_v62 = vsel %vm523_vm1, %v868_v26, 0.0  ;;  %v824_v44 = vrot.slane %v4258_v52, %v3840_v3 }
  0xdf   : > { %v4280_v55 = vmul.f32 %v4266_v36, %v4266_v36  ;;  %v769_v13 = vmul.f32 %v4270_v34, %v4270_v34  ;;  %v708_v1 = vrot.slane %v643_v32, %v3840_v3  ;;  %v618_v48 = vpop.xlane.xlu1 %617  ;;  %v783_v53 = vmul.f32 %v767_v45, %v4195_v28 }
  0xe0   : > { %v4287_v17 = vsub.f32 %v3960_v23, %v712_v8  ;;  %v646_v47 = vmul.f32 0.00390625, %v618_v48  ;;  %v611_v41 = vpop.xlane.xlu0 %610  ;;  %v1081_v35 = vadd.f32 %v1080_v62, %v1079_v37  ;;  %v828_v38 = vrot.slane %v4258_v52, %v3842_v4 }
  0xe1   : > { %v4292_v6 = vsub.f32 %v3972_v33, %v708_v1  ;;  %v645_v26 = vmul.f32 0.00390625, %v611_v41  ;;  %v884_v49 = vrot.slane %v783_v53, %v3840_v3  ;;  %v888_v32 = vrot.slane %v783_v53, %v3842_v4 }
  0xe2   : > { %6003 = vst [vmem:[#allocation18_spill] sm:$0xff] %v4287_v17  ;;  %v720_v40 = vrot.slane %v646_v47, %v3840_v3  ;;  %1082 = vadd.xlane.f32.xlu0 %v1081_v35  ;;  %v892_v23 = vrot.slane %v783_v53, %v3844_v5  ;;  %v785_v8 = vmul.f32 %v769_v13, %v4195_v28 }
  0xe3   : > { %6004 = vst [vmem:[#allocation19_spill] sm:$0xff] %v4292_v6  ;;  %v832_v37 = vrot.slane %v4258_v52, %v3844_v5  ;;  %v771_v45 = vmul.f32 %v4292_v6, %v4292_v6  ;;  %v716_v33 = vrot.slane %v645_v26, %v3840_v3  ;;  %v632_v62 = vpop.xlane.xlu1 %631  ;;  %v1091_v1 = vsel %vm519_vm0, %v884_v49, 0.0 }
  0xe4   : > { %v1092_v48 = vsel %vm519_vm0, %v888_v32, 0.0  ;;  %v4307_v47 = vsub.f32 %v3984_v43, %v720_v40  ;;  %v648_v41 = vmul.f32 0.00390625, %v632_v62  ;;  %v625_v53 = vpop.xlane.xlu0 %624  ;;  %v1094_v13 = vsel %vm523_vm1, %v892_v23, 0.0 }
  0xe5   : > { %v1093_v35 = vadd.f32 %v1092_v48, %v1091_v1  ;;  %v4311_v52 = vsub.f32 %v3996_v54, %v716_v33  ;;  %v647_v36 = vmul.f32 0.00390625, %v625_v53  ;;  %v908_v6 = vrot.slane %v785_v8, %v3840_v3 }
  0xe6   : > { %6005 = vst [vmem:[#allocation20_spill] sm:$0xff] %v4307_v47  ;;  %v912_v26 = vrot.slane %v785_v8, %v3842_v4  ;;  %v4317_v49 = vmul.f32 %v4287_v17, %v4287_v17  ;;  %v728_v43 = vrot.slane %v648_v41, %v3840_v3  ;;  %v916_v40 = vrot.slane %v785_v8, %v3844_v5 }
  0xe7   : > { %v1095_v32 = vadd.f32 %v1094_v13, %v1093_v35  ;;  %v4323_v23 = vmul.f32 %v4307_v47, %v4307_v47  ;;  %v724_v54 = vrot.slane %v647_v36, %v3840_v3  ;;  %v4326_v33 = vpop.permute.xlu1 %1328  ;;  %v1105_v62 = vsel %vm519_vm0, %v908_v6, 0.0 }
  0xe8   : > { %v1106_v1 = vsel %vm519_vm0, %v912_v26, 0.0  ;;  %v773_v48 = vmul.f32 %v4311_v52, %v4311_v52  ;;  %v1108_v53 = vsel %vm523_vm1, %v916_v40, 0.0  ;;  %v1056_v8 = vsel %vm519_vm0, %v824_v44, 0.0 }
  0xe9   : > { %1096 = vadd.xlane.f32.xlu0 %v1095_v32  ;;  %v1107_v41 = vadd.f32 %v1106_v1, %v1105_v62  ;;  %v4335_v35 = vsub.f32 %v4020_v16, %v724_v54  ;;  %v1057_v36 = vsel %vm519_vm0, %v828_v38, 0.0  ;;  %v1059_v13 = vsel %vm523_vm1, %v832_v37, 0.0 }
  0xea   : > { %v787_v6 = vmul.f32 %v771_v45, %v4195_v28  ;;  %v4341_v26 = vsub.f32 %v4008_v0, %v728_v43  ;;  %v1058_v17 = vadd.f32 %v1057_v36, %v1056_v8  ;;  %v780_v32 = vmul.f32 %v4213_v42, %v4195_v28 }
  0xeb   : > { %v1109_v47 = vadd.f32 %v1108_v53, %v1107_v41  ;;  %v775_v44 = vmul.f32 %v4335_v35, %v4335_v35  ;;  %v4353_v54 = vpop.permute.xlu1 %1333  ;;  %v789_v41 = vmul.f32 %v773_v48, %v4195_v28 }
  0xec   : > { %6006 = vst [vmem:[#allocation21_spill] sm:$0xff] %v4341_v26  ;;  %v932_v16 = vrot.slane %v787_v6, %v3840_v3  ;;  %v936_v40 = vrot.slane %v787_v6, %v3842_v4  ;;  %v940_v38 = vrot.slane %v787_v6, %v3844_v5  ;;  %v1060_v37 = vadd.f32 %v1059_v13, %v1058_v17 }
  0xed   : > { %1110 = vadd.xlane.f32.xlu0 %v1109_v47  ;;  %v848_v45 = vrot.slane %v780_v32, %v3840_v3  ;;  %v852_v0 = vrot.slane %v780_v32, %v3842_v4  ;;  %v856_v43 = vrot.slane %v780_v32, %v3844_v5  ;;  %6007 = vst [vmem:[#allocation22_spill] sm:$0xff] %v4353_v54 }
  0xee   : > { %v1119_v42 = vsel %vm519_vm0, %v932_v16, 0.0  ;;  %v1120_v62 = vsel %vm519_vm0, %v936_v40, 0.0  ;;  %v1122_v1 = vsel %vm523_vm1, %v940_v38, 0.0  ;;  %1061 = vadd.xlane.f32.xlu1 %v1060_v37  ;;  %v956_v13 = vrot.slane %v789_v41, %v3840_v3 }
  0xef   : > { %v1121_v53 = vadd.f32 %v1120_v62, %v1119_v42  ;;  %v1070_v17 = vsel %vm519_vm0, %v848_v45, 0.0  ;;  %v1071_v47 = vsel %vm519_vm0, %v852_v0, 0.0  ;;  %v1073_v8 = vsel %vm523_vm1, %v856_v43, 0.0 }
  0xf0   : > { %v1072_v36 = vadd.f32 %v1071_v47, %v1070_v17  ;;  %v960_v6 = vrot.slane %v789_v41, %v3842_v4  ;;  %v964_v32 = vrot.slane %v789_v41, %v3844_v5  ;;  %v782_v40 = vmul.f32 %v4245_v39, %v4195_v28  ;;  %v4376_v41 = vpop.permute.xlu1 %1338 }
  0xf1   : > { %v1123_v16 = vadd.f32 %v1122_v1, %v1121_v53  ;;  %v791_v48 = vmul.f32 %v775_v44, %v4195_v28  ;;  %v784_v38 = vmul.f32 %v4253_v46, %v4195_v28  ;;  %v1133_v45 = vsel %vm519_vm0, %v956_v13, 0.0  ;;  %6008 = vst [vmem:[#allocation23_spill] sm:$0xff] %v4376_v41 }
  0xf2   : > { %v1074_v37 = vadd.f32 %v1073_v8, %v1072_v36  ;;  %v1134_v0 = vsel %vm519_vm0, %v960_v6, 0.0  ;;  %v1136_v43 = vsel %vm523_vm1, %v964_v32, 0.0  ;;  %v872_v62 = vrot.slane %v782_v40, %v3840_v3 }
  0xf3   : > { %1124 = vadd.xlane.f32.xlu0 %v1123_v16  ;;  %v1135_v42 = vadd.f32 %v1134_v0, %v1133_v45  ;;  %v876_v1 = vrot.slane %v782_v40, %v3842_v4  ;;  %v880_v39 = vrot.slane %v782_v40, %v3844_v5  ;;  %v980_v46 = vrot.slane %v791_v48, %v3840_v3 }
  0xf4   : > { %1075 = vadd.xlane.f32.xlu1 %v1074_v37  ;;  %v984_v44 = vrot.slane %v791_v48, %v3842_v4  ;;  %v988_v53 = vrot.slane %v791_v48, %v3844_v5  ;;  %v896_v17 = vrot.slane %v784_v38, %v3840_v3  ;;  %v1084_v8 = vsel %vm519_vm0, %v872_v62, 0.0 }
  0xf5   : > { %v1137_v47 = vadd.f32 %v1136_v43, %v1135_v42  ;;  %v1085_v36 = vsel %vm519_vm0, %v876_v1, 0.0  ;;  %v1087_v13 = vsel %vm523_vm1, %v880_v39, 0.0  ;;  %v1147_v32 = vsel %vm519_vm0, %v980_v46, 0.0 }
  0xf6   : > { %v1086_v6 = vadd.f32 %v1085_v36, %v1084_v8  ;;  %v1148_v16 = vsel %vm519_vm0, %v984_v44, 0.0  ;;  %v1150_v40 = vsel %vm523_vm1, %v988_v53, 0.0  ;;  %v900_v48 = vrot.slane %v784_v38, %v3842_v4  ;;  %v4400_v53 = vpop.permute.xlu1 %1343 }
  0xf7   : > { %1138 = vadd.xlane.f32.xlu0 %v1137_v47  ;;  %v1149_v37 = vadd.f32 %v1148_v16, %v1147_v32  ;;  %v904_v45 = vrot.slane %v784_v38, %v3844_v5  ;;  %v1098_v0 = vsel %vm519_vm0, %v896_v17, 0.0  ;;  %v776_v43 = vmul.f32 %v4341_v26, %v4341_v26  ;;  %6009 = vst [vmem:[#allocation24_spill] sm:$0xff] %v4400_v53 }
  0xf8   : > { %v1088_v42 = vadd.f32 %v1087_v13, %v1086_v6  ;;  %v786_v62 = vmul.f32 %v4280_v55, %v4195_v28  ;;  %v788_v1 = vmul.f32 %v4317_v49, %v4195_v28  ;;  %v1099_v46 = vsel %vm519_vm0, %v900_v48, 0.0 }
  0xf9   : > { %v1151_v39 = vadd.f32 %v1150_v40, %v1149_v37  ;;  %v790_v44 = vmul.f32 %v4323_v23, %v4195_v28  ;;  %v1100_v38 = vadd.f32 %v1099_v46, %v1098_v0  ;;  %v1101_v55 = vsel %vm523_vm1, %v904_v45, 0.0 }
  0xfa   : > { %1089 = vadd.xlane.f32.xlu1 %v1088_v42  ;;  %v920_v17 = vrot.slane %v786_v62, %v3840_v3  ;;  %v924_v47 = vrot.slane %v786_v62, %v3842_v4  ;;  %v928_v8 = vrot.slane %v786_v62, %v3844_v5  ;;  %v944_v49 = vrot.slane %v788_v1, %v3840_v3  ;;  %v4417_v62 = vpop.permute.xlu1 %1348 }
  0xfb   : > { %1152 = vadd.xlane.f32.xlu0 %v1151_v39  ;;  %v948_v36 = vrot.slane %v788_v1, %v3842_v4  ;;  %v1102_v13 = vadd.f32 %v1101_v55, %v1100_v38  ;;  %v792_v32 = vmul.f32 %v776_v43, %v4195_v28  ;;  %v968_v48 = vrot.slane %v790_v44, %v3840_v3 }
  0xfc   : > { %v1112_v23 = vsel %vm519_vm0, %v920_v17, 0.0  ;;  %v1113_v6 = vsel %vm519_vm0, %v924_v47, 0.0  ;;  %v1126_v40 = vsel %vm519_vm0, %v944_v49, 0.0  ;;  %v972_v45 = vrot.slane %v790_v44, %v3842_v4 }
  0xfd   : > { %v1114_v16 = vadd.f32 %v1113_v6, %v1112_v23  ;;  %v1127_v37 = vsel %vm519_vm0, %v948_v36, 0.0  ;;  %v1115_v0 = vsel %vm523_vm1, %v928_v8, 0.0  ;;  %v952_v42 = vrot.slane %v788_v1, %v3844_v5  ;;  %v4427_v23 = vpop.permute.xlu0 %1323 }
  0xfe   : > { %1103 = vadd.xlane.f32.xlu1 %v1102_v13  ;;  %v1128_v46 = vadd.f32 %v1127_v37, %v1126_v40  ;;  %v1140_v43 = vsel %vm519_vm0, %v968_v48, 0.0  ;;  %v1141_v38 = vsel %vm519_vm0, %v972_v45, 0.0  ;;  %v992_v17 = vrot.slane %v792_v32, %v3840_v3  ;;  %v4429_v6 = vpop.permute.xlu1 %1353 }
  0xff   : > { %v1116_v39 = vadd.f32 %v1115_v0, %v1114_v16  ;;  %v996_v47 = vrot.slane %v792_v32, %v3842_v4  ;;  %v1129_v55 = vsel %vm523_vm1, %v952_v42, 0.0  ;;  %v976_v49 = vrot.slane %v790_v44, %v3844_v5  ;;  %6010 = vst [vmem:[#allocation25_spill] sm:$0xff] %v4429_v6 }
 0x100   : > { %v1130_v8 = vadd.f32 %v1129_v55, %v1128_v46  ;;  %v1142_v36 = vadd.f32 %v1141_v38, %v1140_v43  ;;  %v1154_v1 = vsel %vm519_vm0, %v992_v17, 0.0  ;;  %v1000_v40 = vrot.slane %v792_v32, %v3844_v5 }
 0x101   : > { %v1155_v13 = vsel %vm519_vm0, %v996_v47, 0.0  ;;  %v1143_v16 = vsel %vm523_vm1, %v976_v49, 0.0  ;;  %v4434_v45 = vpop.permute.xlu0 %1368 }
 0x102   : > { %1117 = vadd.xlane.f32.xlu1 %v1116_v39  ;;  %v1144_v37 = vadd.f32 %v1143_v16, %v1142_v36  ;;  %v1156_v48 = vadd.f32 %v1155_v13, %v1154_v1  ;;  %v1157_v44 = vsel %vm523_vm1, %v1000_v40, 0.0  ;;  %6011 = vst [vmem:[#allocation26_spill] sm:$0xff] %v4434_v45  ;;  %v4436_v0 = vpop.permute.xlu1 %1358  ;;  %v6020_v45 = vld [vmem:[#allocation6_spill] sm:$0xff] }
 0x103   : > { %6012 = vst [vmem:[#allocation27_spill] sm:$0xff] %v4436_v0 }
 0x104   : > { %v1158_v42 = vadd.f32 %v1157_v44, %v1156_v48  ;;  %v3766_v48 = vmov 2  }
 0x105   : > { %v4439_v39 = vpop.permute.xlu0 %1378 }
 0x106   : > { %1131 = vadd.xlane.f32.xlu1 %v1130_v8  ;;  %v4441_v46 = vpop.permute.xlu1 %1363 }
 0x107   : > { %6013 = vst [vmem:[#allocation28_spill] sm:$0xff] %v4441_v46 }
 0x109   : > { %v4444_v32 = vpop.permute.xlu0 %1388 }
 0x10a   : > { %1145 = vadd.xlane.f32.xlu1 %v1144_v37  ;;  %v4446_v43 = vpop.permute.xlu1 %1373 }
 0x10d   : > { %v4450_v38 = vpop.permute.xlu0 %1398 }
 0x10e   : > { %1159 = vadd.xlane.f32.xlu1 %v1158_v42  ;;  %v4452_v17 = vpop.permute.xlu1 %1383 }
 0x111   : > { %1874 = vperm.xlu0 %3304, %v4109_v9   ;;  %v4457_v47 = vpop.permute.xlu0 %1408 }
 0x112   : > { %v4459_v55 = vpop.permute.xlu1 %1393 }
 0x115   : > { %1882 = vperm.xlu0 %3304, %v4117_v11   ;;  %v4464_v49 = vpop.permute.xlu0 %1418 }
 0x116   : > { %v4466_v8 = vpop.permute.xlu1 %1403 }
 0x119   : > { %1890 = vperm.xlu0 %3304, %v4125_v14   ;;  %v4471_v36 = vpop.permute.xlu0 %1428 }
 0x11a   : > { %v4473_v1 = vpop.permute.xlu1 %1413 }
 0x11d   : > { %1898 = vperm.xlu0 %3304, %v4133_v18   ;;  %v4478_v13 = vpop.permute.xlu0 %1438 }
 0x11e   : > { %v4480_v16 = vpop.permute.xlu1 %1423 }
 0x11f   : > { %1878 = vperm.xlu1 %3303, %v4073_v56  }
 0x121   : > { %1906 = vperm.xlu0 %3304, %v4141_v20   ;;  %v4485_v40 = vpop.permute.xlu0 %1448 }
 0x122   : > { %6014 = vst [vmem:[#allocation29_spill] sm:$0xff] %v4485_v40  ;;  %v4487_v37 = vpop.permute.xlu1 %1433  ;;  %v6070_v40 = vld [vmem:[#allocation17_spill] sm:$0xff] }
 0x123   : > { %1886 = vperm.xlu1 %3303, %v4081_v58  }
 0x125   : > { %1914 = vperm.xlu0 %3304, %v4149_v22   ;;  %v4491_v44 = vpop.permute.xlu0 %1458 }
 0x126   : > { %6015 = vst [vmem:[#allocation30_spill] sm:$0xff] %v4491_v44  ;;  %v4493_v42 = vpop.permute.xlu1 %1443  ;;  %v6064_v44 = vld [vmem:[#allocation16_spill] sm:$0xff] }
 0x127   : > { %1894 = vperm.xlu1 %3303, %v4089_v60  }
 0x129   : > { %1922 = vperm.xlu0 %3304, %v4157_v25   ;;  %v4499_v46 = vpop.permute.xlu0 %1468 }
 0x12a   : > { %6016 = vst [vmem:[#allocation31_spill] sm:$0xff] %v4499_v46  ;;  %v4501_v6 = vpop.permute.xlu1 %1453  ;;  %v6022_v46 = vld [vmem:[#allocation8_spill] sm:$0xff] }
 0x12b   : > { %1902 = vperm.xlu1 %3303, %v4097_v63  }
 0x12d   : > { %1930 = vperm.xlu0 %3304, %v4162_v27   ;;  %v4505_v53 = vpop.permute.xlu0 %1478 }
 0x12e   : > { %v4507_v54 = vpop.permute.xlu1 %1463 }
 0x12f   : > { %1910 = vperm.xlu1 %3303, %v4105_v2  }
 0x131   : > { %1938 = vperm.xlu0 %3304, %v4167_v29  }
 0x132   : > { %v4514_v0 = vpop.permute.xlu1 %1473 }
 0x133   : > { %1918 = vperm.xlu1 %3303, %v4113_v10  }
 0x135   : > { %1946 = vperm.xlu0 %3304, %v4172_v30  }
 0x137   : > { %1926 = vperm.xlu1 %3303, %v4121_v12  }
 0x139   : > { %1954 = vperm.xlu0 %3304, %v4177_v31  }
 0x13b   : > { %1934 = vperm.xlu1 %3303, %v4129_v15  }
 0x13d   : > { %3305 = vset.pattern.permute.xlu0 %v3766_v48 }
 0x13e   : > { %2187 = vperm.xlu0 %3305, %v4057_v50   ;;  %v6017_v50 = vld [vmem:[#allocation5_spill] sm:$0xff] }
 0x13f   : > { %1942 = vperm.xlu1 %3303, %v4137_v19   ;;  %6018 = vst [vmem:[#allocation5_spill] sm:$0xff] %v4505_v53 }
 0x142   : > { %2199 = vperm.xlu0 %3305, %v4061_v51   ;;  %v6019_v51 = vld [vmem:[#allocation7_spill] sm:$0xff] }
 0x143   : > { %1950 = vperm.xlu1 %3303, %v4145_v21   ;;  %6021 = vst [vmem:[#allocation7_spill] sm:$0xff] %v4514_v0 }
 0x146   : > { %2207 = vperm.xlu0 %3305, %v4077_v57   ;;  %v4511_v57 = vpop.permute.xlu0 %1838 }
 0x147   : > { %1958 = vperm.xlu1 %3303, %v4153_v24  }
 0x14a   : > { %2215 = vperm.xlu0 %3305, %v4093_v61   ;;  %v4518_v61 = vpop.permute.xlu0 %1850 }
 0x14b   : > { %3306 = vset.pattern.permute.xlu1 %v3766_v48  ;;  %6023 = vst [vmem:[#allocation6_spill] sm:$0xff] %v4518_v61  ;;  %v6024_v48 = vld [vmem:[#allocation9_spill] sm:$0xff] }
 0x14c   : > { %2191 = vperm.xlu1 %3306, %v6017_v50   ;;  %v4521_v50 = vpop.permute.xlu1 %1834 }
 0x14e   : > { %2223 = vperm.xlu0 %3305, %v6019_v51   ;;  %v6025_v51 = vld [vmem:[#allocation10_spill] sm:$0xff] }
 0x150   : > { %2195 = vperm.xlu1 %3306, %v6020_v45   ;;  %v4525_v45 = vpop.permute.xlu0 %1858 }
 0x151   : > { %6026 = vst [vmem:[#allocation8_spill] sm:$0xff] %v4525_v45 }
 0x152   : > { %2231 = vperm.xlu0 %3305, %v4073_v56   ;;  %v4528_v56 = vpop.permute.xlu1 %1842 }
 0x153   : > { %6027 = vst [vmem:[#allocation9_spill] sm:$0xff] %v4528_v56 }
 0x154   : > { %2203 = vperm.xlu1 %3306, %v6022_v46  }
 0x156   : > { %2239 = vperm.xlu0 %3305, %v4081_v58   ;;  %v4532_v58 = vpop.permute.xlu0 %1866  ;;  %v4535_v46 = vpop.permute.xlu1 %1846 }
 0x157   : > { %6028 = vst [vmem:[#allocation10_spill] sm:$0xff] %v4532_v58  ;;  %6029 = vst [vmem:[#allocation32_spill] sm:$0xff] %v4535_v46 }
 0x158   : > { %2211 = vperm.xlu1 %3306, %v6024_v48  }
 0x15a   : > { %2247 = vperm.xlu0 %3305, %v4089_v60  }
 0x15c   : > { %2219 = vperm.xlu1 %3306, %v6025_v51   ;;  %v4540_v51 = vpop.permute.xlu1 %1854 }
 0x15e   : > { %2255 = vperm.xlu0 %3305, %v4097_v63  }
 0x160   : > { %2227 = vperm.xlu1 %3306, %v4109_v9   ;;  %v4545_v58 = vpop.permute.xlu1 %1862 }
 0x161   : > { %6030 = vst [vmem:[#allocation33_spill] sm:$0xff] %v4545_v58 }
 0x162   : > { %2263 = vperm.xlu0 %3305, %v4105_v2  }
 0x164   : > { %2235 = vperm.xlu1 %3306, %v4117_v11  }
 0x166   : > { %2271 = vperm.xlu0 %3305, %v4113_v10  }
 0x167   : > { %v1055_v60 = vpop.xlane.xlu0 %1054 }
 0x168   : > { %2243 = vperm.xlu1 %3306, %v4125_v14   ;;  %v1161_v48 = vmul.f32 0.00390625, %v1055_v60 }
 0x16a   : > { %2279 = vperm.xlu0 %3305, %v4121_v12   ;;  %v1177_v63 = vadd.f32 1e-05, %v1161_v48 }
 0x16b   : > { %v1069_v2 = vpop.xlane.xlu0 %1068 }
 0x16c   : > { %2251 = vperm.xlu1 %3306, %v4133_v18   ;;  %3307 = vrsqrt.f32 %v1177_v63  ;;  %v1163_v9 = vmul.f32 0.00390625, %v1069_v2  ;;  %v2169_v2 = vsub.f32 1.0, %v4195_v28 }
 0x16e   : > { %2287 = vperm.xlu0 %3305, %v4129_v15   ;;  %v1179_v11 = vadd.f32 1e-05, %v1163_v9  ;;  %v4550_v15 = vpop.permute.xlu1 %1870  ;;  %v6032_v9 = vld [vmem:[#allocation12_spill] sm:$0xff] }
 0x16f   : > { %v1083_v10 = vpop.xlane.xlu0 %1082  ;;  %6031 = vst [vmem:[#allocation34_spill] sm:$0xff] %v4550_v15 }
 0x170   : > { %2259 = vperm.xlu1 %3306, %v4141_v20   ;;  %3309 = vrsqrt.f32 %v1179_v11  ;;  %v1165_v14 = vmul.f32 0.00390625, %v1083_v10  ;;  %v4559_v10 = vrot.slane %v4195_v28, %v3840_v3 }
 0x172   : > { %2295 = vperm.xlu0 %3305, %v4137_v19   ;;  %v1181_v12 = vadd.f32 1e-05, %v1165_v14  ;;  %v4563_v14 = vrot.slane %v4195_v28, %v3842_v4 }
 0x174   : > { %2267 = vperm.xlu1 %3306, %v4149_v22   ;;  %3311 = vrsqrt.f32 %v1181_v12 }
 0x176   : > { %2303 = vperm.xlu0 %3305, %v4145_v21   ;;  %v1097_v18 = vpop.xlane.xlu0 %1096  ;;  %v3308_v60 = vpop.eup %3307 }
 0x177   : > { %v1167_v48 = vmul.f32 0.00390625, %v1097_v18  ;;  %v1228_v20 = vrot.slane %v3308_v60, %v3840_v3 }
 0x178   : > { %2275 = vperm.xlu1 %3306, %v4157_v25  }
 0x179   : > { %v1183_v63 = vadd.f32 1e-05, %v1167_v48  ;;  %v1305_v19 = vmul.f32 %v1228_v20, %v6032_v9  ;;  %v4575_v9 = vrot.slane %v2169_v2, %v3840_v3 }
 0x17a   : > { %2311 = vperm.xlu0 %3305, %v4153_v24   ;;  %v1111_v22 = vpop.xlane.xlu0 %1110  ;;  %v3310_v11 = vpop.eup %3309 }
 0x17b   : > { %3313 = vrsqrt.f32 %v1183_v63  ;;  %v1169_v21 = vmul.f32 0.00390625, %v1111_v22  ;;  %v1236_v25 = vrot.slane %v3310_v11, %v3840_v3  ;;  %v1062_v12 = vpop.xlane.xlu1 %1061  ;;  %v1500_v18 = vrot.slane %v1305_v19, %v3840_v3  ;;  %6033 = vst [vmem:[#allocation12_spill] sm:$0xff] %v4575_v9  ;;  %v6034_v22 = vld [vmem:[#allocation11_spill] sm:$0xff] }
 0x17c   : > { %2283 = vperm.xlu1 %3306, %v4162_v27   ;;  %v1504_v24 = vrot.slane %v1305_v19, %v3842_v4  ;;  %v1508_v60 = vrot.slane %v1305_v19, %v3844_v5  ;;  %v1162_v20 = vmul.f32 0.00390625, %v1062_v12  ;;  %v4572_v63 = vrot.slane %v4195_v28, %v3844_v5 }
 0x17d   : > { %v1185_v48 = vadd.f32 1e-05, %v1169_v21  ;;  %v1307_v11 = vmul.f32 %v1236_v25, %v6034_v22  ;;  %v1737_v27 = vmul.f32 %v1500_v18, %v4427_v23  ;;  %v4582_v21 = vrot.slane %v2169_v2, %v3842_v4 }
 0x17e   : > { %v1738_v45 = vmul.f32 %v1504_v24, %v4427_v23  ;;  %v1739_v61 = vmul.f32 %v1508_v60, %v4427_v23  ;;  %v3312_v56 = vpop.eup %3311  ;;  %v1178_v19 = vadd.f32 1e-05, %v1162_v20  ;;  %v4585_v28 = vrot.slane %v2169_v2, %v3844_v5 }
 0x17f   : > { %3315 = vrsqrt.f32 %v1185_v48  ;;  %6035 = vst [vmem:[#allocation11_spill] sm:$0xff] %v4582_v21  ;;  %v1244_v12 = vrot.slane %v3312_v56, %v3840_v3  ;;  %v1961_v22 = vadd.f32 %v4521_v50, %v1737_v27  ;;  %v1740_v15 = vmul.f32 %v1500_v18, %v4326_v33 }
 0x180   : > { %6036 = vst [vmem:[#allocation35_spill] sm:$0xff] %v4585_v28  ;;  %2291 = vperm.xlu1 %3306, %v4167_v29   ;;  %v1125_v25 = vpop.xlane.xlu0 %1124  ;;  %v1741_v23 = vmul.f32 %v1504_v24, %v4326_v33  ;;  %3317 = vrsqrt.f32 %v1178_v19  ;;  %v4593_v58 = vrot.slane %v1307_v11, %v3840_v3  ;;  %v4596_v2 = vrot.slane %v1307_v11, %v3842_v4 }
 0x181   : > { %v1171_v48 = vmul.f32 0.00390625, %v1125_v25  ;;  %v1076_v20 = vpop.xlane.xlu1 %1075  ;;  %v4599_v56 = vmul.f32 %v1244_v12, %v4228_v59  ;;  %v1962_v53 = vadd.f32 %v4521_v50, %v1738_v45  ;;  %v1963_v27 = vadd.f32 %v4521_v50, %v1739_v61 }
 0x182   : > { %6037 = vst [vmem:[#allocation36_spill] sm:$0xff] %v4593_v58  ;;  %6038 = vst [vmem:[#allocation37_spill] sm:$0xff] %v4596_v2  ;;  %v1164_v29 = vmul.f32 0.00390625, %v1076_v20  ;;  %v4604_v24 = vmul.f32 %v4559_v10, %v1961_v22  ;;  %v4607_v19 = vrot.slane %v1307_v11, %v3844_v5  ;;  %v1752_v25 = vmul.f32 %v4593_v58, %v4417_v62 }
 0x183   : > { %6039 = vst [vmem:[#allocation38_spill] sm:$0xff] %v4599_v56  ;;  %v1187_v18 = vadd.f32 1e-05, %v1171_v48  ;;  %v1753_v12 = vmul.f32 %v4596_v2, %v4417_v62  ;;  %v1742_v45 = vmul.f32 %v1508_v60, %v4326_v33  ;;  %v1964_v61 = vadd.f32 %v4511_v57, %v1740_v15 }
 0x184   : > { %6040 = vst [vmem:[#allocation39_spill] sm:$0xff] %v4604_v24  ;;  %6041 = vst [vmem:[#allocation40_spill] sm:$0xff] %v4607_v19  ;;  %v1180_v46 = vadd.f32 1e-05, %v1164_v29  ;;  %2299 = vperm.xlu1 %3306, %v4172_v30   ;;  %v1139_v59 = vpop.xlane.xlu0 %1138  ;;  %v1754_v11 = vmul.f32 %v4607_v19, %v4417_v62  ;;  %v1976_v48 = vadd.f32 %v4540_v51, %v1752_v25 }
 0x185   : > { %v3314_v50 = vpop.eup %3313  ;;  %3319 = vrsqrt.f32 %v1187_v18  ;;  %v1173_v22 = vmul.f32 0.00390625, %v1139_v59  ;;  %v4621_v30 = vmul.f32 %v4563_v14, %v1962_v53  ;;  %v1977_v29 = vadd.f32 %v4540_v51, %v1753_v12 }
 0x186   : > { %v1252_v20 = vrot.slane %v3314_v50, %v3840_v3  ;;  %3321 = vrsqrt.f32 %v1180_v46  ;;  %v4625_v15 = vmul.f32 %v4572_v63, %v1963_v27  ;;  %v1978_v60 = vadd.f32 %v4540_v51, %v1754_v11 }
 0x187   : > { %6042 = vst [vmem:[#allocation41_spill] sm:$0xff] %v4621_v30  ;;  %v1189_v2 = vadd.f32 1e-05, %v1173_v22  ;;  %v1090_v33 = vpop.xlane.xlu1 %1089  ;;  %v1965_v18 = vadd.f32 %v4511_v57, %v1741_v23  ;;  %v4632_v53 = vmul.f32 %v4559_v10, %v1976_v48  ;;  %v1966_v59 = vadd.f32 %v4511_v57, %v1742_v45 }
 0x188   : > { %6043 = vst [vmem:[#allocation42_spill] sm:$0xff] %v4625_v15  ;;  %v1166_v62 = vmul.f32 0.00390625, %v1090_v33  ;;  %2307 = vperm.xlu1 %3306, %v4177_v31   ;;  %v1153_v25 = vpop.xlane.xlu0 %1152  ;;  %v1311_v46 = vmul.f32 %v1252_v20, %v4248_v7  ;;  %v4636_v27 = vmul.f32 %v4563_v14, %v1977_v29  ;;  %v4639_v51 = vmul.f32 %v4559_v10, %v1964_v61 }
 0x189   : > { %6044 = vst [vmem:[#allocation43_spill] sm:$0xff] %v4632_v53  ;;  %v3316_v12 = vpop.eup %3315  ;;  %3323 = vrsqrt.f32 %v1189_v2  ;;  %v1175_v50 = vmul.f32 0.00390625, %v1153_v25  ;;  %v4646_v2 = vmul.f32 %v4572_v63, %v1978_v60  ;;  %v4649_v45 = vmul.f32 %v4563_v14, %v1965_v18  ;;  %v6051_v60 = vld [vmem:[#allocation14_spill] sm:$0xff] }
 0x18a   : > { %6045 = vst [vmem:[#allocation44_spill] sm:$0xff] %v4636_v27  ;;  %6046 = vst [vmem:[#allocation45_spill] sm:$0xff] %v4639_v51  ;;  %v1260_v23 = vrot.slane %v3316_v12, %v3840_v3  ;;  %v1182_v31 = vadd.f32 1e-05, %v1166_v62  ;;  %v1572_v22 = vrot.slane %v1311_v46, %v3840_v3  ;;  %v1576_v7 = vrot.slane %v1311_v46, %v3842_v4  ;;  %v3318_v11 = vpop.eup %3317  ;;  %v6054_v51 = vld [vmem:[#allocation13_spill] sm:$0xff] }
 0x18b   : > { %v1191_v48 = vadd.f32 1e-05, %v1175_v50  ;;  %v1104_v20 = vpop.xlane.xlu1 %1103  ;;  %v1580_v57 = vrot.slane %v1311_v46, %v3844_v5  ;;  %6047 = vst [vmem:[#allocation46_spill] sm:$0xff] %v4646_v2  ;;  %6048 = vst [vmem:[#allocation47_spill] sm:$0xff] %v4649_v45  ;;  %v1232_v61 = vrot.slane %v3318_v11, %v3840_v3  ;;  %v4653_v33 = vmul.f32 %v4572_v63, %v1966_v59 }
 0x18c   : > { %3325 = vrsqrt.f32 %v1182_v31  ;;  %v1168_v29 = vmul.f32 0.00390625, %v1104_v20  ;;  %v1773_v62 = vmul.f32 %v1572_v22, %v4452_v17  ;;  %v1313_v25 = vmul.f32 %v1260_v23, %v4270_v34 }
 0x18d   : > { %6049 = vst [vmem:[#allocation48_spill] sm:$0xff] %v4653_v33  ;;  %3327 = vrsqrt.f32 %v1191_v48  ;;  %v4659_v46 = vrot.slane %v4599_v56, %v3840_v3  ;;  %v1306_v12 = vmul.f32 %v1232_v61, %v6051_v60  ;;  %v1774_v50 = vmul.f32 %v1576_v7, %v4452_v17 }
 0x18e   : > { %v1184_v18 = vadd.f32 1e-05, %v1168_v29  ;;  %v1775_v31 = vmul.f32 %v1580_v57, %v4452_v17  ;;  %v1596_v59 = vrot.slane %v1313_v25, %v3840_v3  ;;  %v1600_v48 = vrot.slane %v1313_v25, %v3842_v4 }
 0x18f   : > { %6050 = vst [vmem:[#allocation49_spill] sm:$0xff] %v4659_v46  ;;  %v3320_v11 = vpop.eup %3319  ;;  %v1118_v20 = vpop.xlane.xlu1 %1117  ;;  %v1604_v19 = vrot.slane %v1313_v25, %v3844_v5  ;;  %v4668_v34 = vmul.f32 %v1572_v22, %v4444_v32  ;;  %v4674_v17 = vmul.f32 %v1576_v7, %v4444_v32  ;;  %v4681_v25 = vmul.f32 %v1580_v57, %v4444_v32 }
 0x190   : > { %v3322_v23 = vpop.eup %3321  ;;  %v1268_v58 = vrot.slane %v3320_v11, %v3840_v3  ;;  %3329 = vrsqrt.f32 %v1184_v18  ;;  %v1170_v61 = vmul.f32 0.00390625, %v1118_v20  ;;  %v4671_v29 = vpop.permute.xlu0 %1874  ;;  %v4678_v46 = vmul.f32 %v1596_v59, %v4466_v8  ;;  %v6053_v20 = vld [vmem:[#allocation19_spill] sm:$0xff] }
 0x191   : > { %v1240_v60 = vrot.slane %v3322_v23, %v3840_v3  ;;  %v4684_v22 = vrot.slane %v1306_v12, %v3840_v3  ;;  %v1786_v18 = vmul.f32 %v1600_v48, %v4466_v8  ;;  %v1787_v11 = vmul.f32 %v1604_v19, %v4466_v8 }
 0x192   : > { %v1186_v33 = vadd.f32 1e-05, %v1170_v61  ;;  %v1315_v45 = vmul.f32 %v1268_v58, %v6053_v20  ;;  %v4693_v2 = vmul.f32 %v1596_v59, %v4457_v47  ;;  %v4696_v32 = vmul.f32 %v1600_v48, %v4457_v47 }
 0x193   : > { %6052 = vst [vmem:[#allocation14_spill] sm:$0xff] %v4684_v22  ;;  %v3324_v7 = vpop.eup %3323  ;;  %v4690_v56 = vmul.f32 %v1240_v60, %v6054_v51  ;;  %v1132_v23 = vpop.xlane.xlu1 %1131  ;;  %v4699_v57 = vmul.f32 %v1604_v19, %v4457_v47  ;;  %v4709_v19 = vrot.slane %v1306_v12, %v3842_v4 }
 0x194   : > { %v1276_v61 = vrot.slane %v3324_v7, %v3840_v3  ;;  %3331 = vrsqrt.f32 %v1186_v33  ;;  %v1172_v8 = vmul.f32 0.00390625, %v1132_v23  ;;  %v1883_v27 = vpop.permute.xlu0 %1882  ;;  %v1620_v58 = vrot.slane %v1315_v45, %v3840_v3 }
 0x195   : > { %6055 = vst [vmem:[#allocation19_spill] sm:$0xff] %v4690_v56  ;;  %v1997_v20 = vadd.f32 %v1883_v27, %v1773_v62  ;;  %v1998_v51 = vadd.f32 %v1883_v27, %v1774_v50  ;;  %v1999_v60 = vadd.f32 %v1883_v27, %v1775_v31  ;;  %v1624_v56 = vrot.slane %v1315_v45, %v3842_v4 }
 0x196   : > { %v3326_v59 = vpop.eup %3325  ;;  %v1188_v53 = vadd.f32 1e-05, %v1172_v8  ;;  %v4705_v48 = vrot.slane %v1315_v45, %v3844_v5  ;;  %v1317_v47 = vmul.f32 %v1276_v61, %v4311_v52  ;;  %6056 = vst [vmem:[#allocation13_spill] sm:$0xff] %v4709_v19  ;;  %v4718_v50 = vmul.f32 %v1620_v58, %v4480_v16 }
 0x197   : > { %v4711_v33 = vpop.eup %3327  ;;  %v1248_v7 = vrot.slane %v3326_v59, %v3840_v3  ;;  %v4715_v62 = vmul.f32 %v4559_v10, %v1997_v20  ;;  %v1146_v27 = vpop.xlane.xlu1 %1145  ;;  %v4721_v31 = vrot.slane %v1306_v12, %v3844_v5  ;;  %v4726_v45 = vmul.f32 %v4563_v14, %v1998_v51  ;;  %v6061_v20 = vld [vmem:[#allocation15_spill] sm:$0xff] }
 0x198   : > { %v4729_v23 = vmul.f32 %v4572_v63, %v1999_v60  ;;  %v1174_v61 = vmul.f32 0.00390625, %v1146_v27  ;;  %v1891_v8 = vpop.permute.xlu0 %1890  ;;  %3333 = vrsqrt.f32 %v1188_v53  ;;  %v4737_v12 = vmul.f32 %v4705_v48, %v4480_v16 }
 0x199   : > { %6057 = vst [vmem:[#allocation50_spill] sm:$0xff] %v4715_v62  ;;  %6058 = vst [vmem:[#allocation51_spill] sm:$0xff] %v4721_v31  ;;  %v1310_v59 = vmul.f32 %v1248_v7, %v6061_v20  ;;  %v4733_v62 = vmul.f32 %v1624_v56, %v4480_v16  ;;  %v4740_v51 = vrot.slane %v1317_v47, %v3840_v3 }
 0x19a   : > { %6059 = vst [vmem:[#allocation52_spill] sm:$0xff] %v4726_v45  ;;  %6060 = vst [vmem:[#allocation53_spill] sm:$0xff] %v4729_v23  ;;  %v3330_v31 = vpop.eup %3329  ;;  %v1190_v52 = vadd.f32 1e-05, %v1174_v61  ;;  %v4743_v60 = vrot.slane %v1317_v47, %v3842_v4  ;;  %v4746_v27 = vrot.slane %v1317_v47, %v3844_v5  ;;  %v4753_v19 = vmul.f32 %v1620_v58, %v4471_v36 }
 0x19b   : > { %6062 = vst [vmem:[#allocation15_spill] sm:$0xff] %v4740_v51  ;;  %v1256_v53 = vrot.slane %v3330_v31, %v3840_v3  ;;  %v1560_v7 = vrot.slane %v1310_v59, %v3840_v3  ;;  %v1564_v20 = vrot.slane %v1310_v59, %v3842_v4  ;;  %v1568_v16 = vrot.slane %v1310_v59, %v3844_v5  ;;  %v1160_v23 = vpop.xlane.xlu1 %1159 }
 0x19c   : > { %6063 = vst [vmem:[#allocation54_spill] sm:$0xff] %v4743_v60  ;;  %3335 = vrsqrt.f32 %v1190_v52  ;;  %v1176_v61 = vmul.f32 0.00390625, %v1160_v23  ;;  %v1899_v45 = vpop.permute.xlu0 %1898  ;;  %v4756_v22 = vmul.f32 %v1624_v56, %v4471_v36  ;;  %v4768_v0 = vmul.f32 %v4740_v51, %v4493_v42 }
 0x19d   : > { %v1767_v47 = vmul.f32 %v1560_v7, %v4446_v43  ;;  %v1768_v31 = vmul.f32 %v1564_v20, %v4446_v43  ;;  %v1769_v41 = vmul.f32 %v1568_v16, %v4446_v43  ;;  %v1312_v15 = vmul.f32 %v1256_v53, %v6064_v44 }
 0x19e   : > { %v3332_v30 = vpop.eup %3331  ;;  %v1192_v59 = vadd.f32 1e-05, %v1176_v61  ;;  %v2009_v52 = vadd.f32 %v1899_v45, %v4678_v46  ;;  %v2010_v23 = vadd.f32 %v1899_v45, %v1786_v18  ;;  %v2011_v24 = vadd.f32 %v1899_v45, %v1787_v11 }
 0x19f   : > { %v1991_v58 = vadd.f32 %v4671_v29, %v1767_v47  ;;  %v1992_v28 = vadd.f32 %v4671_v29, %v1768_v31  ;;  %v1993_v56 = vadd.f32 %v4671_v29, %v1769_v41  ;;  %v1879_v21 = vpop.permute.xlu1 %1878  ;;  %v4771_v43 = vrot.slane %v1312_v15, %v3840_v3 }
 0x1a0   : > { %v4774_v44 = vrot.slane %v1312_v15, %v3842_v4  ;;  %v4777_v46 = vrot.slane %v1312_v15, %v3844_v5  ;;  %3337 = vrsqrt.f32 %v1192_v59  ;;  %v1907_v18 = vpop.permute.xlu0 %1906  ;;  %v1264_v11 = vrot.slane %v3332_v30, %v3840_v3 }
 0x1a1   : > { %v4781_v41 = vmul.f32 %v4559_v10, %v1991_v58  ;;  %v4784_v29 = vmul.f32 %v4563_v14, %v1992_v28  ;;  %v4788_v45 = vmul.f32 %v4743_v60, %v4493_v42  ;;  %v4791_v53 = vmul.f32 %v4572_v63, %v1993_v56 }
 0x1a2   : > { %v1779_v15 = vmul.f32 %v4771_v43, %v4459_v55  ;;  %v1780_v61 = vmul.f32 %v4774_v44, %v4459_v55  ;;  %v1781_v30 = vmul.f32 %v4777_v46, %v4459_v55  ;;  %v3334_v47 = vpop.eup %3333  ;;  %v4800_v28 = vmul.f32 %v4559_v10, %v2009_v52 }
 0x1a3   : > { %6065 = vst [vmem:[#allocation16_spill] sm:$0xff] %v4781_v41  ;;  %6066 = vst [vmem:[#allocation55_spill] sm:$0xff] %v4784_v29  ;;  %v4803_v31 = vmul.f32 %v4563_v14, %v2010_v23  ;;  %v1770_v59 = vmul.f32 %v1560_v7, %v4439_v39  ;;  %v1771_v58 = vmul.f32 %v1564_v20, %v4439_v39  ;;  %v1887_v56 = vpop.permute.xlu1 %1886 }
 0x1a4   : > { %6067 = vst [vmem:[#allocation56_spill] sm:$0xff] %v4791_v53  ;;  %6068 = vst [vmem:[#allocation57_spill] sm:$0xff] %v4800_v28  ;;  %v2003_v53 = vadd.f32 %v1891_v8, %v1779_v15  ;;  %v2004_v29 = vadd.f32 %v1891_v8, %v1780_v61  ;;  %v2005_v41 = vadd.f32 %v1891_v8, %v1781_v30  ;;  %v1915_v60 = vpop.permute.xlu0 %1914 }
 0x1a5   : > { %6069 = vst [vmem:[#allocation58_spill] sm:$0xff] %v4803_v31  ;;  %v1772_v9 = vmul.f32 %v1568_v16, %v4439_v39  ;;  %v1994_v51 = vadd.f32 %v1879_v21, %v1770_v59  ;;  %v1995_v55 = vadd.f32 %v1879_v21, %v1771_v58  ;;  %v1314_v26 = vmul.f32 %v1264_v11, %v6070_v40 }
 0x1a6   : > { %v2000_v52 = vadd.f32 %v1887_v56, %v4668_v34  ;;  %v4810_v28 = vpop.eup %3335  ;;  %v1272_v23 = vrot.slane %v3334_v47, %v3840_v3  ;;  %v4814_v7 = vmul.f32 %v4559_v10, %v2003_v53  ;;  %v4817_v20 = vmul.f32 %v4572_v63, %v2011_v24 }
 0x1a7   : > { %v1996_v8 = vadd.f32 %v1879_v21, %v1772_v9  ;;  %v4822_v16 = vmul.f32 %v4563_v14, %v2004_v29  ;;  %v4825_v40 = vmul.f32 %v4572_v63, %v2005_v41  ;;  %v1608_v34 = vrot.slane %v1314_v26, %v3840_v3  ;;  %v1895_v11 = vpop.permute.xlu1 %1894 }
 0x1a8   : > { %6071 = vst [vmem:[#allocation17_spill] sm:$0xff] %v4814_v7  ;;  %6072 = vst [vmem:[#allocation59_spill] sm:$0xff] %v4817_v20  ;;  %v4829_v15 = vmul.f32 %v4559_v10, %v1994_v51  ;;  %v1612_v53 = vrot.slane %v1314_v26, %v3842_v4  ;;  %v4833_v24 = vrot.slane %v1314_v26, %v3844_v5  ;;  %v1923_v21 = vpop.permute.xlu0 %1922  ;;  %v6148_v7 = vld [vmem:[#allocation47_spill] sm:$0xff] }
 0x1a9   : > { %6073 = vst [vmem:[#allocation60_spill] sm:$0xff] %v4822_v16  ;;  %6074 = vst [vmem:[#allocation61_spill] sm:$0xff] %v4825_v40  ;;  %v2001_v9 = vadd.f32 %v1887_v56, %v4674_v17  ;;  %v4837_v29 = vmul.f32 %v4563_v14, %v1995_v55  ;;  %v1791_v41 = vmul.f32 %v1608_v34, %v4473_v1  ;;  %v6147_v16 = vld [vmem:[#allocation45_spill] sm:$0xff] }
 0x1aa   : > { %v2002_v61 = vadd.f32 %v1887_v56, %v4681_v25  ;;  %v2021_v30 = vadd.f32 %v1915_v60, %v4718_v50  ;;  %v4842_v47 = vpop.eup %3337  ;;  %v4845_v51 = vmul.f32 %v4572_v63, %v1996_v8  ;;  %v1792_v26 = vmul.f32 %v1612_v53, %v4473_v1 }
 0x1ab   : > { %v1793_v17 = vmul.f32 %v4833_v24, %v4473_v1  ;;  %v2022_v59 = vadd.f32 %v1915_v60, %v4733_v62  ;;  %v2015_v58 = vadd.f32 %v1907_v18, %v1791_v41  ;;  %v4852_v55 = vmul.f32 %v4559_v10, %v2000_v52  ;;  %v1903_v56 = vpop.permute.xlu1 %1902 }
 0x1ac   : > { %v4855_v25 = vmul.f32 %v4563_v14, %v2001_v9  ;;  %v2023_v50 = vadd.f32 %v1915_v60, %v4737_v12  ;;  %v2016_v39 = vadd.f32 %v1907_v18, %v1792_v26  ;;  %v4861_v31 = vmul.f32 %v4572_v63, %v2002_v61  ;;  %v1931_v1 = vpop.permute.xlu0 %1930  ;;  %v6079_v61 = vld [vmem:[#allocation18_spill] sm:$0xff] }
 0x1ad   : > { %v2017_v20 = vadd.f32 %v1907_v18, %v1793_v17  ;;  %v4864_v62 = vmul.f32 %v4559_v10, %v2021_v30  ;;  %v4867_v52 = vmul.f32 %v4563_v14, %v2022_v59  ;;  %v1782_v9 = vmul.f32 %v4771_v43, %v4450_v38 }
 0x1ae   : > { %v1783_v12 = vmul.f32 %v4774_v44, %v4450_v38  ;;  %v4874_v60 = vmul.f32 %v4559_v10, %v2015_v58  ;;  %v4877_v18 = vmul.f32 %v4572_v63, %v2023_v50  ;;  %v1784_v41 = vmul.f32 %v4777_v46, %v4450_v38 }
 0x1af   : > { %6075 = vst [vmem:[#allocation62_spill] sm:$0xff] %v4864_v62  ;;  %6076 = vst [vmem:[#allocation63_spill] sm:$0xff] %v4867_v52  ;;  %v1316_v30 = vmul.f32 %v1272_v23, %v6079_v61  ;;  %v2006_v26 = vadd.f32 %v1895_v11, %v1782_v9  ;;  %v2012_v59 = vadd.f32 %v1903_v56, %v4693_v2  ;;  %v1911_v8 = vpop.permute.xlu1 %1910 }
 0x1b0   : > { %6077 = vst [vmem:[#allocation64_spill] sm:$0xff] %v4874_v60  ;;  %6078 = vst [vmem:[#allocation65_spill] sm:$0xff] %v4877_v18  ;;  %v2007_v17 = vadd.f32 %v1895_v11, %v1783_v12  ;;  %v2013_v43 = vadd.f32 %v1903_v56, %v4696_v32  ;;  %v2008_v52 = vadd.f32 %v1895_v11, %v1784_v41  ;;  %v1939_v38 = vpop.permute.xlu0 %1938  ;;  %v6119_v60 = vld [vmem:[#allocation41_spill] sm:$0xff] }
 0x1b1   : > { %v4885_v44 = vrot.slane %v1316_v30, %v3840_v3  ;;  %v4888_v58 = vrot.slane %v1316_v30, %v3842_v4  ;;  %v4891_v50 = vrot.slane %v1316_v30, %v3844_v5  ;;  %v4894_v46 = vmul.f32 %v4563_v14, %v2016_v39 }
 0x1b2   : > { %v4897_v23 = vmul.f32 %v4572_v63, %v2017_v20  ;;  %v4900_v2 = vmul.f32 %v4559_v10, %v2006_v26  ;;  %v2014_v32 = vadd.f32 %v1903_v56, %v4699_v57  ;;  %v4904_v11 = vmul.f32 %v4563_v14, %v2007_v17 }
 0x1b3   : > { %6080 = vst [vmem:[#allocation18_spill] sm:$0xff] %v4894_v46  ;;  %v1803_v9 = vmul.f32 %v4885_v44, %v4487_v37  ;;  %v1804_v12 = vmul.f32 %v4888_v58, %v4487_v37  ;;  %v1805_v39 = vmul.f32 %v4891_v50, %v4487_v37  ;;  %v4913_v20 = vmul.f32 %v4572_v63, %v2008_v52 }
 0x1b4   : > { %6081 = vst [vmem:[#allocation66_spill] sm:$0xff] %v4897_v23  ;;  %v4916_v41 = vmul.f32 %v4559_v10, %v2012_v59  ;;  %v1811_v57 = vmul.f32 %v4746_v27, %v4493_v42  ;;  %v2033_v56 = vadd.f32 %v1931_v1, %v4768_v0  ;;  %v2034_v17 = vadd.f32 %v1931_v1, %v4788_v45  ;;  %v1919_v59 = vpop.permute.xlu1 %1918 }
 0x1b5   : > { %v2027_v61 = vadd.f32 %v1923_v21, %v1803_v9  ;;  %v2028_v30 = vadd.f32 %v1923_v21, %v1804_v12  ;;  %v2029_v26 = vadd.f32 %v1923_v21, %v1805_v39  ;;  %v4923_v18 = vmul.f32 %v4563_v14, %v2013_v43  ;;  %v1947_v21 = vpop.permute.xlu0 %1946  ;;  %v6086_v9 = vld [vmem:[#allocation20_spill] sm:$0xff] }
 0x1b6   : > { %v2035_v37 = vadd.f32 %v1931_v1, %v1811_v57  ;;  %v1794_v52 = vmul.f32 %v1608_v34, %v4464_v49  ;;  %v1795_v62 = vmul.f32 %v1612_v53, %v4464_v49  ;;  %v4934_v0 = vmul.f32 %v4572_v63, %v2014_v32 }
 0x1b7   : > { %v4928_v23 = vmul.f32 %v4559_v10, %v2027_v61  ;;  %v4931_v42 = vmul.f32 %v4563_v14, %v2028_v30  ;;  %v4937_v45 = vmul.f32 %v4559_v10, %v2033_v56  ;;  %v4940_v1 = vmul.f32 %v4572_v63, %v2029_v26 }
 0x1b8   : > { %v1796_v34 = vmul.f32 %v4833_v24, %v4464_v49  ;;  %v2018_v53 = vadd.f32 %v1911_v8, %v1794_v52  ;;  %v2019_v43 = vadd.f32 %v1911_v8, %v1795_v62  ;;  %v6087_v12 = vrot.slane %v4810_v28, %v3840_v3 }
 0x1b9   : > { %6082 = vst [vmem:[#allocation67_spill] sm:$0xff] %v4928_v23  ;;  %6083 = vst [vmem:[#allocation68_spill] sm:$0xff] %v4931_v42  ;;  %v1802_v32 = vmul.f32 %v4705_v48, %v4471_v36  ;;  %v2024_v57 = vadd.f32 %v1919_v59, %v4753_v19  ;;  %v2025_v56 = vadd.f32 %v1919_v59, %v4756_v22  ;;  %v6116_v23 = vld [vmem:[#allocation39_spill] sm:$0xff] }
 0x1ba   : > { %6084 = vst [vmem:[#allocation69_spill] sm:$0xff] %v4937_v45  ;;  %6085 = vst [vmem:[#allocation70_spill] sm:$0xff] %v4940_v1  ;;  %v1318_v39 = vmul.f32 %v6087_v12, %v6086_v9  ;;  %v4953_v61 = vmul.f32 %v4563_v14, %v2034_v17  ;;  %v4956_v30 = vmul.f32 %v4572_v63, %v2035_v37 }
 0x1bb   : > { %v2020_v49 = vadd.f32 %v1911_v8, %v1796_v34  ;;  %v6090_v24 = vrot.slane %v4711_v33, %v3840_v3  ;;  %v2026_v48 = vadd.f32 %v1919_v59, %v1802_v32  ;;  %v4972_v19 = vmul.f32 %v4559_v10, %v2018_v53  ;;  %v1927_v59 = vpop.permute.xlu1 %1926  ;;  %v1955_v34 = vpop.permute.xlu0 %1954 }
 0x1bc   : > { %6088 = vst [vmem:[#allocation20_spill] sm:$0xff] %v4953_v61  ;;  %6089 = vst [vmem:[#allocation71_spill] sm:$0xff] %v4956_v30  ;;  %v4963_v62 = vrot.slane %v1318_v39, %v3840_v3  ;;  %v4966_v36 = vrot.slane %v1318_v39, %v3842_v4  ;;  %v4969_v22 = vrot.slane %v1318_v39, %v3844_v5 }
 0x1bd   : > { %v1319_v28 = vmul.f32 %v6090_v24, %v4335_v35  ;;  %v4975_v8 = vmul.f32 %v4563_v14, %v2019_v43  ;;  %v4978_v26 = vmul.f32 %v4572_v63, %v2020_v49  ;;  %v4990_v52 = vmul.f32 %v4559_v10, %v2024_v57 }
 0x1be   : > { %v1815_v33 = vmul.f32 %v4963_v62, %v4501_v6  ;;  %v1816_v17 = vmul.f32 %v4966_v36, %v4501_v6  ;;  %v1817_v37 = vmul.f32 %v4969_v22, %v4501_v6  ;;  %v4993_v53 = vmul.f32 %v4563_v14, %v2025_v56 }
 0x1bf   : > { %6091 = vst [vmem:[#allocation72_spill] sm:$0xff] %v4975_v8  ;;  %6092 = vst [vmem:[#allocation73_spill] sm:$0xff] %v4978_v26  ;;  %v4981_v35 = vrot.slane %v1319_v28, %v3840_v3  ;;  %v4996_v43 = vrot.slane %v1319_v28, %v3842_v4  ;;  %v4999_v9 = vrot.slane %v1319_v28, %v3844_v5 }
 0x1c0   : > { %6093 = vst [vmem:[#allocation74_spill] sm:$0xff] %v4990_v52  ;;  %6094 = vst [vmem:[#allocation75_spill] sm:$0xff] %v4993_v53  ;;  %v2039_v39 = vadd.f32 %v1939_v38, %v1815_v33  ;;  %v2040_v32 = vadd.f32 %v1939_v38, %v1816_v17  ;;  %v2041_v6 = vadd.f32 %v1939_v38, %v1817_v37 }
 0x1c1   : > { %v1821_v12 = vmul.f32 %v4981_v35, %v4507_v54  ;;  %v1806_v57 = vmul.f32 %v4885_v44, %v4478_v13  ;;  %v1822_v49 = vmul.f32 %v4996_v43, %v4507_v54  ;;  %v1823_v56 = vmul.f32 %v4999_v9, %v4507_v54 }
 0x1c2   : > { %v1807_v28 = vmul.f32 %v4888_v58, %v4478_v13  ;;  %v5012_v30 = vmul.f32 %v4559_v10, %v2039_v39  ;;  %v5015_v33 = vmul.f32 %v4572_v63, %v2026_v48  ;;  %v1808_v38 = vmul.f32 %v4891_v50, %v4478_v13  ;;  %v1935_v13 = vpop.permute.xlu1 %1934  ;;  %v2188_v50 = vpop.permute.xlu0 %2187 }
 0x1c3   : > { %v2045_v24 = vadd.f32 %v1947_v21, %v1821_v12  ;;  %v2030_v44 = vadd.f32 %v1927_v59, %v1806_v57  ;;  %v5020_v17 = vmul.f32 %v4563_v14, %v2040_v32  ;;  %v2046_v37 = vadd.f32 %v1947_v21, %v1822_v49  ;;  %v6104_v57 = vld [vmem:[#allocation29_spill] sm:$0xff] }
 0x1c4   : > { %6095 = vst [vmem:[#allocation76_spill] sm:$0xff] %v5012_v30  ;;  %6096 = vst [vmem:[#allocation77_spill] sm:$0xff] %v5015_v33  ;;  %v2047_v61 = vadd.f32 %v1947_v21, %v1823_v56  ;;  %v2031_v54 = vadd.f32 %v1927_v59, %v1807_v28  ;;  %v5023_v12 = vmul.f32 %v4572_v63, %v2041_v6  ;;  %v6100_v30 = vld [vmem:[#allocation21_spill] sm:$0xff]  ;;  %v6105_v6 = vld [vmem:[#allocation15_spill] sm:$0xff] }
 0x1c5   : > { %6097 = vst [vmem:[#allocation78_spill] sm:$0xff] %v5020_v17  ;;  %v5026_v58 = vmul.f32 %v4559_v10, %v2045_v24  ;;  %v2032_v39 = vadd.f32 %v1927_v59, %v1808_v38  ;;  %v6101_v48 = vrot.slane %v4842_v47, %v3840_v3  ;;  %v5033_v32 = vmul.f32 %v4563_v14, %v2046_v37  ;;  %v6106_v56 = vld [vmem:[#allocation54_spill] sm:$0xff]  ;;  %v6149_v33 = vld [vmem:[#allocation48_spill] sm:$0xff] }
 0x1c6   : > { %6098 = vst [vmem:[#allocation79_spill] sm:$0xff] %v5023_v12  ;;  %v5036_v21 = vmul.f32 %v4559_v10, %v2030_v44  ;;  %v1812_v49 = vmul.f32 %v6105_v6, %v6104_v57  ;;  %v1813_v24 = vmul.f32 %v6106_v56, %v6104_v57  ;;  %v5043_v59 = vmul.f32 %v4572_v63, %v2047_v61  ;;  %v6109_v56 = vld [vmem:[#allocation7_spill] sm:$0xff] }
 0x1c7   : > { %6099 = vst [vmem:[#allocation80_spill] sm:$0xff] %v5026_v58  ;;  %v1320_v45 = vmul.f32 %v6101_v48, %v6100_v30  ;;  %6102 = vst [vmem:[#allocation21_spill] sm:$0xff] %v5033_v32  ;;  %v1814_v38 = vmul.f32 %v4746_v27, %v6104_v57  ;;  %v6108_v48 = vld [vmem:[#allocation12_spill] sm:$0xff]  ;;  %v6110_v58 = vld [vmem:[#allocation11_spill] sm:$0xff]  ;;  %v5068_v27 = vmul.f32 %v4572_v63, %v2032_v39 }
 0x1c8   : > { %6103 = vst [vmem:[#allocation81_spill] sm:$0xff] %v5036_v21  ;;  %6107 = vst [vmem:[#allocation29_spill] sm:$0xff] %v5043_v59  ;;  %v2036_v44 = vadd.f32 %v1935_v13, %v1812_v49  ;;  %v2037_v37 = vadd.f32 %v1935_v13, %v1813_v24  ;;  %v2314_v6 = vmul.f32 %v2188_v50, %v6108_v48  ;;  %v6113_v49 = vld [vmem:[#allocation35_spill] sm:$0xff] }
 0x1c9   : > { %v5046_v47 = vrot.slane %v1320_v45, %v3840_v3  ;;  %v5049_v30 = vrot.slane %v1320_v45, %v3842_v4  ;;  %v5052_v28 = vrot.slane %v1320_v45, %v3844_v5  ;;  %v2315_v12 = vmul.f32 %v2188_v50, %v6110_v58  ;;  %6112 = vst [vmem:[#allocation54_spill] sm:$0xff] %v5068_v27 }
 0x1ca   : > { %v5065_v45 = vmul.f32 %v4563_v14, %v2031_v54  ;;  %v2038_v57 = vadd.f32 %v1935_v13, %v1814_v38  ;;  %v2316_v24 = vmul.f32 %v2188_v50, %v6113_v49  ;;  %v5076_v46 = vadd.f32 %v2314_v6, %v6116_v23  ;;  %v6120_v13 = vld [vmem:[#allocation42_spill] sm:$0xff]  ;;  %v1943_v50 = vpop.permute.xlu1 %1942 }
 0x1cb   : > { %v1827_v61 = vmul.f32 %v5046_v47, %v6109_v56  ;;  %v1828_v59 = vmul.f32 %v5049_v30, %v6109_v56  ;;  %v1829_v32 = vmul.f32 %v5052_v28, %v6109_v56  ;;  %v5079_v56 = vmul.f32 %v4559_v10, %v2036_v44 }
 0x1cc   : > { %6111 = vst [vmem:[#allocation15_spill] sm:$0xff] %v5065_v45  ;;  %v5082_v54 = vmul.f32 %v4563_v14, %v2037_v37  ;;  %v5085_v39 = vadd.f32 %v2315_v12, %v6119_v60  ;;  %v5088_v38 = vadd.f32 %v2316_v24, %v6120_v13  ;;  %v2506_v23 = vsub.f32 0.0, %v5076_v46  ;;  %v2200_v37 = vpop.permute.xlu0 %2199  ;;  %v6125_v13 = vld [vmem:[#allocation14_spill] sm:$0xff] }
 0x1cd   : > { %v2051_v17 = vadd.f32 %v1955_v34, %v1827_v61  ;;  %v5071_v1 = vadd.f32 %v1955_v34, %v1828_v59  ;;  %v5073_v42 = vadd.f32 %v1955_v34, %v1829_v32  ;;  %6117 = vst [vmem:[#allocation11_spill] sm:$0xff] %v5079_v56  ;;  %v5094_v34 = vmul.f32 %v4572_v63, %v2038_v57  ;;  %v6123_v32 = vld [vmem:[#allocation30_spill] sm:$0xff]  ;;  %v6124_v57 = vld [vmem:[#allocation23_spill] sm:$0xff] }
 0x1ce   : > { %6118 = vst [vmem:[#allocation35_spill] sm:$0xff] %v5082_v54  ;;  %v1818_v44 = vmul.f32 %v4963_v62, %v6123_v32  ;;  %v2507_v6 = vsub.f32 0.0, %v5085_v39  ;;  %v2508_v60 = vsub.f32 0.0, %v5088_v38  ;;  %v1819_v12 = vmul.f32 %v4966_v36, %v6123_v32  ;;  %v6128_v36 = vld [vmem:[#allocation51_spill] sm:$0xff] }
 0x1cf   : > { %6114 = vst [vmem:[#allocation12_spill] sm:$0xff] %v5071_v1  ;;  %6115 = vst [vmem:[#allocation7_spill] sm:$0xff] %v5073_v42  ;;  %v5091_v59 = vmul.f32 %v4559_v10, %v2051_v17  ;;  %v1820_v17 = vmul.f32 %v4969_v22, %v6123_v32  ;;  %v2602_v61 = vmul.f32 1.442695, %v2506_v23  ;;  %v6126_v42 = vld [vmem:[#allocation13_spill] sm:$0xff]  ;;  %v1748_v45 = vmul.f32 %v6128_v36, %v6124_v57  ;;  %v6129_v22 = vld [vmem:[#allocation32_spill] sm:$0xff] }
 0x1d0   : > { %6122 = vst [vmem:[#allocation41_spill] sm:$0xff] %v5094_v34  ;;  %v2042_v24 = vadd.f32 %v1943_v50, %v1818_v44  ;;  %v1747_v1 = vmul.f32 %v6126_v42, %v6124_v57  ;;  %v2604_v62 = vmul.f32 1.442695, %v2507_v6  ;;  %v2606_v34 = vmul.f32 1.442695, %v2508_v60 }
 0x1d1   : > { %6121 = vst [vmem:[#allocation39_spill] sm:$0xff] %v5091_v59  ;;  %v1746_v59 = vmul.f32 %v6125_v13, %v6124_v57  ;;  %v2043_v54 = vadd.f32 %v1943_v50, %v1819_v12  ;;  %v2044_v56 = vadd.f32 %v1943_v50, %v1820_v17  ;;  %3339 = vpow2.f32 %v2602_v61  ;;  %v1951_v17 = vpop.permute.xlu1 %1950  ;;  %v2208_v61 = vpop.permute.xlu0 %2207  ;;  %v6132_v57 = vld [vmem:[#allocation31_spill] sm:$0xff] }
 0x1d2   : > { %v5110_v27 = vmul.f32 %v4559_v10, %v2042_v24  ;;  %3341 = vpow2.f32 %v2604_v62  ;;  %v1971_v6 = vadd.f32 %v6129_v22, %v1747_v1  ;;  %v1972_v50 = vadd.f32 %v6129_v22, %v1748_v45 }
 0x1d3   : > { %v1970_v23 = vadd.f32 %v6129_v22, %v1746_v59  ;;  %v5116_v32 = vmul.f32 %v4563_v14, %v2043_v54  ;;  %v5119_v44 = vmul.f32 %v4572_v63, %v2044_v56  ;;  %3343 = vpow2.f32 %v2606_v34 }
 0x1d4   : > { %6127 = vst [vmem:[#allocation42_spill] sm:$0xff] %v5110_v27  ;;  %v2323_v12 = vmul.f32 %v2200_v37, %v6108_v48  ;;  %v2083_v59 = vmul.f32 %v4563_v14, %v1971_v6  ;;  %v2324_v24 = vmul.f32 %v2200_v37, %v6110_v58  ;;  %v2325_v54 = vmul.f32 %v2200_v37, %v6113_v49 }
 0x1d5   : > { %6130 = vst [vmem:[#allocation30_spill] sm:$0xff] %v5116_v32  ;;  %6131 = vst [vmem:[#allocation23_spill] sm:$0xff] %v5119_v44  ;;  %v2082_v60 = vmul.f32 %v4559_v10, %v1970_v23  ;;  %v1824_v56 = vmul.f32 %v4981_v35, %v6132_v57  ;;  %v2084_v1 = vmul.f32 %v4572_v63, %v1972_v50  ;;  %v1959_v32 = vpop.permute.xlu1 %1958 }
 0x1d6   : > { %v1825_v45 = vmul.f32 %v4996_v43, %v6132_v57  ;;  %v1826_v62 = vmul.f32 %v4999_v9, %v6132_v57  ;;  %v5137_v22 = vadd.f32 %v2324_v24, %v2083_v59  ;;  %v2329_v6 = vmul.f32 %v2208_v61, %v6108_v48  ;;  %v6134_v59 = vld [vmem:[#allocation43_spill] sm:$0xff] }
 0x1d7   : > { %v5131_v34 = vadd.f32 %v2323_v12, %v2082_v60  ;;  %v2048_v23 = vadd.f32 %v1951_v17, %v1824_v56  ;;  %v2330_v37 = vmul.f32 %v2208_v61, %v6110_v58  ;;  %v5141_v44 = vadd.f32 %v2325_v54, %v2084_v1 }
 0x1d8   : > { %v2049_v50 = vadd.f32 %v1951_v17, %v1825_v45  ;;  %v2050_v60 = vadd.f32 %v1951_v17, %v1826_v62  ;;  %v2516_v12 = vsub.f32 0.0, %v5137_v22  ;;  %v2331_v9 = vmul.f32 %v2208_v61, %v6113_v49  ;;  %v6137_v45 = vld [vmem:[#allocation44_spill] sm:$0xff] }
 0x1d9   : > { %v2515_v35 = vsub.f32 0.0, %v5131_v34  ;;  %v5146_v43 = vmul.f32 %v4559_v10, %v2048_v23  ;;  %v5150_v24 = vadd.f32 %v2329_v6, %v6134_v59  ;;  %v2517_v57 = vsub.f32 0.0, %v5141_v44  ;;  %v6138_v23 = vld [vmem:[#allocation46_spill] sm:$0xff] }
 0x1da   : > { %v5154_v54 = vmul.f32 %v4563_v14, %v2049_v50  ;;  %v5157_v1 = vmul.f32 %v4572_v63, %v2050_v60  ;;  %v2622_v17 = vmul.f32 1.442695, %v2516_v12  ;;  %v5160_v62 = vadd.f32 %v2330_v37, %v6137_v45 }
 0x1db   : > { %6133 = vst [vmem:[#allocation14_spill] sm:$0xff] %v5146_v43  ;;  %v2620_v56 = vmul.f32 1.442695, %v2515_v35  ;;  %v5163_v43 = vadd.f32 %v2331_v9, %v6138_v23  ;;  %v2521_v61 = vsub.f32 0.0, %v5150_v24  ;;  %v3340_v6 = vpop.eup %3339  ;;  %v2624_v59 = vmul.f32 1.442695, %v2517_v57 }
 0x1dc   : > { %6135 = vst [vmem:[#allocation13_spill] sm:$0xff] %v5154_v54  ;;  %6136 = vst [vmem:[#allocation51_spill] sm:$0xff] %v5157_v1  ;;  %v6139_v35 = vld [vmem:[#allocation5_spill] sm:$0xff]  ;;  %v3342_v1 = vpop.eup %3341  ;;  %v2794_v12 = vadd.f32 1.0, %v3340_v6  ;;  %v2522_v37 = vsub.f32 0.0, %v5160_v62 }
 0x1dd   : > { %3345 = vpow2.f32 %v2620_v56  ;;  %v1830_v50 = vmul.f32 %v5046_v47, %v6139_v35  ;;  %v1831_v60 = vmul.f32 %v5049_v30, %v6139_v35  ;;  %v2523_v9 = vsub.f32 0.0, %v5163_v43  ;;  %v3344_v45 = vpop.eup %3343 }
 0x1de   : > { %3347 = vpow2.f32 %v2622_v17  ;;  %v2795_v23 = vadd.f32 1.0, %v3342_v1  ;;  %v2632_v54 = vmul.f32 1.442695, %v2521_v61  ;;  %v1832_v57 = vmul.f32 %v5052_v28, %v6139_v35  ;;  %v6140_v17 = vld [vmem:[#allocation19_spill] sm:$0xff]  ;;  %v2216_v61 = vpop.permute.xlu0 %2215  ;;  %v2192_v35 = vpop.permute.xlu1 %2191 }
 0x1df   : > { %3349 = vpow2.f32 %v2624_v59  ;;  %v2796_v56 = vadd.f32 1.0, %v3344_v45  ;;  %v2634_v47 = vmul.f32 1.442695, %v2522_v37  ;;  %v2636_v27 = vmul.f32 1.442695, %v2523_v9  ;;  %v6145_v45 = vld [vmem:[#allocation33_spill] sm:$0xff] }
 0x1e0   : > { %3351 = vrcp.f32 %v2794_v12  ;;  %v2054_v30 = vadd.f32 %v1959_v32, %v1830_v50  ;;  %v2055_v21 = vadd.f32 %v1959_v32, %v1831_v60  ;;  %v2056_v6 = vadd.f32 %v1959_v32, %v1832_v57  ;;  %v6144_v50 = vld [vmem:[#allocation27_spill] sm:$0xff] }
 0x1e1   : > { %3353 = vrcp.f32 %v2795_v23  ;;  %v5176_v40 = vrot.slane %v6140_v17, %v3840_v3  ;;  %v5180_v1 = vrot.slane %v6140_v17, %v3842_v4  ;;  %v5184_v28 = vrot.slane %v6140_v17, %v3844_v5  ;;  %v6146_v17 = vld [vmem:[#allocation38_spill] sm:$0xff] }
 0x1e2   : > { %3355 = vrcp.f32 %v2796_v56  ;;  %v5187_v59 = vmul.f32 %v4559_v10, %v2054_v30  ;;  %v5190_v32 = vmul.f32 %v4563_v14, %v2055_v21  ;;  %v5193_v3 = vmul.f32 %v4572_v63, %v2056_v6 }
 0x1e3   : > { %3357 = vpow2.f32 %v2632_v54  ;;  %v1758_v60 = vmul.f32 %v5176_v40, %v6144_v50  ;;  %v1759_v12 = vmul.f32 %v5180_v1, %v6144_v50  ;;  %v1760_v54 = vmul.f32 %v5184_v28, %v6144_v50 }
 0x1e4   : > { %6141 = vst [vmem:[#allocation32_spill] sm:$0xff] %v5187_v59  ;;  %6142 = vst [vmem:[#allocation31_spill] sm:$0xff] %v5190_v32  ;;  %3359 = vpow2.f32 %v2634_v47  ;;  %v2335_v37 = vmul.f32 %v2216_v61, %v6108_v48  ;;  %v2336_v21 = vmul.f32 %v2216_v61, %v6110_v58  ;;  %v2337_v9 = vmul.f32 %v2216_v61, %v6113_v49 }
 0x1e5   : > { %6143 = vst [vmem:[#allocation43_spill] sm:$0xff] %v5193_v3  ;;  %3361 = vpow2.f32 %v2636_v27  ;;  %v1982_v23 = vadd.f32 %v6145_v45, %v1758_v60  ;;  %v1983_v57 = vadd.f32 %v6145_v45, %v1759_v12  ;;  %v1984_v56 = vadd.f32 %v6145_v45, %v1760_v54 }
 0x1e6   : > { %v2317_v47 = vmul.f32 %v2192_v35, %v6108_v48  ;;  %v2318_v6 = vmul.f32 %v2192_v35, %v6110_v58  ;;  %v2319_v27 = vmul.f32 %v2192_v35, %v6113_v49  ;;  %v5213_v50 = vrot.slane %v6146_v17, %v3842_v4 }
 0x1e7   : > { %v3346_v30 = vpop.eup %3345  ;;  %v5217_v61 = vrot.slane %v6146_v17, %v3844_v5  ;;  %v2094_v12 = vmul.f32 %v4559_v10, %v1982_v23  ;;  %v2095_v54 = vmul.f32 %v4563_v14, %v1983_v57  ;;  %v2096_v45 = vmul.f32 %v4572_v63, %v1984_v56 }
 0x1e8   : > { %v3348_v60 = vpop.eup %3347  ;;  %v2803_v3 = vadd.f32 1.0, %v3346_v30  ;;  %v5223_v35 = vadd.f32 %v2317_v47, %v6147_v16  ;;  %v5226_v4 = vadd.f32 %v2318_v6, %v6148_v7  ;;  %v5229_v53 = vadd.f32 %v2319_v27, %v6149_v33 }
 0x1e9   : > { %v3350_v32 = vpop.eup %3349  ;;  %v2804_v59 = vadd.f32 1.0, %v3348_v60  ;;  %v5236_v57 = vadd.f32 %v2335_v37, %v2094_v12  ;;  %v5238_v56 = vadd.f32 %v2336_v21, %v2095_v54  ;;  %v5241_v33 = vadd.f32 %v2337_v9, %v2096_v45  ;;  %v6150_v12 = vld [vmem:[#allocation26_spill] sm:$0xff]  ;;  %v6151_v54 = vld [vmem:[#allocation49_spill] sm:$0xff] }
 0x1ea   : > { %v3352_v5 = vpop.eup %3351  ;;  %v2805_v23 = vadd.f32 1.0, %v3350_v32  ;;  %3363 = vrcp.f32 %v2803_v3  ;;  %v2509_v47 = vsub.f32 0.0, %v5223_v35  ;;  %v2511_v9 = vsub.f32 0.0, %v5229_v53 }
 0x1eb   : > { %v3354_v16 = vpop.eup %3353  ;;  %v2986_v7 = vadd.f32 %v3352_v5, %v5076_v46  ;;  %3365 = vrcp.f32 %v2804_v59  ;;  %v2527_v32 = vsub.f32 0.0, %v5236_v57  ;;  %v2528_v3 = vsub.f32 0.0, %v5238_v56 }
 0x1ec   : > { %v3356_v30 = vpop.eup %3355  ;;  %v2987_v6 = vadd.f32 %v3354_v16, %v5085_v39  ;;  %3367 = vrcp.f32 %v2805_v23  ;;  %v2529_v46 = vsub.f32 0.0, %v5241_v33  ;;  %v2510_v59 = vsub.f32 0.0, %v5226_v4 }
 0x1ed   : > { %v3358_v37 = vpop.eup %3357  ;;  %v2988_v21 = vadd.f32 %v3356_v30, %v5088_v38  ;;  %3082 = vst [vmem:[%s5234_s16] sm:$0xff] %v2986_v7  ;;  %v2644_v39 = vmul.f32 1.442695, %v2527_v32  ;;  %v2646_v60 = vmul.f32 1.442695, %v2528_v3  ;;  %v1764_v45 = vmul.f32 %v6151_v54, %v6150_v12  ;;  %v2224_v30 = vpop.permute.xlu0 %2223  ;;  %v6152_v3 = vld [vmem:[#allocation34_spill] sm:$0xff] }
 0x1ee   : > { %v3360_v27 = vpop.eup %3359  ;;  %3083 = vst [vmem:[%s5234_s16 + $0x8] sm:$0xff] %v2987_v6  ;;  %v2809_v17 = vadd.f32 1.0, %v3358_v37  ;;  %v2648_v38 = vmul.f32 1.442695, %v2529_v46  ;;  %v2608_v16 = vmul.f32 1.442695, %v2509_v47  ;;  %v1765_v7 = vmul.f32 %v5213_v50, %v6150_v12 }
 0x1ef   : > { %v3362_v5 = vpop.eup %3361  ;;  %3085 = vst.msk [vmem:[%s5234_s16 + $0x10] sm:$0xff] %vm3084_vm2, %v2988_v21  ;;  %v2810_v23 = vadd.f32 1.0, %v3360_v27  ;;  %v2610_v26 = vmul.f32 1.442695, %v2510_v59  ;;  %v2612_v6 = vmul.f32 1.442695, %v2511_v9  ;;  %v1766_v32 = vmul.f32 %v5217_v61, %v6150_v12 }
 0x1f0   : > { %v2811_v52 = vadd.f32 1.0, %v3362_v5  ;;  %3369 = vrcp.f32 %v2809_v17  ;;  %v1988_v37 = vadd.f32 %v6152_v3, %v1764_v45  ;;  %v1989_v8 = vadd.f32 %v6152_v3, %v1765_v7  ;;  %v6153_v12 = vld [vmem:[#allocation22_spill] sm:$0xff] }
 0x1f1   : > { %3371 = vrcp.f32 %v2810_v23  ;;  %v2341_v21 = vmul.f32 %v2224_v30, %v6108_v48  ;;  %v2342_v47 = vmul.f32 %v2224_v30, %v6110_v58  ;;  %v2343_v46 = vmul.f32 %v2224_v30, %v6113_v49 }
 0x1f2   : > { %3373 = vrcp.f32 %v2811_v52  ;;  %v1990_v27 = vadd.f32 %v6152_v3, %v1766_v32  ;;  %v2100_v59 = vmul.f32 %v4559_v10, %v1988_v37  ;;  %v2101_v9 = vmul.f32 %v4563_v14, %v1989_v8  ;;  %v2196_v3 = vpop.permute.xlu1 %2195 }
 0x1f3   : > { %3375 = vpow2.f32 %v2644_v39  ;;  %v1743_v45 = vmul.f32 %v6125_v13, %v6153_v12  ;;  %v1744_v52 = vmul.f32 %v6126_v42, %v6153_v12  ;;  %v1745_v5 = vmul.f32 %v6128_v36, %v6153_v12  ;;  %v6154_v42 = vld [vmem:[#allocation9_spill] sm:$0xff] }
 0x1f4   : > { %v3364_v17 = vpop.eup %3363  ;;  %3377 = vpow2.f32 %v2646_v60  ;;  %v2102_v7 = vmul.f32 %v4572_v63, %v1990_v27  ;;  %v5277_v8 = vadd.f32 %v2341_v21, %v2100_v59  ;;  %v5280_v13 = vadd.f32 %v2342_v47, %v2101_v9 }
 0x1f5   : > { %v3366_v23 = vpop.eup %3365  ;;  %v2995_v39 = vadd.f32 %v3364_v17, %v5131_v34  ;;  %3379 = vpow2.f32 %v2648_v38  ;;  %v1967_v32 = vadd.f32 %v6154_v42, %v1743_v45  ;;  %v2321_v9 = vmul.f32 %v2196_v3, %v6110_v58  ;;  %v2232_v17 = vpop.permute.xlu0 %2231 }
 0x1f6   : > { %v3368_v60 = vpop.eup %3367  ;;  %v2996_v30 = vadd.f32 %v3366_v23, %v5137_v22  ;;  %3381 = vpow2.f32 %v2608_v16  ;;  %v5285_v34 = vadd.f32 %v2343_v46, %v2102_v7  ;;  %v2533_v38 = vsub.f32 0.0, %v5277_v8 }
 0x1f7   : > { %v2997_v36 = vadd.f32 %v3368_v60, %v5141_v44  ;;  %3092 = vst [vmem:[%s5234_s16 + $0x48] sm:$0xff] %v2995_v39  ;;  %3383 = vpow2.f32 %v2610_v26  ;;  %v2534_v37 = vsub.f32 0.0, %v5280_v13  ;;  %v1968_v22 = vadd.f32 %v6154_v42, %v1744_v52 }
 0x1f8   : > { %3093 = vst [vmem:[%s5234_s16 + $0x50] sm:$0xff] %v2996_v30  ;;  %3385 = vpow2.f32 %v2612_v6  ;;  %v1969_v16 = vadd.f32 %v6154_v42, %v1745_v5  ;;  %v2535_v21 = vsub.f32 0.0, %v5285_v34  ;;  %v2656_v47 = vmul.f32 1.442695, %v2533_v38 }
 0x1f9   : > { %3094 = vst.msk [vmem:[%s5234_s16 + $0x58] sm:$0xff] %vm3084_vm2, %v2997_v36  ;;  %v2079_v44 = vmul.f32 %v4559_v10, %v1967_v32  ;;  %v2320_v26 = vmul.f32 %v2196_v3, %v6108_v48  ;;  %v2658_v27 = vmul.f32 1.442695, %v2534_v37  ;;  %v2080_v59 = vmul.f32 %v4563_v14, %v1968_v22 }
 0x1fa   : > { %v3370_v46 = vpop.eup %3369  ;;  %v2081_v6 = vmul.f32 %v4572_v63, %v1969_v16  ;;  %3387 = vpow2.f32 %v2656_v47  ;;  %v2660_v52 = vmul.f32 1.442695, %v2535_v21  ;;  %v2322_v5 = vmul.f32 %v2196_v3, %v6113_v49 }
 0x1fb   : > { %v3372_v12 = vpop.eup %3371  ;;  %v3001_v45 = vadd.f32 %v3370_v46, %v5150_v24  ;;  %3389 = vpow2.f32 %v2658_v27  ;;  %v5303_v7 = vadd.f32 %v2320_v26, %v2079_v44  ;;  %v5305_v60 = vadd.f32 %v2321_v9, %v2080_v59 }
 0x1fc   : > { %v3374_v23 = vpop.eup %3373  ;;  %v3002_v39 = vadd.f32 %v3372_v12, %v5160_v62  ;;  %3391 = vpow2.f32 %v2660_v52  ;;  %v5309_v24 = vadd.f32 %v2322_v5, %v2081_v6  ;;  %v2347_v32 = vmul.f32 %v2232_v17, %v6108_v48 }
 0x1fd   : > { %v3376_v30 = vpop.eup %3375  ;;  %v3003_v42 = vadd.f32 %v3374_v23, %v5163_v43  ;;  %3098 = vst [vmem:[%s5234_s16 + $0x78] sm:$0xff] %v3001_v45  ;;  %v2512_v62 = vsub.f32 0.0, %v5303_v7  ;;  %v2513_v38 = vsub.f32 0.0, %v5305_v60  ;;  %v2348_v37 = vmul.f32 %v2232_v17, %v6110_v58 }
 0x1fe   : > { %v3378_v36 = vpop.eup %3377  ;;  %3099 = vst [vmem:[%s5234_s16 + $0x80] sm:$0xff] %v3002_v39  ;;  %v2815_v3 = vadd.f32 1.0, %v3376_v30  ;;  %v2514_v43 = vsub.f32 0.0, %v5309_v24  ;;  %v2349_v21 = vmul.f32 %v2232_v17, %v6113_v49  ;;  %v5321_v47 = vadd.f32 %v2347_v32, %v4829_v15  ;;  %v6155_v39 = vld [vmem:[#allocation24_spill] sm:$0xff] }
 0x1ff   : > { %v3380_v22 = vpop.eup %3379  ;;  %3100 = vst.msk [vmem:[%s5234_s16 + $0x88] sm:$0xff] %vm3084_vm2, %v3003_v42  ;;  %v2816_v16 = vadd.f32 1.0, %v3378_v36  ;;  %v2614_v46 = vmul.f32 1.442695, %v2512_v62  ;;  %v2616_v27 = vmul.f32 1.442695, %v2513_v38  ;;  %v5324_v12 = vadd.f32 %v2348_v37, %v4837_v29  ;;  %v2204_v38 = vpop.permute.xlu1 %2203 }
 0x200   : > { %v3382_v44 = vpop.eup %3381  ;;  %v2817_v26 = vadd.f32 1.0, %v3380_v22  ;;  %3393 = vrcp.f32 %v2815_v3  ;;  %v2618_v9 = vmul.f32 1.442695, %v2514_v43  ;;  %v5327_v17 = vadd.f32 %v2349_v21, %v4845_v51  ;;  %v6156_v30 = vld [vmem:[#allocation36_spill] sm:$0xff]  ;;  %v6157_v36 = vld [vmem:[#allocation37_spill] sm:$0xff] }
 0x201   : > { %v3384_v59 = vpop.eup %3383  ;;  %3395 = vrcp.f32 %v2816_v16  ;;  %v2797_v6 = vadd.f32 1.0, %v3382_v44  ;;  %v2539_v15 = vsub.f32 0.0, %v5321_v47  ;;  %v2540_v23 = vsub.f32 0.0, %v5324_v12  ;;  %v6158_v37 = vld [vmem:[#allocation40_spill] sm:$0xff]  ;;  %v6159_v16 = vld [vmem:[#allocation6_spill] sm:$0xff] }
 0x202   : > { %v3386_v45 = vpop.eup %3385  ;;  %3397 = vrcp.f32 %v2817_v26  ;;  %v2798_v52 = vadd.f32 1.0, %v3384_v59  ;;  %v1749_v42 = vmul.f32 %v6156_v30, %v6155_v39  ;;  %v2541_v32 = vsub.f32 0.0, %v5327_v17 }
 0x203   : > { %v2799_v5 = vadd.f32 1.0, %v3386_v45  ;;  %3399 = vrcp.f32 %v2797_v6  ;;  %v2668_v29 = vmul.f32 1.442695, %v2539_v15  ;;  %v1750_v3 = vmul.f32 %v6157_v36, %v6155_v39 }
 0x204   : > { %3401 = vrcp.f32 %v2798_v52  ;;  %v3388_v62 = vpop.eup %3387  ;;  %v2670_v51 = vmul.f32 1.442695, %v2540_v23  ;;  %v1751_v22 = vmul.f32 %v6158_v37, %v6155_v39  ;;  %v1973_v43 = vadd.f32 %v6159_v16, %v1749_v42 }
 0x205   : > { %3403 = vrcp.f32 %v2799_v5  ;;  %v3390_v21 = vpop.eup %3389  ;;  %v2821_v44 = vadd.f32 1.0, %v3388_v62  ;;  %v2672_v26 = vmul.f32 1.442695, %v2541_v32  ;;  %v1974_v59 = vadd.f32 %v6159_v16, %v1750_v3  ;;  %v2240_v5 = vpop.permute.xlu0 %2239 }
 0x206   : > { %3405 = vpow2.f32 %v2614_v46  ;;  %v3392_v6 = vpop.eup %3391  ;;  %v2822_v45 = vadd.f32 1.0, %v3390_v21  ;;  %v1975_v52 = vadd.f32 %v6159_v16, %v1751_v22  ;;  %v2085_v15 = vmul.f32 %v4559_v10, %v1973_v43 }
 0x207   : > { %3407 = vpow2.f32 %v2616_v27  ;;  %v2823_v23 = vadd.f32 1.0, %v3392_v6  ;;  %v2086_v39 = vmul.f32 %v4563_v14, %v1974_v59  ;;  %v2326_v30 = vmul.f32 %v2204_v38, %v6108_v48 }
 0x208   : > { %3409 = vrcp.f32 %v2821_v44  ;;  %v2087_v46 = vmul.f32 %v4572_v63, %v1975_v52  ;;  %v2327_v42 = vmul.f32 %v2204_v38, %v6110_v58  ;;  %v2328_v32 = vmul.f32 %v2204_v38, %v6113_v49 }
 0x209   : > { %3411 = vrcp.f32 %v2822_v45  ;;  %v5347_v27 = vadd.f32 %v2326_v30, %v2085_v15  ;;  %v2353_v3 = vmul.f32 %v2240_v5, %v6108_v48  ;;  %v2354_v62 = vmul.f32 %v2240_v5, %v6110_v58 }
 0x20a   : > { %v3394_v36 = vpop.eup %3393  ;;  %3413 = vrcp.f32 %v2823_v23  ;;  %v5352_v16 = vadd.f32 %v2327_v42, %v2086_v39  ;;  %v5354_v43 = vadd.f32 %v2328_v32, %v2087_v46  ;;  %v2355_v59 = vmul.f32 %v2240_v5, %v6113_v49  ;;  %v6160_v32 = vld [vmem:[#allocation25_spill] sm:$0xff] }
 0x20b   : > { %v3396_v37 = vpop.eup %3395  ;;  %v3007_v22 = vadd.f32 %v3394_v36, %v5236_v57  ;;  %3415 = vpow2.f32 %v2618_v9  ;;  %v2518_v44 = vsub.f32 0.0, %v5347_v27  ;;  %v5366_v15 = vadd.f32 %v2353_v3, %v4852_v55 }
 0x20c   : > { %v3398_v21 = vpop.eup %3397  ;;  %v3008_v38 = vadd.f32 %v3396_v37, %v5238_v56  ;;  %3417 = vpow2.f32 %v2668_v29  ;;  %v2519_v57 = vsub.f32 0.0, %v5352_v16  ;;  %v2520_v9 = vsub.f32 0.0, %v5354_v43 }
 0x20d   : > { %v3400_v6 = vpop.eup %3399  ;;  %v3009_v45 = vadd.f32 %v3398_v21, %v5241_v33  ;;  %3104 = vst [vmem:[%s5234_s16 + $0xa8] sm:$0xff] %v3007_v22  ;;  %3419 = vpow2.f32 %v2670_v51  ;;  %v2626_v29 = vmul.f32 1.442695, %v2518_v44  ;;  %v5372_v39 = vadd.f32 %v2354_v62, %v4855_v25 }
 0x20e   : > { %v3402_v52 = vpop.eup %3401  ;;  %3105 = vst [vmem:[%s5234_s16 + $0xb0] sm:$0xff] %v3008_v38  ;;  %v2989_v56 = vadd.f32 %v3400_v6, %v5223_v35  ;;  %3421 = vpow2.f32 %v2672_v26  ;;  %v2628_v51 = vmul.f32 1.442695, %v2519_v57  ;;  %v2630_v23 = vmul.f32 1.442695, %v2520_v9  ;;  %v2212_v38 = vpop.permute.xlu1 %2211 }
 0x20f   : > { %v3404_v5 = vpop.eup %3403  ;;  %3106 = vst.msk [vmem:[%s5234_s16 + $0xb8] sm:$0xff] %vm3084_vm2, %v3009_v45  ;;  %v2990_v33 = vadd.f32 %v3402_v52, %v5226_v4  ;;  %3423 = vpow2.f32 %v2626_v29  ;;  %v5377_v26 = vadd.f32 %v2355_v59, %v4861_v31  ;;  %v2545_v55 = vsub.f32 0.0, %v5366_v15 }
 0x210   : > { %v3406_v30 = vpop.eup %3405  ;;  %v2991_v35 = vadd.f32 %v3404_v5, %v5229_v53  ;;  %3086 = vst [vmem:[%s5234_s16 + $0x18] sm:$0xff] %v2989_v56  ;;  %3425 = vpow2.f32 %v2628_v51  ;;  %v2546_v4 = vsub.f32 0.0, %v5372_v39  ;;  %v1755_v25 = vmul.f32 %v5176_v40, %v6160_v32  ;;  %v2248_v51 = vpop.permute.xlu0 %2247 }
 0x211   : > { %v3408_v46 = vpop.eup %3407  ;;  %3087 = vst [vmem:[%s5234_s16 + $0x20] sm:$0xff] %v2990_v33  ;;  %v2800_v42 = vadd.f32 1.0, %v3406_v30  ;;  %3427 = vpow2.f32 %v2630_v23  ;;  %v2547_v31 = vsub.f32 0.0, %v5377_v26  ;;  %v2680_v3 = vmul.f32 1.442695, %v2545_v55 }
 0x212   : > { %v3410_v36 = vpop.eup %3409  ;;  %3088 = vst.msk [vmem:[%s5234_s16 + $0x28] sm:$0xff] %vm3084_vm2, %v2991_v35  ;;  %v2801_v53 = vadd.f32 1.0, %v3408_v46  ;;  %v2682_v22 = vmul.f32 1.442695, %v2546_v4  ;;  %v1756_v21 = vmul.f32 %v5180_v1, %v6160_v32  ;;  %v1757_v6 = vmul.f32 %v5184_v28, %v6160_v32 }
 0x213   : > { %v3412_v62 = vpop.eup %3411  ;;  %v3013_v37 = vadd.f32 %v3410_v36, %v5277_v8  ;;  %3429 = vrcp.f32 %v2800_v42  ;;  %v2684_v59 = vmul.f32 1.442695, %v2547_v31  ;;  %v6161_v8 = vld [vmem:[#allocation8_spill] sm:$0xff]  ;;  %v2332_v29 = vmul.f32 %v2212_v38, %v6108_v48 }
 0x214   : > { %v3414_v40 = vpop.eup %3413  ;;  %v3014_v44 = vadd.f32 %v3412_v62, %v5280_v13  ;;  %3431 = vrcp.f32 %v2801_v53  ;;  %v1979_v9 = vadd.f32 %v6161_v8, %v1755_v25  ;;  %v1980_v52 = vadd.f32 %v6161_v8, %v1756_v21 }
 0x215   : > { %v3416_v45 = vpop.eup %3415  ;;  %v3015_v57 = vadd.f32 %v3414_v40, %v5285_v34  ;;  %3110 = vst [vmem:[%s5234_s16 + $0xd8] sm:$0xff] %v3013_v37  ;;  %3433 = vpow2.f32 %v2680_v3  ;;  %v1981_v13 = vadd.f32 %v6161_v8, %v1757_v6  ;;  %v2333_v55 = vmul.f32 %v2212_v38, %v6110_v58 }
 0x216   : > { %v3418_v1 = vpop.eup %3417  ;;  %3111 = vst [vmem:[%s5234_s16 + $0xe0] sm:$0xff] %v3014_v44  ;;  %v2802_v56 = vadd.f32 1.0, %v3416_v45  ;;  %3435 = vpow2.f32 %v2682_v22  ;;  %v2091_v34 = vmul.f32 %v4559_v10, %v1979_v9  ;;  %v2092_v33 = vmul.f32 %v4563_v14, %v1980_v52 }
 0x217   : > { %v3420_v5 = vpop.eup %3419  ;;  %3112 = vst.msk [vmem:[%s5234_s16 + $0xe8] sm:$0xff] %vm3084_vm2, %v3015_v57  ;;  %v2827_v28 = vadd.f32 1.0, %v3418_v1  ;;  %3437 = vpow2.f32 %v2684_v59  ;;  %v2093_v35 = vmul.f32 %v4572_v63, %v1981_v13  ;;  %v2334_v42 = vmul.f32 %v2212_v38, %v6113_v49 }
 0x218   : > { %v3422_v23 = vpop.eup %3421  ;;  %3439 = vrcp.f32 %v2802_v56  ;;  %v2828_v30 = vadd.f32 1.0, %v3420_v5  ;;  %v5407_v4 = vadd.f32 %v2332_v29, %v2091_v34  ;;  %v5409_v25 = vadd.f32 %v2333_v55, %v2092_v33 }
 0x219   : > { %v2829_v46 = vadd.f32 1.0, %v3422_v23  ;;  %3441 = vrcp.f32 %v2827_v28  ;;  %v3424_v32 = vpop.eup %3423  ;;  %v2359_v36 = vmul.f32 %v2248_v51, %v6108_v48  ;;  %v2360_v53 = vmul.f32 %v2248_v51, %v6110_v58 }
 0x21a   : > { %3443 = vrcp.f32 %v2828_v30  ;;  %v3426_v31 = vpop.eup %3425  ;;  %v2806_v3 = vadd.f32 1.0, %v3424_v32  ;;  %v5413_v62 = vadd.f32 %v2334_v42, %v2093_v35  ;;  %v2524_v37 = vsub.f32 0.0, %v5407_v4 }
 0x21b   : > { %3445 = vrcp.f32 %v2829_v46  ;;  %v3428_v22 = vpop.eup %3427  ;;  %v2807_v21 = vadd.f32 1.0, %v3426_v31  ;;  %v2525_v38 = vsub.f32 0.0, %v5409_v25  ;;  %v2361_v40 = vmul.f32 %v2248_v51, %v6113_v49  ;;  %v2220_v46 = vpop.permute.xlu1 %2219 }
 0x21c   : > { %v5419_v44 = vadd.f32 %v2359_v36, %v4900_v2  ;;  %v2808_v6 = vadd.f32 1.0, %v3428_v22  ;;  %3447 = vrcp.f32 %v2806_v3  ;;  %v2526_v45 = vsub.f32 0.0, %v5413_v62 }
 0x21d   : > { %v3430_v59 = vpop.eup %3429  ;;  %v2638_v57 = vmul.f32 1.442695, %v2524_v37  ;;  %3449 = vrcp.f32 %v2807_v21  ;;  %v2640_v52 = vmul.f32 1.442695, %v2525_v38  ;;  %v5424_v1 = vadd.f32 %v2360_v53, %v4904_v11  ;;  %v6163_v37 = vld [vmem:[#allocation10_spill] sm:$0xff] }
 0x21e   : > { %v3432_v8 = vpop.eup %3431  ;;  %v2992_v9 = vadd.f32 %v3430_v59, %v5303_v7  ;;  %3451 = vrcp.f32 %v2808_v6  ;;  %v2642_v13 = vmul.f32 1.442695, %v2526_v45  ;;  %v5428_v29 = vadd.f32 %v2361_v40, %v4913_v20  ;;  %v2256_v59 = vpop.permute.xlu0 %2255 }
 0x21f   : > { %v3434_v56 = vpop.eup %3433  ;;  %v2993_v2 = vadd.f32 %v3432_v8, %v5305_v60  ;;  %3453 = vpow2.f32 %v2638_v57  ;;  %v2551_v7 = vsub.f32 0.0, %v5419_v44  ;;  %v2552_v34 = vsub.f32 0.0, %v5424_v1  ;;  %v6162_v60 = vld [vmem:[#allocation28_spill] sm:$0xff] }
 0x220   : > { %v3436_v5 = vpop.eup %3435  ;;  %3089 = vst [vmem:[%s5234_s16 + $0x30] sm:$0xff] %v2992_v9  ;;  %v2833_v28 = vadd.f32 1.0, %v3434_v56  ;;  %3455 = vpow2.f32 %v2640_v52  ;;  %v2553_v51 = vsub.f32 0.0, %v5428_v29  ;;  %v1761_v23 = vmul.f32 %v6151_v54, %v6162_v60 }
 0x221   : > { %v3438_v33 = vpop.eup %3437  ;;  %3090 = vst [vmem:[%s5234_s16 + $0x38] sm:$0xff] %v2993_v2  ;;  %v2834_v11 = vadd.f32 1.0, %v3436_v5  ;;  %v2692_v35 = vmul.f32 1.442695, %v2551_v7  ;;  %v2694_v55 = vmul.f32 1.442695, %v2552_v34  ;;  %v1762_v53 = vmul.f32 %v5213_v50, %v6162_v60 }
 0x222   : > { %v3440_v30 = vpop.eup %3439  ;;  %v2835_v20 = vadd.f32 1.0, %v3438_v33  ;;  %3457 = vrcp.f32 %v2833_v28  ;;  %v2696_v36 = vmul.f32 1.442695, %v2553_v51  ;;  %v1763_v54 = vmul.f32 %v5217_v61, %v6162_v60 }
 0x223   : > { %v3442_v42 = vpop.eup %3441  ;;  %v2994_v32 = vadd.f32 %v3440_v30, %v5309_v24  ;;  %3459 = vrcp.f32 %v2834_v11  ;;  %v1985_v22 = vadd.f32 %v6163_v37, %v1761_v23  ;;  %v1986_v38 = vadd.f32 %v6163_v37, %v1762_v53 }
 0x224   : > { %v3444_v31 = vpop.eup %3443  ;;  %v3019_v3 = vadd.f32 %v3442_v42, %v5321_v47  ;;  %3461 = vrcp.f32 %v2835_v20  ;;  %v2338_v50 = vmul.f32 %v2220_v46, %v6108_v48  ;;  %v1987_v40 = vadd.f32 %v6163_v37, %v1763_v54 }
 0x225   : > { %v3446_v21 = vpop.eup %3445  ;;  %3091 = vst.msk [vmem:[%s5234_s16 + $0x40] sm:$0xff] %vm3084_vm2, %v2994_v32  ;;  %v3020_v24 = vadd.f32 %v3444_v31, %v5324_v12  ;;  %3463 = vpow2.f32 %v2642_v13  ;;  %v2097_v61 = vmul.f32 %v4559_v10, %v1985_v22  ;;  %v2098_v12 = vmul.f32 %v4563_v14, %v1986_v38  ;;  %v2228_v32 = vpop.permute.xlu1 %2227 }
 0x226   : > { %v3021_v47 = vadd.f32 %v3446_v21, %v5327_v17  ;;  %3116 = vst [vmem:[%s5234_s16 + $0x108] sm:$0xff] %v3019_v3  ;;  %3465 = vpow2.f32 %v2692_v35  ;;  %v3448_v6 = vpop.eup %3447  ;;  %v2339_v45 = vmul.f32 %v2220_v46, %v6110_v58  ;;  %v2340_v57 = vmul.f32 %v2220_v46, %v6113_v49  ;;  %v2264_v38 = vpop.permute.xlu0 %2263 }
 0x227   : > { %3117 = vst [vmem:[%s5234_s16 + $0x110] sm:$0xff] %v3020_v24  ;;  %3467 = vpow2.f32 %v2694_v55  ;;  %v3450_v8 = vpop.eup %3449  ;;  %v2998_v17 = vadd.f32 %v3448_v6, %v5347_v27  ;;  %v2099_v10 = vmul.f32 %v4572_v63, %v1987_v40  ;;  %v5461_v9 = vadd.f32 %v2338_v50, %v2097_v61 }
 0x228   : > { %3118 = vst.msk [vmem:[%s5234_s16 + $0x118] sm:$0xff] %vm3084_vm2, %v3021_v47  ;;  %3469 = vpow2.f32 %v2696_v36  ;;  %v3452_v52 = vpop.eup %3451  ;;  %v2999_v56 = vadd.f32 %v3450_v8, %v5352_v16  ;;  %v5464_v2 = vadd.f32 %v2339_v45, %v2098_v12  ;;  %v2365_v13 = vmul.f32 %v2256_v59, %v6108_v48  ;;  %v6164_v12 = vld [vmem:[#allocation16_spill] sm:$0xff]  ;;  %v6165_v8 = vld [vmem:[#allocation55_spill] sm:$0xff] }
 0x229   : > { %v2366_v5 = vmul.f32 %v2256_v59, %v6110_v58  ;;  %v3454_v28 = vpop.eup %3453  ;;  %v3000_v7 = vadd.f32 %v3452_v52, %v5354_v43  ;;  %3095 = vst [vmem:[%s5234_s16 + $0x60] sm:$0xff] %v2998_v17  ;;  %v5470_v27 = vadd.f32 %v2340_v57, %v2099_v10  ;;  %v2530_v34 = vsub.f32 0.0, %v5461_v9  ;;  %v6166_v52 = vld [vmem:[#allocation56_spill] sm:$0xff] }
 0x22a   : > { %v2367_v33 = vmul.f32 %v2256_v59, %v6113_v49  ;;  %v3456_v11 = vpop.eup %3455  ;;  %3096 = vst [vmem:[%s5234_s16 + $0x68] sm:$0xff] %v2999_v56  ;;  %v2812_v16 = vadd.f32 1.0, %v3454_v28  ;;  %v2531_v51 = vsub.f32 0.0, %v5464_v2  ;;  %v5477_v60 = vadd.f32 %v2365_v13, %v4916_v41 }
 0x22b   : > { %v5480_v23 = vadd.f32 %v2366_v5, %v4923_v18  ;;  %3097 = vst.msk [vmem:[%s5234_s16 + $0x70] sm:$0xff] %vm3084_vm2, %v3000_v7  ;;  %v2813_v43 = vadd.f32 1.0, %v3456_v11  ;;  %v2532_v20 = vsub.f32 0.0, %v5470_v27  ;;  %v2650_v35 = vmul.f32 1.442695, %v2530_v34 }
 0x22c   : > { %v3458_v30 = vpop.eup %3457  ;;  %v5486_v55 = vadd.f32 %v2367_v33, %v4934_v0  ;;  %3471 = vrcp.f32 %v2812_v16  ;;  %v2652_v41 = vmul.f32 1.442695, %v2531_v51  ;;  %v2557_v18 = vsub.f32 0.0, %v5477_v60  ;;  %v6167_v16 = vld [vmem:[#allocation72_spill] sm:$0xff] }
 0x22d   : > { %v3460_v46 = vpop.eup %3459  ;;  %v3025_v42 = vadd.f32 %v3458_v30, %v5366_v15  ;;  %3473 = vrcp.f32 %v2813_v43  ;;  %v2654_v31 = vmul.f32 1.442695, %v2532_v20  ;;  %v2558_v3 = vsub.f32 0.0, %v5480_v23  ;;  %v6168_v20 = vld [vmem:[#allocation73_spill] sm:$0xff] }
 0x22e   : > { %v3462_v36 = vpop.eup %3461  ;;  %v3026_v53 = vadd.f32 %v3460_v46, %v5372_v39  ;;  %3475 = vpow2.f32 %v2650_v35  ;;  %v2559_v15 = vsub.f32 0.0, %v5486_v55  ;;  %v2704_v37 = vmul.f32 1.442695, %v2557_v18 }
 0x22f   : > { %v3464_v54 = vpop.eup %3463  ;;  %v3027_v0 = vadd.f32 %v3462_v36, %v5377_v26  ;;  %3122 = vst [vmem:[%s5234_s16 + $0x138] sm:$0xff] %v3025_v42  ;;  %3477 = vpow2.f32 %v2652_v41  ;;  %v2706_v24 = vmul.f32 1.442695, %v2558_v3  ;;  %v2344_v39 = vmul.f32 %v2228_v32, %v6108_v48  ;;  %v2236_v42 = vpop.permute.xlu1 %2235 }
 0x230   : > { %v3466_v22 = vpop.eup %3465  ;;  %3123 = vst [vmem:[%s5234_s16 + $0x140] sm:$0xff] %v3026_v53  ;;  %v2814_v21 = vadd.f32 1.0, %v3464_v54  ;;  %3479 = vpow2.f32 %v2654_v31  ;;  %v2708_v40 = vmul.f32 1.442695, %v2559_v15  ;;  %v2345_v26 = vmul.f32 %v2228_v32, %v6110_v58 }
 0x231   : > { %v3468_v50 = vpop.eup %3467  ;;  %3124 = vst.msk [vmem:[%s5234_s16 + $0x148] sm:$0xff] %vm3084_vm2, %v3027_v0  ;;  %v2839_v47 = vadd.f32 1.0, %v3466_v22  ;;  %v2346_v6 = vmul.f32 %v2228_v32, %v6113_v49  ;;  %v5502_v45 = vadd.f32 %v2344_v39, %v6164_v12  ;;  %v2371_v10 = vmul.f32 %v2264_v38, %v6108_v48 }
 0x232   : > { %v3470_v61 = vpop.eup %3469  ;;  %3481 = vrcp.f32 %v2814_v21  ;;  %v2840_v59 = vadd.f32 1.0, %v3468_v50  ;;  %v5505_v17 = vadd.f32 %v2345_v26, %v6165_v8  ;;  %v2372_v5 = vmul.f32 %v2264_v38, %v6110_v58 }
 0x233   : > { %v2841_v57 = vadd.f32 1.0, %v3470_v61  ;;  %3483 = vrcp.f32 %v2839_v47  ;;  %v5509_v56 = vadd.f32 %v2346_v6, %v6166_v52  ;;  %v2536_v13 = vsub.f32 0.0, %v5502_v45  ;;  %v6169_v47 = vld [vmem:[#allocation50_spill] sm:$0xff] }
 0x234   : > { %3485 = vrcp.f32 %v2840_v59  ;;  %v2537_v28 = vsub.f32 0.0, %v5505_v17  ;;  %v2373_v7 = vmul.f32 %v2264_v38, %v6113_v49  ;;  %v5516_v34 = vadd.f32 %v2371_v10, %v4972_v19  ;;  %v6170_v59 = vld [vmem:[#allocation52_spill] sm:$0xff]  ;;  %v6171_v10 = vld [vmem:[#allocation53_spill] sm:$0xff] }
 0x235   : > { %3487 = vrcp.f32 %v2841_v57  ;;  %v2538_v33 = vsub.f32 0.0, %v5509_v56  ;;  %v2662_v11 = vmul.f32 1.442695, %v2536_v13  ;;  %v5520_v51 = vadd.f32 %v2372_v5, %v6167_v16 }
 0x236   : > { %3489 = vpow2.f32 %v2704_v37  ;;  %v3472_v30 = vpop.eup %3471  ;;  %v2664_v43 = vmul.f32 1.442695, %v2537_v28  ;;  %v5523_v35 = vadd.f32 %v2373_v7, %v6168_v20  ;;  %v2563_v46 = vsub.f32 0.0, %v5516_v34 }
 0x237   : > { %3491 = vpow2.f32 %v2706_v24  ;;  %v3474_v41 = vpop.eup %3473  ;;  %v3004_v19 = vadd.f32 %v3472_v30, %v5407_v4  ;;  %v2666_v18 = vmul.f32 1.442695, %v2538_v33  ;;  %v2564_v32 = vsub.f32 0.0, %v5520_v51  ;;  %v2272_v4 = vpop.permute.xlu0 %2271 }
 0x238   : > { %3493 = vpow2.f32 %v2708_v40  ;;  %v3476_v36 = vpop.eup %3475  ;;  %v3005_v53 = vadd.f32 %v3474_v41, %v5409_v25  ;;  %v2565_v31 = vsub.f32 0.0, %v5523_v35  ;;  %v2716_v3 = vmul.f32 1.442695, %v2563_v46  ;;  %v2244_v46 = vpop.permute.xlu1 %2243 }
 0x239   : > { %3495 = vpow2.f32 %v2662_v11  ;;  %v3478_v54 = vpop.eup %3477  ;;  %3101 = vst [vmem:[%s5234_s16 + $0x90] sm:$0xff] %v3004_v19  ;;  %v2818_v0 = vadd.f32 1.0, %v3476_v36  ;;  %v2718_v15 = vmul.f32 1.442695, %v2564_v32  ;;  %v2350_v37 = vmul.f32 %v2236_v42, %v6108_v48 }
 0x23a   : > { %3497 = vpow2.f32 %v2664_v43  ;;  %v3480_v22 = vpop.eup %3479  ;;  %3102 = vst [vmem:[%s5234_s16 + $0x98] sm:$0xff] %v3005_v53  ;;  %v2819_v21 = vadd.f32 1.0, %v3478_v54  ;;  %v2720_v24 = vmul.f32 1.442695, %v2565_v31  ;;  %v2351_v39 = vmul.f32 %v2236_v42, %v6110_v58  ;;  %v6173_v53 = vld [vmem:[#allocation75_spill] sm:$0xff] }
 0x23b   : > { %3499 = vpow2.f32 %v2666_v18  ;;  %v2820_v38 = vadd.f32 1.0, %v3480_v22  ;;  %v2352_v50 = vmul.f32 %v2236_v42, %v6113_v49  ;;  %v5536_v40 = vadd.f32 %v2350_v37, %v6169_v47 }
 0x23c   : > { %v3482_v25 = vpop.eup %3481  ;;  %3501 = vrcp.f32 %v2818_v0  ;;  %v5540_v6 = vadd.f32 %v2351_v39, %v6170_v59  ;;  %v2377_v12 = vmul.f32 %v2272_v4, %v6108_v48  ;;  %v2378_v7 = vmul.f32 %v2272_v4, %v6110_v58 }
 0x23d   : > { %v3484_v26 = vpop.eup %3483  ;;  %v3006_v61 = vadd.f32 %v3482_v25, %v5413_v62  ;;  %3503 = vrcp.f32 %v2819_v21  ;;  %v5545_v52 = vadd.f32 %v2352_v50, %v6171_v10  ;;  %v2542_v13 = vsub.f32 0.0, %v5536_v40 }
 0x23e   : > { %v3486_v57 = vpop.eup %3485  ;;  %v3031_v8 = vadd.f32 %v3484_v26, %v5419_v44  ;;  %3505 = vrcp.f32 %v2820_v38  ;;  %v2543_v28 = vsub.f32 0.0, %v5540_v6  ;;  %v5564_v31 = vadd.f32 %v2378_v7, %v6173_v53  ;;  %v2280_v26 = vpop.permute.xlu0 %2279 }
 0x23f   : > { %v3488_v5 = vpop.eup %3487  ;;  %3103 = vst.msk [vmem:[%s5234_s16 + $0xa0] sm:$0xff] %vm3084_vm2, %v3006_v61  ;;  %v3032_v62 = vadd.f32 %v3486_v57, %v5424_v1  ;;  %3507 = vpow2.f32 %v2716_v3  ;;  %v2544_v11 = vsub.f32 0.0, %v5545_v52  ;;  %v2674_v16 = vmul.f32 1.442695, %v2542_v13  ;;  %v6174_v3 = vld [vmem:[#allocation77_spill] sm:$0xff] }
 0x240   : > { %v3490_v33 = vpop.eup %3489  ;;  %v3033_v44 = vadd.f32 %v3488_v5, %v5428_v29  ;;  %3128 = vst [vmem:[%s5234_s16 + $0x168] sm:$0xff] %v3031_v8  ;;  %3509 = vpow2.f32 %v2718_v15  ;;  %v2676_v20 = vmul.f32 1.442695, %v2543_v28  ;;  %v2379_v1 = vmul.f32 %v2272_v4, %v6113_v49  ;;  %v6172_v29 = vld [vmem:[#allocation74_spill] sm:$0xff]  ;;  %v6175_v5 = vld [vmem:[#allocation17_spill] sm:$0xff] }
 0x241   : > { %v3492_v30 = vpop.eup %3491  ;;  %3129 = vst [vmem:[%s5234_s16 + $0x170] sm:$0xff] %v3032_v62  ;;  %v2845_v43 = vadd.f32 1.0, %v3490_v33  ;;  %3511 = vpow2.f32 %v2720_v24  ;;  %v2678_v19 = vmul.f32 1.442695, %v2544_v11  ;;  %v5561_v18 = vadd.f32 %v2377_v12, %v6172_v29 }
 0x242   : > { %v3494_v42 = vpop.eup %3493  ;;  %3130 = vst.msk [vmem:[%s5234_s16 + $0x178] sm:$0xff] %vm3084_vm2, %v3033_v44  ;;  %v2846_v41 = vadd.f32 1.0, %v3492_v30  ;;  %3513 = vpow2.f32 %v2674_v16  ;;  %v5567_v54 = vadd.f32 %v2379_v1, %v6174_v3  ;;  %v2356_v4 = vmul.f32 %v2244_v46, %v6108_v48  ;;  %v6177_v16 = vld [vmem:[#allocation61_spill] sm:$0xff] }
 0x243   : > { %v3496_v32 = vpop.eup %3495  ;;  %v2847_v36 = vadd.f32 1.0, %v3494_v42  ;;  %3515 = vrcp.f32 %v2845_v43  ;;  %v2569_v37 = vsub.f32 0.0, %v5561_v18  ;;  %v2570_v24 = vsub.f32 0.0, %v5564_v31 }
 0x244   : > { %v3498_v0 = vpop.eup %3497  ;;  %3517 = vrcp.f32 %v2846_v41  ;;  %v2824_v15 = vadd.f32 1.0, %v3496_v32  ;;  %v2571_v39 = vsub.f32 0.0, %v5567_v54  ;;  %v2357_v47 = vmul.f32 %v2244_v46, %v6110_v58 }
 0x245   : > { %v3500_v22 = vpop.eup %3499  ;;  %3519 = vrcp.f32 %v2847_v36  ;;  %v2825_v21 = vadd.f32 1.0, %v3498_v0  ;;  %v2728_v50 = vmul.f32 1.442695, %v2569_v37  ;;  %v2730_v12 = vmul.f32 1.442695, %v2570_v24  ;;  %v2252_v0 = vpop.permute.xlu1 %2251 }
 0x246   : > { %v3502_v25 = vpop.eup %3501  ;;  %v2826_v38 = vadd.f32 1.0, %v3500_v22  ;;  %3521 = vrcp.f32 %v2824_v15  ;;  %v2732_v57 = vmul.f32 1.442695, %v2571_v39  ;;  %v2358_v13 = vmul.f32 %v2244_v46, %v6113_v49  ;;  %v6178_v22 = vld [vmem:[#allocation81_spill] sm:$0xff] }
 0x247   : > { %v3504_v61 = vpop.eup %3503  ;;  %v3010_v59 = vadd.f32 %v3502_v25, %v5461_v9  ;;  %3523 = vrcp.f32 %v2825_v21  ;;  %v5578_v62 = vadd.f32 %v2356_v4, %v6175_v5  ;;  %v6176_v9 = vld [vmem:[#allocation60_spill] sm:$0xff]  ;;  %v2383_v44 = vmul.f32 %v2280_v26, %v6108_v48  ;;  %v6179_v25 = vld [vmem:[#allocation15_spill] sm:$0xff] }
 0x248   : > { %v3506_v8 = vpop.eup %3505  ;;  %v3011_v10 = vadd.f32 %v3504_v61, %v5464_v2  ;;  %3525 = vrcp.f32 %v2826_v38  ;;  %v5583_v33 = vadd.f32 %v2357_v47, %v6176_v9  ;;  %v5588_v30 = vadd.f32 %v2358_v13, %v6177_v16 }
 0x249   : > { %v3508_v28 = vpop.eup %3507  ;;  %v3012_v7 = vadd.f32 %v3506_v8, %v5470_v27  ;;  %3107 = vst [vmem:[%s5234_s16 + $0xc0] sm:$0xff] %v3010_v59  ;;  %3527 = vpow2.f32 %v2676_v20  ;;  %v2548_v43 = vsub.f32 0.0, %v5578_v62  ;;  %v2384_v46 = vmul.f32 %v2280_v26, %v6110_v58 }
 0x24a   : > { %v3510_v11 = vpop.eup %3509  ;;  %3108 = vst [vmem:[%s5234_s16 + $0xc8] sm:$0xff] %v3011_v10  ;;  %v2851_v2 = vadd.f32 1.0, %v3508_v28  ;;  %3529 = vpow2.f32 %v2678_v19  ;;  %v2549_v20 = vsub.f32 0.0, %v5583_v33  ;;  %v2550_v29 = vsub.f32 0.0, %v5588_v30 }
 0x24b   : > { %v3512_v1 = vpop.eup %3511  ;;  %3109 = vst.msk [vmem:[%s5234_s16 + $0xd0] sm:$0xff] %vm3084_vm2, %v3012_v7  ;;  %v2852_v27 = vadd.f32 1.0, %v3510_v11  ;;  %3531 = vpow2.f32 %v2728_v50  ;;  %v2686_v19 = vmul.f32 1.442695, %v2548_v43  ;;  %v2385_v3 = vmul.f32 %v2280_v26, %v6113_v49  ;;  %v6180_v50 = vld [vmem:[#allocation54_spill] sm:$0xff]  ;;  %v2288_v7 = vpop.permute.xlu0 %2287 }
 0x24c   : > { %v3514_v42 = vpop.eup %3513  ;;  %v2853_v41 = vadd.f32 1.0, %v3512_v1  ;;  %3533 = vrcp.f32 %v2851_v2  ;;  %v2688_v53 = vmul.f32 1.442695, %v2549_v20  ;;  %v2690_v4 = vmul.f32 1.442695, %v2550_v29  ;;  %v6182_v20 = vld [vmem:[#allocation58_spill] sm:$0xff] }
 0x24d   : > { %v3516_v32 = vpop.eup %3515  ;;  %3535 = vrcp.f32 %v2852_v27  ;;  %v2830_v36 = vadd.f32 1.0, %v3514_v42  ;;  %v5599_v21 = vadd.f32 %v2383_v44, %v6178_v22  ;;  %v5603_v38 = vadd.f32 %v2384_v46, %v6179_v25  ;;  %v6183_v29 = vld [vmem:[#allocation59_spill] sm:$0xff] }
 0x24e   : > { %v3518_v15 = vpop.eup %3517  ;;  %v3037_v37 = vadd.f32 %v3516_v32, %v5477_v60  ;;  %3537 = vrcp.f32 %v2853_v41  ;;  %v5606_v47 = vadd.f32 %v2385_v3, %v6180_v50  ;;  %v2362_v59 = vmul.f32 %v2252_v0, %v6108_v48  ;;  %v2260_v50 = vpop.permute.xlu1 %2259 }
 0x24f   : > { %v3520_v24 = vpop.eup %3519  ;;  %v3038_v39 = vadd.f32 %v3518_v15, %v5480_v23  ;;  %3539 = vrcp.f32 %v2830_v36  ;;  %v2575_v61 = vsub.f32 0.0, %v5599_v21  ;;  %v2576_v10 = vsub.f32 0.0, %v5603_v38 }
 0x250   : > { %v3522_v26 = vpop.eup %3521  ;;  %v3039_v60 = vadd.f32 %v3520_v24, %v5486_v55  ;;  %3134 = vst [vmem:[%s5234_s16 + $0x198] sm:$0xff] %v3037_v37  ;;  %3541 = vpow2.f32 %v2730_v12  ;;  %v2577_v13 = vsub.f32 0.0, %v5606_v47  ;;  %v2363_v28 = vmul.f32 %v2252_v0, %v6110_v58 }
 0x251   : > { %v3524_v8 = vpop.eup %3523  ;;  %3135 = vst [vmem:[%s5234_s16 + $0x1a0] sm:$0xff] %v3038_v39  ;;  %v3016_v23 = vadd.f32 %v3522_v26, %v5502_v45  ;;  %3543 = vpow2.f32 %v2732_v57  ;;  %v2740_v12 = vmul.f32 1.442695, %v2575_v61  ;;  %v2742_v57 = vmul.f32 1.442695, %v2576_v10  ;;  %v6184_v61 = vld [vmem:[#allocation11_spill] sm:$0xff] }
 0x252   : > { %v3526_v5 = vpop.eup %3525  ;;  %3136 = vst.msk [vmem:[%s5234_s16 + $0x1a8] sm:$0xff] %vm3084_vm2, %v3039_v60  ;;  %v3017_v55 = vadd.f32 %v3524_v8, %v5505_v17  ;;  %3545 = vpow2.f32 %v2686_v19  ;;  %v2744_v44 = vmul.f32 1.442695, %v2577_v13  ;;  %v2364_v16 = vmul.f32 %v2252_v0, %v6113_v49  ;;  %v6181_v17 = vld [vmem:[#allocation57_spill] sm:$0xff] }
 0x253   : > { %v3528_v9 = vpop.eup %3527  ;;  %v3018_v45 = vadd.f32 %v3526_v5, %v5509_v56  ;;  %3113 = vst [vmem:[%s5234_s16 + $0xf0] sm:$0xff] %v3016_v23  ;;  %3547 = vpow2.f32 %v2688_v53  ;;  %v5625_v43 = vadd.f32 %v2362_v59, %v6181_v17  ;;  %v5630_v56 = vadd.f32 %v2363_v28, %v6182_v20  ;;  %v6185_v23 = vld [vmem:[#allocation35_spill] sm:$0xff]  ;;  %v6186_v13 = vld [vmem:[#allocation41_spill] sm:$0xff]  ;;  %v2296_v17 = vpop.permute.xlu0 %2295 }
 0x254   : > { %v3530_v11 = vpop.eup %3529  ;;  %3114 = vst [vmem:[%s5234_s16 + $0xf8] sm:$0xff] %v3017_v55  ;;  %v2831_v2 = vadd.f32 1.0, %v3528_v9  ;;  %3549 = vpow2.f32 %v2690_v4  ;;  %v2389_v46 = vmul.f32 %v2288_v7, %v6108_v48  ;;  %v5634_v19 = vadd.f32 %v2364_v16, %v6183_v29 }
 0x255   : > { %v3532_v1 = vpop.eup %3531  ;;  %3115 = vst.msk [vmem:[%s5234_s16 + $0x100] sm:$0xff] %vm3084_vm2, %v3018_v45  ;;  %v2832_v27 = vadd.f32 1.0, %v3530_v11  ;;  %3551 = vpow2.f32 %v2740_v12  ;;  %v2554_v32 = vsub.f32 0.0, %v5625_v43  ;;  %v2555_v3 = vsub.f32 0.0, %v5630_v56 }
 0x256   : > { %v3534_v42 = vpop.eup %3533  ;;  %3553 = vrcp.f32 %v2831_v2  ;;  %v2857_v41 = vadd.f32 1.0, %v3532_v1  ;;  %v2390_v0 = vmul.f32 %v2288_v7, %v6110_v58  ;;  %v2556_v4 = vsub.f32 0.0, %v5634_v19 }
 0x257   : > { %v3536_v36 = vpop.eup %3535  ;;  %v3043_v53 = vadd.f32 %v3534_v42, %v5516_v34  ;;  %3555 = vrcp.f32 %v2832_v27  ;;  %v2698_v22 = vmul.f32 1.442695, %v2554_v32  ;;  %v2700_v34 = vmul.f32 1.442695, %v2555_v3  ;;  %v6187_v32 = vld [vmem:[#allocation64_spill] sm:$0xff] }
 0x258   : > { %v3538_v15 = vpop.eup %3537  ;;  %v3044_v37 = vadd.f32 %v3536_v36, %v5520_v51  ;;  %3557 = vrcp.f32 %v2857_v41  ;;  %v2391_v25 = vmul.f32 %v2288_v7, %v6113_v49  ;;  %v2702_v51 = vmul.f32 1.442695, %v2556_v4 }
 0x259   : > { %v3540_v24 = vpop.eup %3539  ;;  %v3045_v39 = vadd.f32 %v3538_v15, %v5523_v35  ;;  %3140 = vst [vmem:[%s5234_s16 + $0x1c8] sm:$0xff] %v3043_v53  ;;  %3559 = vpow2.f32 %v2742_v57  ;;  %v5648_v59 = vadd.f32 %v2389_v46, %v6184_v61  ;;  %v5653_v10 = vadd.f32 %v2390_v0, %v6185_v23  ;;  %v6188_v0 = vld [vmem:[#allocation18_spill] sm:$0xff] }
 0x25a   : > { %v3542_v26 = vpop.eup %3541  ;;  %3141 = vst [vmem:[%s5234_s16 + $0x1d0] sm:$0xff] %v3044_v37  ;;  %v3022_v60 = vadd.f32 %v3540_v24, %v5536_v40  ;;  %3561 = vpow2.f32 %v2744_v44  ;;  %v5656_v5 = vadd.f32 %v2391_v25, %v6186_v13  ;;  %v2368_v28 = vmul.f32 %v2260_v50, %v6108_v48  ;;  %v6189_v24 = vld [vmem:[#allocation66_spill] sm:$0xff] }
 0x25b   : > { %v3544_v8 = vpop.eup %3543  ;;  %3142 = vst.msk [vmem:[%s5234_s16 + $0x1d8] sm:$0xff] %vm3084_vm2, %v3045_v39  ;;  %v2858_v35 = vadd.f32 1.0, %v3542_v26  ;;  %3563 = vpow2.f32 %v2698_v22  ;;  %v2581_v40 = vsub.f32 0.0, %v5648_v59  ;;  %v2582_v45 = vsub.f32 0.0, %v5653_v10 }
 0x25c   : > { %v3546_v55 = vpop.eup %3545  ;;  %3119 = vst [vmem:[%s5234_s16 + $0x120] sm:$0xff] %v3022_v60  ;;  %v2859_v12 = vadd.f32 1.0, %v3544_v8  ;;  %3565 = vpow2.f32 %v2700_v34  ;;  %v2583_v57 = vsub.f32 0.0, %v5656_v5  ;;  %v2369_v16 = vmul.f32 %v2260_v50, %v6110_v58 }
 0x25d   : > { %v3548_v7 = vpop.eup %3547  ;;  %3567 = vrcp.f32 %v2858_v35  ;;  %v2836_v9 = vadd.f32 1.0, %v3546_v55  ;;  %v2752_v2 = vmul.f32 1.442695, %v2581_v40  ;;  %v2754_v20 = vmul.f32 1.442695, %v2582_v45 }
 0x25e   : > { %v3550_v44 = vpop.eup %3549  ;;  %3569 = vrcp.f32 %v2859_v12  ;;  %v2837_v11 = vadd.f32 1.0, %v3548_v7  ;;  %v2756_v46 = vmul.f32 1.442695, %v2583_v57  ;;  %v2370_v29 = vmul.f32 %v2260_v50, %v6113_v49  ;;  %v6191_v57 = vld [vmem:[#allocation30_spill] sm:$0xff] }
 0x25f   : > { %v3552_v1 = vpop.eup %3551  ;;  %v2838_v27 = vadd.f32 1.0, %v3550_v44  ;;  %3571 = vrcp.f32 %v2836_v9  ;;  %v5666_v36 = vadd.f32 %v2368_v28, %v6187_v32  ;;  %v5670_v15 = vadd.f32 %v2369_v16, %v6188_v0  ;;  %v6190_v28 = vld [vmem:[#allocation42_spill] sm:$0xff]  ;;  %v2304_v0 = vpop.permute.xlu0 %2303 }
 0x260   : > { %v3554_v42 = vpop.eup %3553  ;;  %3573 = vrcp.f32 %v2837_v11  ;;  %v2863_v41 = vadd.f32 1.0, %v3552_v1  ;;  %v2395_v37 = vmul.f32 %v2296_v17, %v6108_v48  ;;  %v5675_v39 = vadd.f32 %v2370_v29, %v6189_v24  ;;  %v6192_v11 = vld [vmem:[#allocation23_spill] sm:$0xff] }
 0x261   : > { %v3556_v53 = vpop.eup %3555  ;;  %v3023_v3 = vadd.f32 %v3554_v42, %v5540_v6  ;;  %3575 = vrcp.f32 %v2838_v27  ;;  %v2560_v34 = vsub.f32 0.0, %v5666_v36  ;;  %v2561_v50 = vsub.f32 0.0, %v5670_v15 }
 0x262   : > { %v3558_v4 = vpop.eup %3557  ;;  %v3024_v22 = vadd.f32 %v3556_v53, %v5545_v52  ;;  %3577 = vrcp.f32 %v2863_v41  ;;  %v2396_v26 = vmul.f32 %v2296_v17, %v6110_v58  ;;  %v2562_v61 = vsub.f32 0.0, %v5675_v39 }
 0x263   : > { %v3560_v25 = vpop.eup %3559  ;;  %3120 = vst [vmem:[%s5234_s16 + $0x128] sm:$0xff] %v3023_v3  ;;  %v3049_v6 = vadd.f32 %v3558_v4, %v5561_v18  ;;  %3579 = vpow2.f32 %v2702_v51  ;;  %v2710_v8 = vmul.f32 1.442695, %v2560_v34  ;;  %v2712_v13 = vmul.f32 1.442695, %v2561_v50  ;;  %v2268_v51 = vpop.permute.xlu1 %2267 }
 0x264   : > { %v3562_v60 = vpop.eup %3561  ;;  %3121 = vst.msk [vmem:[%s5234_s16 + $0x130] sm:$0xff] %vm3084_vm2, %v3024_v22  ;;  %v2864_v52 = vadd.f32 1.0, %v3560_v25  ;;  %3581 = vpow2.f32 %v2752_v2  ;;  %v2397_v18 = vmul.f32 %v2296_v17, %v6113_v49  ;;  %v2714_v40 = vmul.f32 1.442695, %v2562_v61  ;;  %v6195_v61 = vld [vmem:[#allocation65_spill] sm:$0xff] }
 0x265   : > { %v3564_v35 = vpop.eup %3563  ;;  %3146 = vst [vmem:[%s5234_s16 + $0x1f8] sm:$0xff] %v3049_v6  ;;  %v2865_v23 = vadd.f32 1.0, %v3562_v60  ;;  %3583 = vpow2.f32 %v2754_v20  ;;  %v5688_v7 = vadd.f32 %v2395_v37, %v6190_v28  ;;  %v5691_v44 = vadd.f32 %v2396_v26, %v6191_v57 }
 0x266   : > { %v3566_v55 = vpop.eup %3565  ;;  %3585 = vrcp.f32 %v2864_v52  ;;  %v2842_v12 = vadd.f32 1.0, %v3564_v35  ;;  %v5694_v2 = vadd.f32 %v2397_v18, %v6192_v11  ;;  %v2374_v27 = vmul.f32 %v2268_v51, %v6108_v48 }
 0x267   : > { %v3568_v9 = vpop.eup %3567  ;;  %3587 = vrcp.f32 %v2865_v23  ;;  %v2843_v45 = vadd.f32 1.0, %v3566_v55  ;;  %v2587_v1 = vsub.f32 0.0, %v5688_v7  ;;  %v2588_v41 = vsub.f32 0.0, %v5691_v44  ;;  %v2276_v11 = vpop.permute.xlu1 %2275 }
 0x268   : > { %v3570_v16 = vpop.eup %3569  ;;  %v3050_v17 = vadd.f32 %v3568_v9, %v5564_v31  ;;  %3589 = vrcp.f32 %v2842_v12  ;;  %v2589_v29 = vsub.f32 0.0, %v5694_v2  ;;  %v2375_v3 = vmul.f32 %v2268_v51, %v6110_v58 }
 0x269   : > { %v3572_v20 = vpop.eup %3571  ;;  %v3051_v42 = vadd.f32 %v3570_v16, %v5567_v54  ;;  %3591 = vrcp.f32 %v2843_v45  ;;  %v2764_v31 = vmul.f32 1.442695, %v2587_v1  ;;  %v2766_v4 = vmul.f32 1.442695, %v2588_v41 }
 0x26a   : > { %v3574_v32 = vpop.eup %3573  ;;  %3147 = vst [vmem:[%s5234_s16 + $0x200] sm:$0xff] %v3050_v17  ;;  %v3028_v53 = vadd.f32 %v3572_v20, %v5578_v62  ;;  %3593 = vpow2.f32 %v2756_v46  ;;  %v2768_v22 = vmul.f32 1.442695, %v2589_v29  ;;  %v2376_v62 = vmul.f32 %v2268_v51, %v6113_v49  ;;  %v6193_v46 = vld [vmem:[#allocation62_spill] sm:$0xff] }
 0x26b   : > { %v3576_v37 = vpop.eup %3575  ;;  %3148 = vst.msk [vmem:[%s5234_s16 + $0x208] sm:$0xff] %vm3084_vm2, %v3051_v42  ;;  %v3029_v54 = vadd.f32 %v3574_v32, %v5583_v33  ;;  %3595 = vpow2.f32 %v2710_v8  ;;  %v5712_v25 = vadd.f32 %v2374_v27, %v6193_v46  ;;  %v6194_v33 = vld [vmem:[#allocation63_spill] sm:$0xff]  ;;  %v2401_v60 = vmul.f32 %v2304_v0, %v6108_v48  ;;  %v6196_v27 = vld [vmem:[#allocation14_spill] sm:$0xff] }
 0x26c   : > { %v3578_v24 = vpop.eup %3577  ;;  %v3030_v34 = vadd.f32 %v3576_v37, %v5588_v30  ;;  %3125 = vst [vmem:[%s5234_s16 + $0x150] sm:$0xff] %v3028_v53  ;;  %3597 = vpow2.f32 %v2712_v13  ;;  %v5717_v26 = vadd.f32 %v2375_v3, %v6194_v33  ;;  %v5723_v8 = vadd.f32 %v2376_v62, %v6195_v61  ;;  %v6198_v32 = vld [vmem:[#allocation51_spill] sm:$0xff]  ;;  %v2312_v62 = vpop.permute.xlu0 %2311 }
 0x26d   : > { %v3580_v6 = vpop.eup %3579  ;;  %3126 = vst [vmem:[%s5234_s16 + $0x158] sm:$0xff] %v3029_v54  ;;  %v3055_v50 = vadd.f32 %v3578_v24, %v5599_v21  ;;  %3599 = vpow2.f32 %v2714_v40  ;;  %v2566_v35 = vsub.f32 0.0, %v5712_v25  ;;  %v2402_v18 = vmul.f32 %v2304_v0, %v6110_v58  ;;  %v6199_v61 = vld [vmem:[#allocation67_spill] sm:$0xff] }
 0x26e   : > { %v3582_v52 = vpop.eup %3581  ;;  %3127 = vst.msk [vmem:[%s5234_s16 + $0x160] sm:$0xff] %vm3084_vm2, %v3030_v34  ;;  %v2844_v30 = vadd.f32 1.0, %v3580_v6  ;;  %3601 = vpow2.f32 %v2764_v31  ;;  %v2567_v21 = vsub.f32 0.0, %v5717_v26  ;;  %v2568_v12 = vsub.f32 0.0, %v5723_v8 }
 0x26f   : > { %v3584_v23 = vpop.eup %3583  ;;  %3152 = vst [vmem:[%s5234_s16 + $0x228] sm:$0xff] %v3055_v50  ;;  %v2869_v13 = vadd.f32 1.0, %v3582_v52  ;;  %3603 = vpow2.f32 %v2766_v4  ;;  %v2722_v40 = vmul.f32 1.442695, %v2566_v35  ;;  %v2403_v57 = vmul.f32 %v2304_v0, %v6113_v49 }
 0x270   : > { %v3586_v51 = vpop.eup %3585  ;;  %3605 = vrcp.f32 %v2844_v30  ;;  %v2870_v55 = vadd.f32 1.0, %v3584_v23  ;;  %v2724_v45 = vmul.f32 1.442695, %v2567_v21  ;;  %v2726_v1 = vmul.f32 1.442695, %v2568_v12  ;;  %v6200_v21 = vld [vmem:[#allocation68_spill] sm:$0xff] }
 0x271   : > { %v3588_v28 = vpop.eup %3587  ;;  %v3056_v9 = vadd.f32 %v3586_v51, %v5603_v38  ;;  %3607 = vrcp.f32 %v2869_v13  ;;  %v5734_v20 = vadd.f32 %v2401_v60, %v6196_v27  ;;  %v6197_v38 = vld [vmem:[#allocation13_spill] sm:$0xff]  ;;  %v5742_v53 = vadd.f32 %v2403_v57, %v6198_v32 }
 0x272   : > { %v3590_v16 = vpop.eup %3589  ;;  %v3057_v17 = vadd.f32 %v3588_v28, %v5606_v47  ;;  %3609 = vrcp.f32 %v2870_v55  ;;  %v5739_v29 = vadd.f32 %v2402_v18, %v6197_v38  ;;  %v2380_v0 = vmul.f32 %v2276_v11, %v6108_v48 }
 0x273   : > { %v3592_v42 = vpop.eup %3591  ;;  %3153 = vst [vmem:[%s5234_s16 + $0x230] sm:$0xff] %v3056_v9  ;;  %v3034_v41 = vadd.f32 %v3590_v16, %v5625_v43  ;;  %3611 = vpow2.f32 %v2768_v22  ;;  %v2593_v3 = vsub.f32 0.0, %v5734_v20  ;;  %v2595_v4 = vsub.f32 0.0, %v5742_v53 }
 0x274   : > { %v3594_v31 = vpop.eup %3593  ;;  %3154 = vst.msk [vmem:[%s5234_s16 + $0x238] sm:$0xff] %vm3084_vm2, %v3057_v17  ;;  %v3035_v47 = vadd.f32 %v3592_v42, %v5630_v56  ;;  %3613 = vpow2.f32 %v2722_v40  ;;  %v2594_v54 = vsub.f32 0.0, %v5739_v29  ;;  %v2381_v56 = vmul.f32 %v2276_v11, %v6110_v58  ;;  %v6201_v40 = vld [vmem:[#allocation70_spill] sm:$0xff] }
 0x275   : > { %v3596_v37 = vpop.eup %3595  ;;  %3131 = vst [vmem:[%s5234_s16 + $0x180] sm:$0xff] %v3034_v41  ;;  %v2871_v43 = vadd.f32 1.0, %v3594_v31  ;;  %3615 = vpow2.f32 %v2724_v45  ;;  %v2776_v34 = vmul.f32 1.442695, %v2593_v3  ;;  %v2780_v33 = vmul.f32 1.442695, %v2595_v4  ;;  %v2284_v41 = vpop.permute.xlu1 %2283 }
 0x276   : > { %v3598_v22 = vpop.eup %3597  ;;  %3132 = vst [vmem:[%s5234_s16 + $0x188] sm:$0xff] %v3035_v47  ;;  %v2848_v24 = vadd.f32 1.0, %v3596_v37  ;;  %3617 = vpow2.f32 %v2726_v1  ;;  %v2778_v50 = vmul.f32 1.442695, %v2594_v54  ;;  %v2382_v30 = vmul.f32 %v2276_v11, %v6113_v49  ;;  %v6203_v4 = vld [vmem:[#allocation31_spill] sm:$0xff] }
 0x277   : > { %v3600_v46 = vpop.eup %3599  ;;  %3619 = vrcp.f32 %v2871_v43  ;;  %v2849_v6 = vadd.f32 1.0, %v3598_v22  ;;  %v5756_v35 = vadd.f32 %v2380_v0, %v6199_v61  ;;  %v5759_v18 = vadd.f32 %v2381_v56, %v6200_v21  ;;  %v6202_v0 = vld [vmem:[#allocation32_spill] sm:$0xff] }
 0x278   : > { %v3602_v60 = vpop.eup %3601  ;;  %v2850_v52 = vadd.f32 1.0, %v3600_v46  ;;  %3621 = vrcp.f32 %v2848_v24  ;;  %v2407_v51 = vmul.f32 %v2312_v62, %v6108_v48  ;;  %v5763_v28 = vadd.f32 %v2382_v30, %v6201_v40 }
 0x279   : > { %v3604_v23 = vpop.eup %3603  ;;  %3623 = vrcp.f32 %v2849_v6  ;;  %v2875_v13 = vadd.f32 1.0, %v3602_v60  ;;  %v2572_v9 = vsub.f32 0.0, %v5756_v35  ;;  %v2573_v11 = vsub.f32 0.0, %v5759_v18 }
 0x27a   : > { %v3606_v55 = vpop.eup %3605  ;;  %3625 = vrcp.f32 %v2850_v52  ;;  %v2876_v12 = vadd.f32 1.0, %v3604_v23  ;;  %v2408_v16 = vmul.f32 %v2312_v62, %v6110_v58  ;;  %v2574_v27 = vsub.f32 0.0, %v5763_v28 }
 0x27b   : > { %v3608_v45 = vpop.eup %3607  ;;  %v3036_v57 = vadd.f32 %v3606_v55, %v5634_v19  ;;  %3627 = vrcp.f32 %v2875_v13  ;;  %v2734_v42 = vmul.f32 1.442695, %v2572_v9  ;;  %v2736_v32 = vmul.f32 1.442695, %v2573_v11  ;;  %v2292_v13 = vpop.permute.xlu1 %2291 }
 0x27c   : > { %v3610_v17 = vpop.eup %3609  ;;  %v3061_v1 = vadd.f32 %v3608_v45, %v5648_v59  ;;  %3629 = vrcp.f32 %v2876_v12  ;;  %v2409_v31 = vmul.f32 %v2312_v62, %v6113_v49  ;;  %v2738_v59 = vmul.f32 1.442695, %v2574_v27  ;;  %v6205_v45 = vld [vmem:[#allocation69_spill] sm:$0xff] }
 0x27d   : > { %v3612_v38 = vpop.eup %3611  ;;  %3133 = vst.msk [vmem:[%s5234_s16 + $0x190] sm:$0xff] %vm3084_vm2, %v3036_v57  ;;  %v3062_v19 = vadd.f32 %v3610_v17, %v5653_v10  ;;  %3631 = vpow2.f32 %v2776_v34  ;;  %v5777_v37 = vadd.f32 %v2407_v51, %v6202_v0  ;;  %v5781_v22 = vadd.f32 %v2408_v16, %v6203_v4  ;;  %v6204_v10 = vld [vmem:[#allocation43_spill] sm:$0xff] }
 0x27e   : > { %v3614_v47 = vpop.eup %3613  ;;  %3158 = vst [vmem:[%s5234_s16 + $0x258] sm:$0xff] %v3061_v1  ;;  %v2877_v3 = vadd.f32 1.0, %v3612_v38  ;;  %3633 = vpow2.f32 %v2778_v50  ;;  %v5784_v24 = vadd.f32 %v2409_v31, %v6204_v10  ;;  %v2386_v46 = vmul.f32 %v2284_v41, %v6108_v48 }
 0x27f   : > { %v3616_v43 = vpop.eup %3615  ;;  %3159 = vst [vmem:[%s5234_s16 + $0x260] sm:$0xff] %v3062_v19  ;;  %v2854_v54 = vadd.f32 1.0, %v3614_v47  ;;  %3635 = vpow2.f32 %v2780_v33  ;;  %v2599_v62 = vsub.f32 0.0, %v5777_v37  ;;  %v2600_v60 = vsub.f32 0.0, %v5781_v22  ;;  %v2300_v0 = vpop.permute.xlu1 %2299 }
 0x280   : > { %v3618_v34 = vpop.eup %3617  ;;  %3637 = vrcp.f32 %v2877_v3  ;;  %v2855_v56 = vadd.f32 1.0, %v3616_v43  ;;  %v2601_v33 = vsub.f32 0.0, %v5784_v24  ;;  %v2387_v23 = vmul.f32 %v2284_v41, %v6110_v58 }
 0x281   : > { %v3620_v6 = vpop.eup %3619  ;;  %v2856_v50 = vadd.f32 1.0, %v3618_v34  ;;  %3639 = vrcp.f32 %v2854_v54  ;;  %v2788_v61 = vmul.f32 1.442695, %v2599_v62  ;;  %v2790_v55 = vmul.f32 1.442695, %v2600_v60  ;;  %v6208_v62 = vld [vmem:[#allocation76_spill] sm:$0xff] }
 0x282   : > { %v3622_v52 = vpop.eup %3621  ;;  %v3063_v30 = vadd.f32 %v3620_v6, %v5656_v5  ;;  %3641 = vrcp.f32 %v2855_v56  ;;  %v2792_v12 = vmul.f32 1.442695, %v2601_v33  ;;  %v2388_v5 = vmul.f32 %v2284_v41, %v6113_v49  ;;  %v6209_v60 = vld [vmem:[#allocation78_spill] sm:$0xff] }
 0x283   : > { %v3624_v21 = vpop.eup %3623  ;;  %v3040_v51 = vadd.f32 %v3622_v52, %v5666_v36  ;;  %3643 = vrcp.f32 %v2856_v50  ;;  %v5798_v57 = vadd.f32 %v2386_v46, %v6205_v45  ;;  %v6206_v36 = vld [vmem:[#allocation20_spill] sm:$0xff]  ;;  %v2392_v1 = vmul.f32 %v2292_v13, %v6108_v48  ;;  %v6210_v52 = vld [vmem:[#allocation79_spill] sm:$0xff] }
 0x284   : > { %v3626_v40 = vpop.eup %3625  ;;  %3160 = vst.msk [vmem:[%s5234_s16 + $0x268] sm:$0xff] %vm3084_vm2, %v3063_v30  ;;  %v3041_v9 = vadd.f32 %v3624_v21, %v5670_v15  ;;  %3645 = vpow2.f32 %v2734_v42  ;;  %v5803_v17 = vadd.f32 %v2387_v23, %v6206_v36  ;;  %v6207_v42 = vld [vmem:[#allocation71_spill] sm:$0xff]  ;;  %v2393_v31 = vmul.f32 %v2292_v13, %v6110_v58 }
 0x285   : > { %v3628_v11 = vpop.eup %3627  ;;  %v3042_v16 = vadd.f32 %v3626_v40, %v5675_v39  ;;  %3137 = vst [vmem:[%s5234_s16 + $0x1b0] sm:$0xff] %v3040_v51  ;;  %3647 = vpow2.f32 %v2736_v32  ;;  %v5809_v41 = vadd.f32 %v2388_v5, %v6207_v42  ;;  %v2578_v38 = vsub.f32 0.0, %v5798_v57 }
 0x286   : > { %v3630_v27 = vpop.eup %3629  ;;  %3138 = vst [vmem:[%s5234_s16 + $0x1b8] sm:$0xff] %v3041_v9  ;;  %v3067_v15 = vadd.f32 %v3628_v11, %v5688_v7  ;;  %3649 = vpow2.f32 %v2738_v59  ;;  %v2579_v32 = vsub.f32 0.0, %v5803_v17  ;;  %v5822_v46 = vadd.f32 %v2392_v1, %v6208_v62 }
 0x287   : > { %v3632_v39 = vpop.eup %3631  ;;  %3139 = vst.msk [vmem:[%s5234_s16 + $0x1c0] sm:$0xff] %vm3084_vm2, %v3042_v16  ;;  %v3068_v19 = vadd.f32 %v3630_v27, %v5691_v44  ;;  %3651 = vpow2.f32 %v2788_v61  ;;  %v2580_v3 = vsub.f32 0.0, %v5809_v41  ;;  %v2746_v59 = vmul.f32 1.442695, %v2578_v38  ;;  %v2308_v16 = vpop.permute.xlu1 %2307 }
 0x288   : > { %v3634_v47 = vpop.eup %3633  ;;  %3164 = vst [vmem:[%s5234_s16 + $0x288] sm:$0xff] %v3067_v15  ;;  %v2881_v7 = vadd.f32 1.0, %v3632_v39  ;;  %3653 = vpow2.f32 %v2790_v55  ;;  %v2748_v4 = vmul.f32 1.442695, %v2579_v32  ;;  %v2394_v44 = vmul.f32 %v2292_v13, %v6113_v49  ;;  %v6211_v55 = vld [vmem:[#allocation12_spill] sm:$0xff] }
 0x289   : > { %v3636_v43 = vpop.eup %3635  ;;  %3165 = vst [vmem:[%s5234_s16 + $0x290] sm:$0xff] %v3068_v19  ;;  %v2882_v54 = vadd.f32 1.0, %v3634_v47  ;;  %3655 = vpow2.f32 %v2792_v12  ;;  %v2750_v56 = vmul.f32 1.442695, %v2580_v3  ;;  %v5826_v33 = vadd.f32 %v2393_v31, %v6209_v60  ;;  %v6212_v12 = vld [vmem:[#allocation7_spill] sm:$0xff]  ;;  %v6213_v15 = vld [vmem:[#allocation80_spill] sm:$0xff] }
 0x28a   : > { %v3638_v10 = vpop.eup %3637  ;;  %v2883_v34 = vadd.f32 1.0, %v3636_v43  ;;  %3657 = vrcp.f32 %v2881_v7  ;;  %v5829_v30 = vadd.f32 %v2394_v44, %v6210_v52  ;;  %v2584_v13 = vsub.f32 0.0, %v5822_v46  ;;  %v6214_v19 = vld [vmem:[#allocation21_spill] sm:$0xff] }
 0x28b   : > { %v3640_v6 = vpop.eup %3639  ;;  %v3069_v50 = vadd.f32 %v3638_v10, %v5694_v2  ;;  %3659 = vrcp.f32 %v2882_v54  ;;  %v2398_v21 = vmul.f32 %v2300_v0, %v6108_v48  ;;  %v2164_v2 = vmul.f32 %v4563_v14, %v6211_v55  ;;  %v6215_v3 = vld [vmem:[#allocation29_spill] sm:$0xff] }
 0x28c   : > { %v3642_v61 = vpop.eup %3641  ;;  %v3046_v23 = vadd.f32 %v3640_v6, %v5712_v25  ;;  %3661 = vrcp.f32 %v2883_v34  ;;  %v2165_v40 = vmul.f32 %v4572_v63, %v6212_v12  ;;  %v2758_v45 = vmul.f32 1.442695, %v2584_v13 }
 0x28d   : > { %v3644_v51 = vpop.eup %3643  ;;  %3166 = vst.msk [vmem:[%s5234_s16 + $0x298] sm:$0xff] %vm3084_vm2, %v3069_v50  ;;  %v3047_v9 = vadd.f32 %v3642_v61, %v5717_v26  ;;  %3663 = vpow2.f32 %v2746_v59  ;;  %v2399_v11 = vmul.f32 %v2300_v0, %v6110_v58  ;;  %v2585_v63 = vsub.f32 0.0, %v5826_v33 }
 0x28e   : > { %v3646_v25 = vpop.eup %3645  ;;  %v3048_v5 = vadd.f32 %v3644_v51, %v5723_v8  ;;  %3143 = vst [vmem:[%s5234_s16 + $0x1e0] sm:$0xff] %v3046_v23  ;;  %3665 = vpow2.f32 %v2748_v4  ;;  %v2586_v1 = vsub.f32 0.0, %v5829_v30  ;;  %v2400_v8 = vmul.f32 %v2300_v0, %v6113_v49  ;;  %v6216_v23 = vld [vmem:[#allocation39_spill] sm:$0xff] }
 0x28f   : > { %v3648_v36 = vpop.eup %3647  ;;  %3144 = vst [vmem:[%s5234_s16 + $0x1e8] sm:$0xff] %v3047_v9  ;;  %v2860_v14 = vadd.f32 1.0, %v3646_v25  ;;  %3667 = vpow2.f32 %v2750_v56  ;;  %v5851_v42 = vadd.f32 %v2398_v21, %v6213_v15  ;;  %v5854_v32 = vadd.f32 %v2399_v11, %v6214_v19 }
 0x290   : > { %v3650_v26 = vpop.eup %3649  ;;  %3145 = vst.msk [vmem:[%s5234_s16 + $0x1f0] sm:$0xff] %vm3084_vm2, %v3048_v5  ;;  %v2861_v27 = vadd.f32 1.0, %v3648_v36  ;;  %3669 = vpow2.f32 %v2758_v45  ;;  %v2404_v31 = vmul.f32 %v2308_v16, %v6108_v48  ;;  %v5858_v59 = vadd.f32 %v2400_v8, %v6215_v3 }
 0x291   : > { %v3652_v38 = vpop.eup %3651  ;;  %v2862_v39 = vadd.f32 1.0, %v3650_v26  ;;  %3671 = vrcp.f32 %v2860_v14  ;;  %v2590_v43 = vsub.f32 0.0, %v5851_v42  ;;  %v2760_v4 = vmul.f32 1.442695, %v2585_v63 }
 0x292   : > { %v3654_v47 = vpop.eup %3653  ;;  %3673 = vrcp.f32 %v2861_v27  ;;  %v2887_v7 = vadd.f32 1.0, %v3652_v38  ;;  %v2405_v44 = vmul.f32 %v2308_v16, %v6110_v58  ;;  %v2762_v56 = vmul.f32 1.442695, %v2586_v1 }
 0x293   : > { %v3656_v0 = vpop.eup %3655  ;;  %3675 = vrcp.f32 %v2862_v39  ;;  %v2888_v54 = vadd.f32 1.0, %v3654_v47  ;;  %v2591_v48 = vsub.f32 0.0, %v5854_v32  ;;  %v2770_v50 = vmul.f32 1.442695, %v2590_v43 }
 0x294   : > { %v3658_v10 = vpop.eup %3657  ;;  %v2889_v34 = vadd.f32 1.0, %v3656_v0  ;;  %3677 = vrcp.f32 %v2887_v7  ;;  %v2406_v60 = vmul.f32 %v2308_v16, %v6113_v49  ;;  %v2592_v58 = vsub.f32 0.0, %v5858_v59 }
 0x295   : > { %v3660_v62 = vpop.eup %3659  ;;  %v3073_v6 = vadd.f32 %v3658_v10, %v5734_v20  ;;  %3679 = vrcp.f32 %v2888_v54  ;;  %v5868_v13 = vadd.f32 %v2404_v31, %v6216_v23  ;;  %v5872_v20 = vadd.f32 %v2405_v44, %v2164_v2 }
 0x296   : > { %v3662_v52 = vpop.eup %3661  ;;  %v3074_v61 = vadd.f32 %v3660_v62, %v5739_v29  ;;  %3681 = vrcp.f32 %v2889_v34  ;;  %v5874_v55 = vadd.f32 %v2406_v60, %v2165_v40  ;;  %v2772_v2 = vmul.f32 1.442695, %v2591_v48 }
 0x297   : > { %v3664_v21 = vpop.eup %3663  ;;  %v3075_v51 = vadd.f32 %v3662_v52, %v5742_v53  ;;  %3170 = vst [vmem:[%s5234_s16 + $0x2b8] sm:$0xff] %v3073_v6  ;;  %3683 = vpow2.f32 %v2760_v4  ;;  %v2596_v29 = vsub.f32 0.0, %v5868_v13  ;;  %v2597_v5 = vsub.f32 0.0, %v5872_v20 }
 0x298   : > { %v3666_v49 = vpop.eup %3665  ;;  %3171 = vst [vmem:[%s5234_s16 + $0x2c0] sm:$0xff] %v3074_v61  ;;  %v2866_v12 = vadd.f32 1.0, %v3664_v21  ;;  %3685 = vpow2.f32 %v2762_v56  ;;  %v2598_v40 = vsub.f32 0.0, %v5874_v55  ;;  %v2774_v36 = vmul.f32 1.442695, %v2592_v58 }
 0x299   : > { %v3668_v9 = vpop.eup %3667  ;;  %3172 = vst.msk [vmem:[%s5234_s16 + $0x2c8] sm:$0xff] %vm3084_vm2, %v3075_v51  ;;  %v2867_v25 = vadd.f32 1.0, %v3666_v49  ;;  %3687 = vpow2.f32 %v2770_v50  ;;  %v2782_v1 = vmul.f32 1.442695, %v2596_v29  ;;  %v2784_v8 = vmul.f32 1.442695, %v2597_v5 }
 0x29a   : > { %v3670_v53 = vpop.eup %3669  ;;  %v2868_v45 = vadd.f32 1.0, %v3668_v9  ;;  %3689 = vrcp.f32 %v2866_v12  ;;  %v2786_v39 = vmul.f32 1.442695, %v2598_v40 }
 0x29b   : > { %v3672_v11 = vpop.eup %3671  ;;  %3691 = vrcp.f32 %v2867_v25  ;;  %v2872_v16 = vadd.f32 1.0, %v3670_v53 }
 0x29c   : > { %v3674_v14 = vpop.eup %3673  ;;  %v3052_v63 = vadd.f32 %v3672_v11, %v5756_v35  ;;  %3693 = vrcp.f32 %v2868_v45 }
 0x29d   : > { %v3676_v26 = vpop.eup %3675  ;;  %v3053_v27 = vadd.f32 %v3674_v14, %v5759_v18  ;;  %3695 = vrcp.f32 %v2872_v16 }
 0x29e   : > { %v3678_v15 = vpop.eup %3677  ;;  %v3054_v38 = vadd.f32 %v3676_v26, %v5763_v28  ;;  %3149 = vst [vmem:[%s5234_s16 + $0x210] sm:$0xff] %v3052_v63  ;;  %3697 = vpow2.f32 %v2772_v2 }
 0x29f   : > { %v3680_v19 = vpop.eup %3679  ;;  %3150 = vst [vmem:[%s5234_s16 + $0x218] sm:$0xff] %v3053_v27  ;;  %v3079_v35 = vadd.f32 %v3678_v15, %v5777_v37  ;;  %3699 = vpow2.f32 %v2774_v36 }
 0x2a0   : > { %v3682_v31 = vpop.eup %3681  ;;  %3151 = vst.msk [vmem:[%s5234_s16 + $0x220] sm:$0xff] %vm3084_vm2, %v3054_v38  ;;  %v3080_v18 = vadd.f32 %v3680_v19, %v5781_v22  ;;  %3701 = vpow2.f32 %v2782_v1 }
 0x2a1   : > { %v3684_v47 = vpop.eup %3683  ;;  %v3081_v7 = vadd.f32 %v3682_v31, %v5784_v24  ;;  %3176 = vst [vmem:[%s5234_s16 + $0x2e8] sm:$0xff] %v3079_v35  ;;  %3703 = vpow2.f32 %v2784_v8 }
 0x2a2   : > { %v3686_v28 = vpop.eup %3685  ;;  %3177 = vst [vmem:[%s5234_s16 + $0x2f0] sm:$0xff] %v3080_v18  ;;  %v2873_v3 = vadd.f32 1.0, %v3684_v47  ;;  %3705 = vpow2.f32 %v2786_v39 }
 0x2a3   : > { %v3688_v43 = vpop.eup %3687  ;;  %3178 = vst.msk [vmem:[%s5234_s16 + $0x2f8] sm:$0xff] %vm3084_vm2, %v3081_v7  ;;  %v2874_v37 = vadd.f32 1.0, %v3686_v28 }
 0x2a4   : > { %v3690_v0 = vpop.eup %3689  ;;  %3707 = vrcp.f32 %v2873_v3  ;;  %v2878_v22 = vadd.f32 1.0, %v3688_v43 }
 0x2a5   : > { %v3692_v54 = vpop.eup %3691  ;;  %v3058_v24 = vadd.f32 %v3690_v0, %v5798_v57  ;;  %3709 = vrcp.f32 %v2874_v37 }
 0x2a6   : > { %v3694_v4 = vpop.eup %3693  ;;  %v3059_v44 = vadd.f32 %v3692_v54, %v5803_v17  ;;  %3711 = vrcp.f32 %v2878_v22 }
 0x2a7   : > { %v3696_v10 = vpop.eup %3695  ;;  %v3060_v34 = vadd.f32 %v3694_v4, %v5809_v41  ;;  %3155 = vst [vmem:[%s5234_s16 + $0x240] sm:$0xff] %v3058_v24 }
 0x2a8   : > { %v3698_v56 = vpop.eup %3697  ;;  %3156 = vst [vmem:[%s5234_s16 + $0x248] sm:$0xff] %v3059_v44  ;;  %v3064_v48 = vadd.f32 %v3696_v10, %v5822_v46 }
 0x2a9   : > { %v3700_v62 = vpop.eup %3699  ;;  %3157 = vst.msk [vmem:[%s5234_s16 + $0x250] sm:$0xff] %vm3084_vm2, %v3060_v34  ;;  %v2879_v6 = vadd.f32 1.0, %v3698_v56 }
 0x2aa   : > { %v3702_v50 = vpop.eup %3701  ;;  %3161 = vst [vmem:[%s5234_s16 + $0x270] sm:$0xff] %v3064_v48  ;;  %v2880_v57 = vadd.f32 1.0, %v3700_v62 }
 0x2ab   : > { %v3704_v60 = vpop.eup %3703  ;;  %3713 = vrcp.f32 %v2879_v6  ;;  %v2884_v17 = vadd.f32 1.0, %v3702_v50 }
 0x2ac   : > { %v3706_v52 = vpop.eup %3705  ;;  %3715 = vrcp.f32 %v2880_v57  ;;  %v2885_v41 = vadd.f32 1.0, %v3704_v60 }
 0x2ad   : > { %v2886_v61 = vadd.f32 1.0, %v3706_v52  ;;  %3717 = vrcp.f32 %v2884_v17 }
 0x2ae   : > { %v3708_v58 = vpop.eup %3707  ;;  %3719 = vrcp.f32 %v2885_v41 }
 0x2af   : > { %v3710_v46 = vpop.eup %3709  ;;  %v3065_v23 = vadd.f32 %v3708_v58, %v5826_v33  ;;  %3721 = vrcp.f32 %v2886_v61 }
 0x2b0   : > { %v3712_v21 = vpop.eup %3711  ;;  %v3066_v51 = vadd.f32 %v3710_v46, %v5829_v30 }
 0x2b1   : > { %3162 = vst [vmem:[%s5234_s16 + $0x278] sm:$0xff] %v3065_v23  ;;  %v3070_v49 = vadd.f32 %v3712_v21, %v5851_v42 }
 0x2b2   : > { %3163 = vst.msk [vmem:[%s5234_s16 + $0x280] sm:$0xff] %vm3084_vm2, %v3066_v51 }
 0x2b3   : > { %3167 = vst [vmem:[%s5234_s16 + $0x2a0] sm:$0xff] %v3070_v49 }
 0x2b5   : > { %v3714_v12 = vpop.eup %3713 }
 0x2b6   : > { %v3716_v29 = vpop.eup %3715  ;;  %v3071_v9 = vadd.f32 %v3714_v12, %v5854_v32 }
 0x2b7   : > { %v3718_v25 = vpop.eup %3717  ;;  %v3072_v33 = vadd.f32 %v3716_v29, %v5858_v59 }
 0x2b8   : > { %v3720_v5 = vpop.eup %3719  ;;  %3168 = vst [vmem:[%s5234_s16 + $0x2a8] sm:$0xff] %v3071_v9  ;;  %v3076_v30 = vadd.f32 %v3718_v25, %v5868_v13 }
 0x2b9   : > { %v3722_v53 = vpop.eup %3721  ;;  %3169 = vst.msk [vmem:[%s5234_s16 + $0x2b0] sm:$0xff] %vm3084_vm2, %v3072_v33  ;;  %v3077_v42 = vadd.f32 %v3720_v5, %v5872_v20 }
 0x2ba   : > { %v3078_v45 = vadd.f32 %v3722_v53, %v5874_v55  ;;  %3173 = vst [vmem:[%s5234_s16 + $0x2d0] sm:$0xff] %v3076_v30 }
 0x2bb   : > { %3174 = vst [vmem:[%s5234_s16 + $0x2d8] sm:$0xff] %v3077_v42 }
 0x2bc   : > { %3175 = vst.msk [vmem:[%s5234_s16 + $0x2e0] sm:$0xff] %vm3084_vm2, %v3078_v45 }
 0x2bd PF: > { %s14_s12 = sadd.s32 1, %s3761_s12  }
 0x2be   : > { %p11_p3 = scmp.ge.s32.totalorder %s14_s12, 4  }
 0x2c0   :  { %13 = sbr.rel (!%p11_p3) target bundleno = 1 (0x1), region = 70 }
 0x2c7   :  { %3203 = vsyncpa [#allocation3], 1 }
 0x2c8   :  { %3205 = vsyncpa [#allocation3 + $0x1], 1 }

</bundles_post_ra>
